<compile_context>
chip_gen: v7x
topology: tpu7x:2x2x1
jax: 0.10.0
libtpu: 0.0.40
codegen_flags: <defaults>
</compile_context>

<pallas_src>
import jax
import jax.numpy as jnp
from jax import lax
from jax.experimental import pallas as pl
from jax.experimental.pallas import tpu as pltpu

T_LEN     = 8              # tokens per sentence
EMB       = 32             # word embedding size
HID       = 32             # LSTM hidden size per direction
HID2      = 2 * HID        # 64
GATES     = 8 * HID        # 256 = 4 gates x 2 directions, fused
N_TAGS    = 16             # len(tagset)
VOCAB     = 50
VOCAB_PAD = 64             # vocab padded to a sublane multiple for the in-kernel gather
BATCH     = 16             # sentences in the demo batch
B_BLK     = 8              # sentences per grid step (sublane-aligned)

# Flip to jnp.bfloat16 for MXU-native single-pass matmuls (perf-review item); activations,
# state and accumulation stay f32.  Default f32 keeps the 1e-3 reference check tight.
WEIGHT_DTYPE = jnp.float32


# --------------------------------------------------------------------------
# Fused forward kernel: embedding gather + 2-layer fused BiLSTM + POS/dep head
# --------------------------------------------------------------------------
def _tagger_fwd_kernel(ids_ref, emb_ref, perm_ref,
                       wih0_ref, whh0_ref, b0_ref,
                       wih1_ref, whh1_ref, b1_ref,
                       w1_ref, b1c_ref,
                       w2d_ref, w2h_ref, b2d_ref, b2h_ref,
                       root_ref, bias_ref,
                       pos_ref, dep_ref):
    R = T_LEN * B_BLK                      # rows per grid step, time-major: row = t*B_BLK + b

    # ---- embedding gather fused in-kernel: one-hot(ids) @ table (one MXU pass, no XLA gather)
    ids = ids_ref[...]                                                       # [R, 1] int32
    vocab_iota = lax.broadcasted_iota(jnp.int32, (R, VOCAB_PAD), 1)
    onehot = (vocab_iota == ids).astype(jnp.float32)                         # [R, VOCAB_PAD]
    x0 = jnp.dot(onehot, emb_ref[...], preferred_element_type=jnp.float32)   # [R, EMB]

    # ---- direction-select masks (splat constants; fwd lanes of every fused slice) ----
    ones_h = jnp.ones((1, HID), jnp.float32)
    zeros_h = jnp.zeros((1, HID), jnp.float32)
    gate_fwd = jnp.concatenate([ones_h, zeros_h] * 4, axis=1) > 0.5          # [1, 8H]
    hid_fwd = jnp.concatenate([ones_h, zeros_h], axis=1) > 0.5               # [1, 2H]

    def bilstm(x, wih_ref, whh_ref, b_ref):
        """One bidirectional LSTM layer with fwd/bwd fused into a single recurrence."""
        whh = whh_ref[...]                                                   # [2H, 8H] blockdiag
        # Input projection hoisted out of the recurrence: one matmul for all T steps, both dirs.
        pre = jnp.dot(x.astype(WEIGHT_DTYPE), wih_ref[...],
                      preferred_element_type=jnp.float32) + b_ref[...]       # [R, 8H]

        h = jnp.zeros((B_BLK, HID2), jnp.float32)                            # [h_f | h_b]
        c = jnp.zeros((B_BLK, HID2), jnp.float32)                            # [c_f | c_b]
        states = []
        for s in range(T_LEN):                 # fully unrolled: fwd time s, bwd time T-1-s
            sb = T_LEN - 1 - s
            p_f = pre[s * B_BLK:(s + 1) * B_BLK, :]
            p_b = pre[sb * B_BLK:(sb + 1) * B_BLK, :]
            g = jnp.where(gate_fwd, p_f, p_b)                                # [B, 8H]
            if s > 0:                          # h == 0 at the first step
                g = g + jnp.dot(h.astype(WEIGHT_DTYPE), whh,
                                preferred_element_type=jnp.float32)
            # fused gate layout: [i | f | g | o], each a contiguous 64-lane (fwd,bwd) slice
            sg = jax.nn.sigmoid(g)
            tg = jnp.tanh(g[:, 4 * HID:6 * HID])
            c = sg[:, 2 * HID:4 * HID] * c + sg[:, 0:2 * HID] * tg
            h = sg[:, 6 * HID:8 * HID] * jnp.tanh(c)
            states.append(h)
        # out[t] = [h_f(t) | h_b(t)] assembled from SSA values (no VMEM scratch round trip).
        outs = [jnp.where(hid_fwd, states[t], states[T_LEN - 1 - t]) for t in range(T_LEN)]
        return jnp.concatenate(outs, axis=0)                                 # [R, 2H] time-major

    h0 = bilstm(x0, wih0_ref, whh0_ref, b0_ref)        # layer 0 (input = embeddings)
    ctx_tm = bilstm(h0, wih1_ref, whh1_ref, b1_ref)    # layer 1 -> contextual embeddings

    # time-major -> batch-major (row = b*T + t) via ONE permutation matmul (MXU, no shuffles)
    ctx = jnp.dot(perm_ref[...], ctx_tm, preferred_element_type=jnp.float32)  # [R, 2H]

    # ---- head stage 1: fused [dep_w1^T | hed_w1^T | w_lin^T] ----
    s1 = jnp.dot(ctx.astype(WEIGHT_DTYPE), w1_ref[...],
                 preferred_element_type=jnp.float32) + b1c_ref[...]          # [R, 4H + n_tags]
    hid = jnp.maximum(s1[:, 0:2 * HID2], 0.0)                                # [R, 4H]
    pos_ref[...] = s1[:, 2 * HID2:2 * HID2 + N_TAGS].reshape(B_BLK, T_LEN, N_TAGS)

    # ---- head stage 2: zero-padded weights -> no lane-offset slicing of the result ----
    hid_w = hid.astype(WEIGHT_DTYPE)
    D = jnp.dot(hid_w, w2d_ref[...], preferred_element_type=jnp.float32) + b2d_ref[...]
    Hm = jnp.dot(hid_w, w2h_ref[...], preferred_element_type=jnp.float32) + b2h_ref[...]
    Db = D + bias_ref[...]                                                   # (D + bias)
    root_row = root_ref[...]                                                 # [1, 2H]

    # dependency scores per sentence: (D_b + bias) @ [root ; H_b]^T
    for b in range(B_BLK):
        Db_b = Db[b * T_LEN:(b + 1) * T_LEN, :]
        Hm_b = Hm[b * T_LEN:(b + 1) * T_LEN, :]
        h_aug = jnp.concatenate([root_row, Hm_b], axis=0)                    # [T+1, 2H]
        dep_ref[b] = lax.dot_general(Db_b, h_aug, (((1,), (1,)), ((), ())),
                                     preferred_element_type=jnp.float32)     # [T, T+1]


def tagger_forward(word_ids, kp):
    """word_ids: [B, T] int32 (B % B_BLK == 0); kp: packed params (see pack_params)."""
    B = word_ids.shape[0]
    assert B % B_BLK == 0 and word_ids.shape[1] == T_LEN
    nb = B // B_BLK
    # time-major ids per block: row (t*B_BLK + b) of block i  <-  word_ids[i*B_BLK + b, t]
    ids_tm = (word_ids.astype(jnp.int32)
              .reshape(nb, B_BLK, T_LEN)
              .swapaxes(1, 2)
              .reshape(nb * T_LEN * B_BLK, 1))

    args = (ids_tm, kp['emb'], kp['perm'],
            kp['wih0'], kp['whh0'], kp['b0'],
            kp['wih1'], kp['whh1'], kp['b1'],
            kp['w1cat'], kp['b1cat'],
            kp['w2dep'], kp['w2hed'], kp['b2dep'], kp['b2hed'],
            kp['root'], kp['bias_row'])

    in_specs = [pl.BlockSpec((T_LEN * B_BLK, 1), lambda i: (i, 0))]
    in_specs += [pl.BlockSpec(a.shape, lambda i: (0, 0)) for a in args[1:]]

    out_specs = (pl.BlockSpec((B_BLK, T_LEN, N_TAGS), lambda i: (i, 0, 0)),
                 pl.BlockSpec((B_BLK, T_LEN, T_LEN + 1), lambda i: (i, 0, 0)))
    out_shape = (jax.ShapeDtypeStruct((B, T_LEN, N_TAGS), jnp.float32),
                 jax.ShapeDtypeStruct((B, T_LEN, T_LEN + 1), jnp.float32))

    return pl.pallas_call(
        _tagger_fwd_kernel,
        grid=(nb,),
        in_specs=in_specs,
        out_specs=out_specs,
        out_shape=out_shape,
        # Working set per grid step is <1 MiB -> far under the scoped-VMEM default on
        # v5e/v6e/v7x.  "parallel" lets v7x shard batch blocks across its 2 TensorCores.
        compiler_params=pltpu.CompilerParams(dimension_semantics=("parallel",)),
    )(*args)


# --------------------------------------------------------------------------
# One-time weight packing (all transposes / direction fusion done on the host)
# --------------------------------------------------------------------------
def pack_params(p):
    wdt = WEIGHT_DTYPE

    def pack_bilstm(fwd, bwd):
        w_ih_f, w_hh_f, b_ih_f, b_hh_f = fwd
        w_ih_b, w_hh_b, b_ih_b, b_hh_b = bwd
        ti_f, ti_b = w_ih_f.T, w_ih_b.T                # [I, 4H], PyTorch gate order i,f,g,o
        th_f, th_b = w_hh_f.T, w_hh_b.T                # [H, 4H]
        bf, bb = b_ih_f + b_hh_f, b_ih_b + b_hh_b
        wih_cols, b_cols = [], []
        whh = jnp.zeros((HID2, GATES), jnp.float32)    # block-diagonal fused recurrent weight
        for k in range(4):                              # fused columns: [.._f | .._b] per gate
            sl = slice(k * HID, (k + 1) * HID)
            wih_cols += [ti_f[:, sl], ti_b[:, sl]]
            b_cols += [bf[sl], bb[sl]]
            whh = whh.at[0:HID, 2 * k * HID:2 * k * HID + HID].set(th_f[:, sl])
            whh = whh.at[HID:HID2, 2 * k * HID + HID:2 * (k + 1) * HID].set(th_b[:, sl])
        return (jnp.concatenate(wih_cols, axis=1).astype(wdt),   # [I, 8H]
                whh.astype(wdt),                                 # [2H, 8H]
                jnp.concatenate(b_cols).reshape(1, -1))          # [1, 8H]

    kp = {}
    kp['emb'] = jnp.zeros((VOCAB_PAD, EMB), jnp.float32).at[:VOCAB, :].set(p['emb_table'])
    kp['wih0'], kp['whh0'], kp['b0'] = pack_bilstm(p['lstm0_f'], p['lstm0_b'])
    kp['wih1'], kp['whh1'], kp['b1'] = pack_bilstm(p['lstm1_f'], p['lstm1_b'])

    # head stage 1: [dep_w1^T | hed_w1^T | w_lin^T] -> [2H, 2H + 2H + n_tags]
    kp['w1cat'] = jnp.concatenate([p['dep_w1'].T, p['hed_w1'].T, p['w_lin'].T],
                                  axis=1).astype(wdt)
    kp['b1cat'] = jnp.concatenate([p['dep_b1'], p['hed_b1'], p['b_lin']]).reshape(1, -1)
    # head stage 2: zero-padded weights so both consume the full [., 4H] `hid`
    z = jnp.zeros((HID2, HID2), jnp.float32)
    kp['w2dep'] = jnp.concatenate([p['dep_w2'].T, z], axis=0).astype(wdt)    # [4H, 2H]
    kp['w2hed'] = jnp.concatenate([z, p['hed_w2'].T], axis=0).astype(wdt)    # [4H, 2H]
    kp['b2dep'] = p['dep_b2'].reshape(1, -1)
    kp['b2hed'] = p['hed_b2'].reshape(1, -1)

    kp['root'] = p['root_repr'].reshape(1, -1)
    kp['bias_row'] = p['bias'].reshape(1, -1)

    # permutation matrix: batch-major row (b*T + t) pulls time-major row (t*B_BLK + b)
    r = jnp.arange(T_LEN * B_BLK)
    src = (r % T_LEN) * B_BLK + r // T_LEN
    kp['perm'] = (src[:, None] == jnp.arange(T_LEN * B_BLK)[None, :]).astype(jnp.float32)
    return kp


# --------------------------------------------------------------------------
# Pure-JAX reference (per sentence, vmapped over the batch)
# --------------------------------------------------------------------------
def _lstm_dir_ref(x, w_ih, w_hh, b_ih, b_hh):
    def step(carry, x_t):
        h, c = carry
        gates = x_t @ w_ih.T + h @ w_hh.T + b_ih + b_hh
        i, f, g, o = jnp.split(gates, 4)
        c = jax.nn.sigmoid(f) * c + jax.nn.sigmoid(i) * jnp.tanh(g)
        h = jax.nn.sigmoid(o) * jnp.tanh(c)
        return (h, c), h
    _, hs = lax.scan(step, (jnp.zeros(HID), jnp.zeros(HID)), x)
    return hs


def _tagger_sentence_ref(word_ids_1d, p):
    embs = p['emb_table'][word_ids_1d]

    def bil(x, f, b):
        hf = _lstm_dir_ref(x, *f)
        hb = _lstm_dir_ref(x[::-1], *b)[::-1]
        return jnp.concatenate([hf, hb], axis=-1)

    h1 = bil(bil(embs, p['lstm0_f'], p['lstm0_b']), p['lstm1_f'], p['lstm1_b'])
    pos = h1 @ p['w_lin'].T + p['b_lin']
    D = jnp.maximum(h1 @ p['dep_w1'].T + p['dep_b1'], 0.0) @ p['dep_w2'].T + p['dep_b2']
    H = jnp.maximum(h1 @ p['hed_w1'].T + p['hed_b1'], 0.0) @ p['hed_w2'].T + p['hed_b2']
    H_r = jnp.concatenate([p['root_repr'][None, :], H], axis=0)
    dep = (D + p['bias'][None, :]) @ H_r.T
    return pos, dep


def tagger_forward_ref(word_ids, p):
    return jax.vmap(lambda ids: _tagger_sentence_ref(ids, p))(word_ids)


# --------------------------------------------------------------------------
# Deterministic parameter init (shapes follow Tagger.__init__)
# --------------------------------------------------------------------------
def init_params(key):
    keys = iter(jax.random.split(key, 32))

    def lin(out_f, in_f):
        k = 1.0 / jnp.sqrt(jnp.float32(in_f))
        w = jax.random.uniform(next(keys), (out_f, in_f), jnp.float32, -k, k)
        b = jax.random.uniform(next(keys), (out_f,), jnp.float32, -k, k)
        return w, b

    def lstm_dir(in_f):
        k = 1.0 / jnp.sqrt(jnp.float32(HID))
        w_ih = jax.random.uniform(next(keys), (4 * HID, in_f), jnp.float32, -k, k)
        w_hh = jax.random.uniform(next(keys), (4 * HID, HID), jnp.float32, -k, k)
        b_ih = jax.random.uniform(next(keys), (4 * HID,), jnp.float32, -k, k)
        b_hh = jax.random.uniform(next(keys), (4 * HID,), jnp.float32, -k, k)
        return (w_ih, w_hh, b_ih, b_hh)

    p = {}
    p['emb_table'] = 0.1 * jax.random.normal(next(keys), (VOCAB, EMB), jnp.float32)
    p['lstm0_f'] = lstm_dir(EMB)
    p['lstm0_b'] = lstm_dir(EMB)
    p['lstm1_f'] = lstm_dir(HID2)
    p['lstm1_b'] = lstm_dir(HID2)
    p['w_lin'], p['b_lin'] = lin(N_TAGS, HID2)        # self.linear_layer
    p['dep_w1'], p['dep_b1'] = lin(HID2, HID2)        # self.dep_repr MLP
    p['dep_w2'], p['dep_b2'] = lin(HID2, HID2)
    p['hed_w1'], p['hed_b1'] = lin(HID2, HID2)        # self.hed_repr MLP
    p['hed_w2'], p['hed_b2'] = lin(HID2, HID2)
    p['root_repr'] = jnp.zeros((HID2,), jnp.float32)              # nn.Parameter(torch.zeros(2H))
    p['bias'] = jax.random.normal(next(keys), (HID2,), jnp.float32)  # nn.Parameter(torch.randn)
    return p


if __name__ == "__main__":
    key = jax.random.PRNGKey(0)
    pkey, dkey = jax.random.split(key)
    params = init_params(pkey)
    kparams = pack_params(params)
    word_ids = jax.random.randint(dkey, (BATCH, T_LEN), 0, VOCAB)

    fwd = jax.jit(tagger_forward)
    pos_scores, dep_scores = jax.block_until_ready(fwd(word_ids, kparams))

    assert pos_scores.shape == (BATCH, T_LEN, N_TAGS)
    assert dep_scores.shape == (BATCH, T_LEN, T_LEN + 1)

    with jax.default_matmul_precision('highest'):
        pos_r, dep_r = tagger_forward_ref(word_ids, params)

    tol = 1e-3 if WEIGHT_DTYPE == jnp.float32 else 5e-2
    assert jnp.allclose(pos_scores, pos_r, rtol=tol, atol=tol), \
        float(jnp.max(jnp.abs(pos_scores - pos_r)))
    assert jnp.allclose(dep_scores, dep_r, rtol=tol, atol=tol), \
        float(jnp.max(jnp.abs(dep_scores - dep_r)))

    print("KERNEL_OK")
</pallas_src>

<mosaic_0001>
module attributes {stable_mosaic.version = 11 : i64} {
  func.func @_tagger_fwd_kernel(%arg0: i32, %arg1: memref<64x1xi32, #tpu.memory_space<vmem>>, %arg2: memref<64x32xf32, #tpu.memory_space<vmem>>, %arg3: memref<64x64xf32, #tpu.memory_space<vmem>>, %arg4: memref<32x256xf32, #tpu.memory_space<vmem>>, %arg5: memref<64x256xf32, #tpu.memory_space<vmem>>, %arg6: memref<1x256xf32, #tpu.memory_space<vmem>>, %arg7: memref<64x256xf32, #tpu.memory_space<vmem>>, %arg8: memref<64x256xf32, #tpu.memory_space<vmem>>, %arg9: memref<1x256xf32, #tpu.memory_space<vmem>>, %arg10: memref<64x144xf32, #tpu.memory_space<vmem>>, %arg11: memref<1x144xf32, #tpu.memory_space<vmem>>, %arg12: memref<128x64xf32, #tpu.memory_space<vmem>>, %arg13: memref<128x64xf32, #tpu.memory_space<vmem>>, %arg14: memref<1x64xf32, #tpu.memory_space<vmem>>, %arg15: memref<1x64xf32, #tpu.memory_space<vmem>>, %arg16: memref<1x64xf32, #tpu.memory_space<vmem>>, %arg17: memref<1x64xf32, #tpu.memory_space<vmem>>, %arg18: memref<8x8x16xf32, #tpu.memory_space<vmem>>, %arg19: memref<8x8x9xf32, #tpu.memory_space<vmem>>) attributes {dimension_semantics = [#tpu.dimension_semantics<parallel>], iteration_bounds = array<i64: 2>, scalar_prefetch = 0 : i64, scratch_operands = 0 : i64, tpu.core_type = #tpu.core_type<tc>, window_params = [{transform_indices = @transform_0, window_bounds = array<i64: 64, 1>}, {pipeline_mode = #tpu.pipeline_mode<synchronous>, transform_indices = @transform_1, window_bounds = array<i64: 64, 32>}, {pipeline_mode = #tpu.pipeline_mode<synchronous>, transform_indices = @transform_2, window_bounds = array<i64: 64, 64>}, {pipeline_mode = #tpu.pipeline_mode<synchronous>, transform_indices = @transform_3, window_bounds = array<i64: 32, 256>}, {pipeline_mode = #tpu.pipeline_mode<synchronous>, transform_indices = @transform_4, window_bounds = array<i64: 64, 256>}, {pipeline_mode = #tpu.pipeline_mode<synchronous>, transform_indices = @transform_5, window_bounds = array<i64: 1, 256>}, {pipeline_mode = #tpu.pipeline_mode<synchronous>, transform_indices = @transform_6, window_bounds = array<i64: 64, 256>}, {pipeline_mode = #tpu.pipeline_mode<synchronous>, transform_indices = @transform_7, window_bounds = array<i64: 64, 256>}, {pipeline_mode = #tpu.pipeline_mode<synchronous>, transform_indices = @transform_8, window_bounds = array<i64: 1, 256>}, {pipeline_mode = #tpu.pipeline_mode<synchronous>, transform_indices = @transform_9, window_bounds = array<i64: 64, 144>}, {pipeline_mode = #tpu.pipeline_mode<synchronous>, transform_indices = @transform_10, window_bounds = array<i64: 1, 144>}, {pipeline_mode = #tpu.pipeline_mode<synchronous>, transform_indices = @transform_11, window_bounds = array<i64: 128, 64>}, {pipeline_mode = #tpu.pipeline_mode<synchronous>, transform_indices = @transform_12, window_bounds = array<i64: 128, 64>}, {pipeline_mode = #tpu.pipeline_mode<synchronous>, transform_indices = @transform_13, window_bounds = array<i64: 1, 64>}, {pipeline_mode = #tpu.pipeline_mode<synchronous>, transform_indices = @transform_14, window_bounds = array<i64: 1, 64>}, {pipeline_mode = #tpu.pipeline_mode<synchronous>, transform_indices = @transform_15, window_bounds = array<i64: 1, 64>}, {pipeline_mode = #tpu.pipeline_mode<synchronous>, transform_indices = @transform_16, window_bounds = array<i64: 1, 64>}, {transform_indices = @transform_17, window_bounds = array<i64: 8, 8, 16>}, {transform_indices = @transform_18, window_bounds = array<i64: 8, 8, 9>}]} {
    %c0 = arith.constant 0 : index
    %c0_0 = arith.constant 0 : index
    %0 = vector.load %arg1[%c0, %c0_0] : memref<64x1xi32, #tpu.memory_space<vmem>>, vector<64x1xi32>
    %1 = tpu.iota {dimensions = array<i32: 1>} : vector<64x64xi32>
    %2 = vector.broadcast %0 : vector<64x1xi32> to vector<64x64xi32>
    %3 = arith.cmpi eq, %1, %2 : vector<64x64xi32>
    %4 = arith.extui %3 : vector<64x64xi1> to vector<64x64xi32>
    %5 = arith.sitofp %4 : vector<64x64xi32> to vector<64x64xf32>
    %c0_1 = arith.constant 0 : index
    %c0_2 = arith.constant 0 : index
    %6 = vector.load %arg2[%c0_1, %c0_2] : memref<64x32xf32, #tpu.memory_space<vmem>>, vector<64x32xf32>
    %cst = arith.constant dense<0.000000e+00> : vector<64x32xf32>
    %7 = tpu.matmul %5, %6, %cst {dimension_numbers = #tpu.dot_dimension_numbers<[1], [0], [0], [1], [0, 0, 1, 1], [], []>} : vector<64x64xf32>, vector<64x32xf32>, vector<64x32xf32> -> vector<64x32xf32>
    %cst_3 = arith.constant 1.000000e+00 : f32
    %8 = vector.broadcast %cst_3 : f32 to vector<1x32xf32>
    %cst_4 = arith.constant 0.000000e+00 : f32
    %9 = vector.broadcast %cst_4 : f32 to vector<1x32xf32>
    %10 = tpu.concatenate %8, %9, %8, %9, %8, %9, %8, %9 in 1 : vector<1x32xf32>, vector<1x32xf32>, vector<1x32xf32>, vector<1x32xf32>, vector<1x32xf32>, vector<1x32xf32>, vector<1x32xf32>, vector<1x32xf32> -> vector<1x256xf32>
    %cst_5 = arith.constant 5.000000e-01 : f32
    %11 = vector.broadcast %cst_5 : f32 to vector<1x256xf32>
    %12 = arith.cmpf ogt, %10, %11 : vector<1x256xf32>
    %13 = tpu.concatenate %8, %9 in 1 : vector<1x32xf32>, vector<1x32xf32> -> vector<1x64xf32>
    %cst_6 = arith.constant 5.000000e-01 : f32
    %14 = vector.broadcast %cst_6 : f32 to vector<1x64xf32>
    %15 = arith.cmpf ogt, %13, %14 : vector<1x64xf32>
    %c0_7 = arith.constant 0 : index
    %c0_8 = arith.constant 0 : index
    %16 = vector.load %arg5[%c0_7, %c0_8] : memref<64x256xf32, #tpu.memory_space<vmem>>, vector<64x256xf32>
    %c0_9 = arith.constant 0 : index
    %c0_10 = arith.constant 0 : index
    %17 = vector.load %arg4[%c0_9, %c0_10] : memref<32x256xf32, #tpu.memory_space<vmem>>, vector<32x256xf32>
    %cst_11 = arith.constant dense<0.000000e+00> : vector<64x256xf32>
    %18 = tpu.matmul %7, %17, %cst_11 {dimension_numbers = #tpu.dot_dimension_numbers<[1], [0], [0], [1], [0, 0, 1, 1], [], []>} : vector<64x32xf32>, vector<32x256xf32>, vector<64x256xf32> -> vector<64x256xf32>
    %c0_12 = arith.constant 0 : index
    %c0_13 = arith.constant 0 : index
    %19 = vector.load %arg6[%c0_12, %c0_13] : memref<1x256xf32, #tpu.memory_space<vmem>>, vector<1x256xf32>
    %20 = vector.broadcast %19 : vector<1x256xf32> to vector<64x256xf32>
    %21 = arith.addf %18, %20 : vector<64x256xf32>
    %cst_14 = arith.constant 0.000000e+00 : f32
    %22 = vector.broadcast %cst_14 : f32 to vector<8x64xf32>
    %23 = vector.extract_strided_slice %21 {offsets = [0, 0], sizes = [8, 256], strides = [1, 1]} : vector<64x256xf32> to vector<8x256xf32>
    %24 = vector.extract_strided_slice %21 {offsets = [56, 0], sizes = [8, 256], strides = [1, 1]} : vector<64x256xf32> to vector<8x256xf32>
    %25 = vector.shape_cast %12 : vector<1x256xi1> to vector<1x256xi1>
    %26 = vector.broadcast %25 : vector<1x256xi1> to vector<8x256xi1>
    %27 = arith.select %26, %23, %24 : vector<8x256xi1>, vector<8x256xf32>
    %28 = arith.negf %27 : vector<8x256xf32>
    %29 = math.exp %28 : vector<8x256xf32>
    %cst_15 = arith.constant 1.000000e+00 : f32
    %30 = vector.broadcast %cst_15 : f32 to vector<8x256xf32>
    %31 = arith.addf %30, %29 : vector<8x256xf32>
    %32 = arith.divf %30, %31 : vector<8x256xf32>
    %33 = vector.extract_strided_slice %27 {offsets = [0, 128], sizes = [8, 64], strides = [1, 1]} : vector<8x256xf32> to vector<8x64xf32>
    %34 = math.tanh %33 : vector<8x64xf32>
    %35 = vector.extract_strided_slice %32 {offsets = [0, 64], sizes = [8, 64], strides = [1, 1]} : vector<8x256xf32> to vector<8x64xf32>
    %36 = arith.mulf %35, %22 : vector<8x64xf32>
    %37 = vector.extract_strided_slice %32 {offsets = [0, 0], sizes = [8, 64], strides = [1, 1]} : vector<8x256xf32> to vector<8x64xf32>
    %38 = arith.mulf %37, %34 : vector<8x64xf32>
    %39 = arith.addf %36, %38 : vector<8x64xf32>
    %40 = vector.extract_strided_slice %32 {offsets = [0, 192], sizes = [8, 64], strides = [1, 1]} : vector<8x256xf32> to vector<8x64xf32>
    %41 = math.tanh %39 : vector<8x64xf32>
    %42 = arith.mulf %40, %41 : vector<8x64xf32>
    %43 = vector.extract_strided_slice %21 {offsets = [8, 0], sizes = [8, 256], strides = [1, 1]} : vector<64x256xf32> to vector<8x256xf32>
    %44 = vector.extract_strided_slice %21 {offsets = [48, 0], sizes = [8, 256], strides = [1, 1]} : vector<64x256xf32> to vector<8x256xf32>
    %45 = vector.shape_cast %12 : vector<1x256xi1> to vector<1x256xi1>
    %46 = vector.broadcast %45 : vector<1x256xi1> to vector<8x256xi1>
    %47 = arith.select %46, %43, %44 : vector<8x256xi1>, vector<8x256xf32>
    %cst_16 = arith.constant dense<0.000000e+00> : vector<8x256xf32>
    %48 = tpu.matmul %42, %16, %cst_16 {dimension_numbers = #tpu.dot_dimension_numbers<[1], [0], [0], [1], [0, 0, 1, 1], [], []>} : vector<8x64xf32>, vector<64x256xf32>, vector<8x256xf32> -> vector<8x256xf32>
    %49 = arith.addf %47, %48 : vector<8x256xf32>
    %50 = arith.negf %49 : vector<8x256xf32>
    %51 = math.exp %50 : vector<8x256xf32>
    %cst_17 = arith.constant 1.000000e+00 : f32
    %52 = vector.broadcast %cst_17 : f32 to vector<8x256xf32>
    %53 = arith.addf %52, %51 : vector<8x256xf32>
    %54 = arith.divf %52, %53 : vector<8x256xf32>
    %55 = vector.extract_strided_slice %49 {offsets = [0, 128], sizes = [8, 64], strides = [1, 1]} : vector<8x256xf32> to vector<8x64xf32>
    %56 = math.tanh %55 : vector<8x64xf32>
    %57 = vector.extract_strided_slice %54 {offsets = [0, 64], sizes = [8, 64], strides = [1, 1]} : vector<8x256xf32> to vector<8x64xf32>
    %58 = arith.mulf %57, %39 : vector<8x64xf32>
    %59 = vector.extract_strided_slice %54 {offsets = [0, 0], sizes = [8, 64], strides = [1, 1]} : vector<8x256xf32> to vector<8x64xf32>
    %60 = arith.mulf %59, %56 : vector<8x64xf32>
    %61 = arith.addf %58, %60 : vector<8x64xf32>
    %62 = vector.extract_strided_slice %54 {offsets = [0, 192], sizes = [8, 64], strides = [1, 1]} : vector<8x256xf32> to vector<8x64xf32>
    %63 = math.tanh %61 : vector<8x64xf32>
    %64 = arith.mulf %62, %63 : vector<8x64xf32>
    %65 = vector.extract_strided_slice %21 {offsets = [16, 0], sizes = [8, 256], strides = [1, 1]} : vector<64x256xf32> to vector<8x256xf32>
    %66 = vector.extract_strided_slice %21 {offsets = [40, 0], sizes = [8, 256], strides = [1, 1]} : vector<64x256xf32> to vector<8x256xf32>
    %67 = vector.shape_cast %12 : vector<1x256xi1> to vector<1x256xi1>
    %68 = vector.broadcast %67 : vector<1x256xi1> to vector<8x256xi1>
    %69 = arith.select %68, %65, %66 : vector<8x256xi1>, vector<8x256xf32>
    %cst_18 = arith.constant dense<0.000000e+00> : vector<8x256xf32>
    %70 = tpu.matmul %64, %16, %cst_18 {dimension_numbers = #tpu.dot_dimension_numbers<[1], [0], [0], [1], [0, 0, 1, 1], [], []>} : vector<8x64xf32>, vector<64x256xf32>, vector<8x256xf32> -> vector<8x256xf32>
    %71 = arith.addf %69, %70 : vector<8x256xf32>
    %72 = arith.negf %71 : vector<8x256xf32>
    %73 = math.exp %72 : vector<8x256xf32>
    %cst_19 = arith.constant 1.000000e+00 : f32
    %74 = vector.broadcast %cst_19 : f32 to vector<8x256xf32>
    %75 = arith.addf %74, %73 : vector<8x256xf32>
    %76 = arith.divf %74, %75 : vector<8x256xf32>
    %77 = vector.extract_strided_slice %71 {offsets = [0, 128], sizes = [8, 64], strides = [1, 1]} : vector<8x256xf32> to vector<8x64xf32>
    %78 = math.tanh %77 : vector<8x64xf32>
    %79 = vector.extract_strided_slice %76 {offsets = [0, 64], sizes = [8, 64], strides = [1, 1]} : vector<8x256xf32> to vector<8x64xf32>
    %80 = arith.mulf %79, %61 : vector<8x64xf32>
    %81 = vector.extract_strided_slice %76 {offsets = [0, 0], sizes = [8, 64], strides = [1, 1]} : vector<8x256xf32> to vector<8x64xf32>
    %82 = arith.mulf %81, %78 : vector<8x64xf32>
    %83 = arith.addf %80, %82 : vector<8x64xf32>
    %84 = vector.extract_strided_slice %76 {offsets = [0, 192], sizes = [8, 64], strides = [1, 1]} : vector<8x256xf32> to vector<8x64xf32>
    %85 = math.tanh %83 : vector<8x64xf32>
    %86 = arith.mulf %84, %85 : vector<8x64xf32>
    %87 = vector.extract_strided_slice %21 {offsets = [24, 0], sizes = [8, 256], strides = [1, 1]} : vector<64x256xf32> to vector<8x256xf32>
    %88 = vector.extract_strided_slice %21 {offsets = [32, 0], sizes = [8, 256], strides = [1, 1]} : vector<64x256xf32> to vector<8x256xf32>
    %89 = vector.shape_cast %12 : vector<1x256xi1> to vector<1x256xi1>
    %90 = vector.broadcast %89 : vector<1x256xi1> to vector<8x256xi1>
    %91 = arith.select %90, %87, %88 : vector<8x256xi1>, vector<8x256xf32>
    %cst_20 = arith.constant dense<0.000000e+00> : vector<8x256xf32>
    %92 = tpu.matmul %86, %16, %cst_20 {dimension_numbers = #tpu.dot_dimension_numbers<[1], [0], [0], [1], [0, 0, 1, 1], [], []>} : vector<8x64xf32>, vector<64x256xf32>, vector<8x256xf32> -> vector<8x256xf32>
    %93 = arith.addf %91, %92 : vector<8x256xf32>
    %94 = arith.negf %93 : vector<8x256xf32>
    %95 = math.exp %94 : vector<8x256xf32>
    %cst_21 = arith.constant 1.000000e+00 : f32
    %96 = vector.broadcast %cst_21 : f32 to vector<8x256xf32>
    %97 = arith.addf %96, %95 : vector<8x256xf32>
    %98 = arith.divf %96, %97 : vector<8x256xf32>
    %99 = vector.extract_strided_slice %93 {offsets = [0, 128], sizes = [8, 64], strides = [1, 1]} : vector<8x256xf32> to vector<8x64xf32>
    %100 = math.tanh %99 : vector<8x64xf32>
    %101 = vector.extract_strided_slice %98 {offsets = [0, 64], sizes = [8, 64], strides = [1, 1]} : vector<8x256xf32> to vector<8x64xf32>
    %102 = arith.mulf %101, %83 : vector<8x64xf32>
    %103 = vector.extract_strided_slice %98 {offsets = [0, 0], sizes = [8, 64], strides = [1, 1]} : vector<8x256xf32> to vector<8x64xf32>
    %104 = arith.mulf %103, %100 : vector<8x64xf32>
    %105 = arith.addf %102, %104 : vector<8x64xf32>
    %106 = vector.extract_strided_slice %98 {offsets = [0, 192], sizes = [8, 64], strides = [1, 1]} : vector<8x256xf32> to vector<8x64xf32>
    %107 = math.tanh %105 : vector<8x64xf32>
    %108 = arith.mulf %106, %107 : vector<8x64xf32>
    %109 = vector.extract_strided_slice %21 {offsets = [32, 0], sizes = [8, 256], strides = [1, 1]} : vector<64x256xf32> to vector<8x256xf32>
    %110 = vector.extract_strided_slice %21 {offsets = [24, 0], sizes = [8, 256], strides = [1, 1]} : vector<64x256xf32> to vector<8x256xf32>
    %111 = vector.shape_cast %12 : vector<1x256xi1> to vector<1x256xi1>
    %112 = vector.broadcast %111 : vector<1x256xi1> to vector<8x256xi1>
    %113 = arith.select %112, %109, %110 : vector<8x256xi1>, vector<8x256xf32>
    %cst_22 = arith.constant dense<0.000000e+00> : vector<8x256xf32>
    %114 = tpu.matmul %108, %16, %cst_22 {dimension_numbers = #tpu.dot_dimension_numbers<[1], [0], [0], [1], [0, 0, 1, 1], [], []>} : vector<8x64xf32>, vector<64x256xf32>, vector<8x256xf32> -> vector<8x256xf32>
    %115 = arith.addf %113, %114 : vector<8x256xf32>
    %116 = arith.negf %115 : vector<8x256xf32>
    %117 = math.exp %116 : vector<8x256xf32>
    %cst_23 = arith.constant 1.000000e+00 : f32
    %118 = vector.broadcast %cst_23 : f32 to vector<8x256xf32>
    %119 = arith.addf %118, %117 : vector<8x256xf32>
    %120 = arith.divf %118, %119 : vector<8x256xf32>
    %121 = vector.extract_strided_slice %115 {offsets = [0, 128], sizes = [8, 64], strides = [1, 1]} : vector<8x256xf32> to vector<8x64xf32>
    %122 = math.tanh %121 : vector<8x64xf32>
    %123 = vector.extract_strided_slice %120 {offsets = [0, 64], sizes = [8, 64], strides = [1, 1]} : vector<8x256xf32> to vector<8x64xf32>
    %124 = arith.mulf %123, %105 : vector<8x64xf32>
    %125 = vector.extract_strided_slice %120 {offsets = [0, 0], sizes = [8, 64], strides = [1, 1]} : vector<8x256xf32> to vector<8x64xf32>
    %126 = arith.mulf %125, %122 : vector<8x64xf32>
    %127 = arith.addf %124, %126 : vector<8x64xf32>
    %128 = vector.extract_strided_slice %120 {offsets = [0, 192], sizes = [8, 64], strides = [1, 1]} : vector<8x256xf32> to vector<8x64xf32>
    %129 = math.tanh %127 : vector<8x64xf32>
    %130 = arith.mulf %128, %129 : vector<8x64xf32>
    %131 = vector.extract_strided_slice %21 {offsets = [40, 0], sizes = [8, 256], strides = [1, 1]} : vector<64x256xf32> to vector<8x256xf32>
    %132 = vector.extract_strided_slice %21 {offsets = [16, 0], sizes = [8, 256], strides = [1, 1]} : vector<64x256xf32> to vector<8x256xf32>
    %133 = vector.shape_cast %12 : vector<1x256xi1> to vector<1x256xi1>
    %134 = vector.broadcast %133 : vector<1x256xi1> to vector<8x256xi1>
    %135 = arith.select %134, %131, %132 : vector<8x256xi1>, vector<8x256xf32>
    %cst_24 = arith.constant dense<0.000000e+00> : vector<8x256xf32>
    %136 = tpu.matmul %130, %16, %cst_24 {dimension_numbers = #tpu.dot_dimension_numbers<[1], [0], [0], [1], [0, 0, 1, 1], [], []>} : vector<8x64xf32>, vector<64x256xf32>, vector<8x256xf32> -> vector<8x256xf32>
    %137 = arith.addf %135, %136 : vector<8x256xf32>
    %138 = arith.negf %137 : vector<8x256xf32>
    %139 = math.exp %138 : vector<8x256xf32>
    %cst_25 = arith.constant 1.000000e+00 : f32
    %140 = vector.broadcast %cst_25 : f32 to vector<8x256xf32>
    %141 = arith.addf %140, %139 : vector<8x256xf32>
    %142 = arith.divf %140, %141 : vector<8x256xf32>
    %143 = vector.extract_strided_slice %137 {offsets = [0, 128], sizes = [8, 64], strides = [1, 1]} : vector<8x256xf32> to vector<8x64xf32>
    %144 = math.tanh %143 : vector<8x64xf32>
    %145 = vector.extract_strided_slice %142 {offsets = [0, 64], sizes = [8, 64], strides = [1, 1]} : vector<8x256xf32> to vector<8x64xf32>
    %146 = arith.mulf %145, %127 : vector<8x64xf32>
    %147 = vector.extract_strided_slice %142 {offsets = [0, 0], sizes = [8, 64], strides = [1, 1]} : vector<8x256xf32> to vector<8x64xf32>
    %148 = arith.mulf %147, %144 : vector<8x64xf32>
    %149 = arith.addf %146, %148 : vector<8x64xf32>
    %150 = vector.extract_strided_slice %142 {offsets = [0, 192], sizes = [8, 64], strides = [1, 1]} : vector<8x256xf32> to vector<8x64xf32>
    %151 = math.tanh %149 : vector<8x64xf32>
    %152 = arith.mulf %150, %151 : vector<8x64xf32>
    %153 = vector.extract_strided_slice %21 {offsets = [48, 0], sizes = [8, 256], strides = [1, 1]} : vector<64x256xf32> to vector<8x256xf32>
    %154 = vector.extract_strided_slice %21 {offsets = [8, 0], sizes = [8, 256], strides = [1, 1]} : vector<64x256xf32> to vector<8x256xf32>
    %155 = vector.shape_cast %12 : vector<1x256xi1> to vector<1x256xi1>
    %156 = vector.broadcast %155 : vector<1x256xi1> to vector<8x256xi1>
    %157 = arith.select %156, %153, %154 : vector<8x256xi1>, vector<8x256xf32>
    %cst_26 = arith.constant dense<0.000000e+00> : vector<8x256xf32>
    %158 = tpu.matmul %152, %16, %cst_26 {dimension_numbers = #tpu.dot_dimension_numbers<[1], [0], [0], [1], [0, 0, 1, 1], [], []>} : vector<8x64xf32>, vector<64x256xf32>, vector<8x256xf32> -> vector<8x256xf32>
    %159 = arith.addf %157, %158 : vector<8x256xf32>
    %160 = arith.negf %159 : vector<8x256xf32>
    %161 = math.exp %160 : vector<8x256xf32>
    %cst_27 = arith.constant 1.000000e+00 : f32
    %162 = vector.broadcast %cst_27 : f32 to vector<8x256xf32>
    %163 = arith.addf %162, %161 : vector<8x256xf32>
    %164 = arith.divf %162, %163 : vector<8x256xf32>
    %165 = vector.extract_strided_slice %159 {offsets = [0, 128], sizes = [8, 64], strides = [1, 1]} : vector<8x256xf32> to vector<8x64xf32>
    %166 = math.tanh %165 : vector<8x64xf32>
    %167 = vector.extract_strided_slice %164 {offsets = [0, 64], sizes = [8, 64], strides = [1, 1]} : vector<8x256xf32> to vector<8x64xf32>
    %168 = arith.mulf %167, %149 : vector<8x64xf32>
    %169 = vector.extract_strided_slice %164 {offsets = [0, 0], sizes = [8, 64], strides = [1, 1]} : vector<8x256xf32> to vector<8x64xf32>
    %170 = arith.mulf %169, %166 : vector<8x64xf32>
    %171 = arith.addf %168, %170 : vector<8x64xf32>
    %172 = vector.extract_strided_slice %164 {offsets = [0, 192], sizes = [8, 64], strides = [1, 1]} : vector<8x256xf32> to vector<8x64xf32>
    %173 = math.tanh %171 : vector<8x64xf32>
    %174 = arith.mulf %172, %173 : vector<8x64xf32>
    %175 = vector.extract_strided_slice %21 {offsets = [56, 0], sizes = [8, 256], strides = [1, 1]} : vector<64x256xf32> to vector<8x256xf32>
    %176 = vector.extract_strided_slice %21 {offsets = [0, 0], sizes = [8, 256], strides = [1, 1]} : vector<64x256xf32> to vector<8x256xf32>
    %177 = vector.shape_cast %12 : vector<1x256xi1> to vector<1x256xi1>
    %178 = vector.broadcast %177 : vector<1x256xi1> to vector<8x256xi1>
    %179 = arith.select %178, %175, %176 : vector<8x256xi1>, vector<8x256xf32>
    %cst_28 = arith.constant dense<0.000000e+00> : vector<8x256xf32>
    %180 = tpu.matmul %174, %16, %cst_28 {dimension_numbers = #tpu.dot_dimension_numbers<[1], [0], [0], [1], [0, 0, 1, 1], [], []>} : vector<8x64xf32>, vector<64x256xf32>, vector<8x256xf32> -> vector<8x256xf32>
    %181 = arith.addf %179, %180 : vector<8x256xf32>
    %182 = arith.negf %181 : vector<8x256xf32>
    %183 = math.exp %182 : vector<8x256xf32>
    %cst_29 = arith.constant 1.000000e+00 : f32
    %184 = vector.broadcast %cst_29 : f32 to vector<8x256xf32>
    %185 = arith.addf %184, %183 : vector<8x256xf32>
    %186 = arith.divf %184, %185 : vector<8x256xf32>
    %187 = vector.extract_strided_slice %181 {offsets = [0, 128], sizes = [8, 64], strides = [1, 1]} : vector<8x256xf32> to vector<8x64xf32>
    %188 = math.tanh %187 : vector<8x64xf32>
    %189 = vector.extract_strided_slice %186 {offsets = [0, 64], sizes = [8, 64], strides = [1, 1]} : vector<8x256xf32> to vector<8x64xf32>
    %190 = arith.mulf %189, %171 : vector<8x64xf32>
    %191 = vector.extract_strided_slice %186 {offsets = [0, 0], sizes = [8, 64], strides = [1, 1]} : vector<8x256xf32> to vector<8x64xf32>
    %192 = arith.mulf %191, %188 : vector<8x64xf32>
    %193 = arith.addf %190, %192 : vector<8x64xf32>
    %194 = vector.extract_strided_slice %186 {offsets = [0, 192], sizes = [8, 64], strides = [1, 1]} : vector<8x256xf32> to vector<8x64xf32>
    %195 = math.tanh %193 : vector<8x64xf32>
    %196 = arith.mulf %194, %195 : vector<8x64xf32>
    %197 = vector.shape_cast %15 : vector<1x64xi1> to vector<1x64xi1>
    %198 = vector.broadcast %197 : vector<1x64xi1> to vector<8x64xi1>
    %199 = arith.select %198, %42, %196 : vector<8x64xi1>, vector<8x64xf32>
    %200 = vector.shape_cast %15 : vector<1x64xi1> to vector<1x64xi1>
    %201 = vector.broadcast %200 : vector<1x64xi1> to vector<8x64xi1>
    %202 = arith.select %201, %64, %174 : vector<8x64xi1>, vector<8x64xf32>
    %203 = vector.shape_cast %15 : vector<1x64xi1> to vector<1x64xi1>
    %204 = vector.broadcast %203 : vector<1x64xi1> to vector<8x64xi1>
    %205 = arith.select %204, %86, %152 : vector<8x64xi1>, vector<8x64xf32>
    %206 = vector.shape_cast %15 : vector<1x64xi1> to vector<1x64xi1>
    %207 = vector.broadcast %206 : vector<1x64xi1> to vector<8x64xi1>
    %208 = arith.select %207, %108, %130 : vector<8x64xi1>, vector<8x64xf32>
    %209 = vector.shape_cast %15 : vector<1x64xi1> to vector<1x64xi1>
    %210 = vector.broadcast %209 : vector<1x64xi1> to vector<8x64xi1>
    %211 = arith.select %210, %130, %108 : vector<8x64xi1>, vector<8x64xf32>
    %212 = vector.shape_cast %15 : vector<1x64xi1> to vector<1x64xi1>
    %213 = vector.broadcast %212 : vector<1x64xi1> to vector<8x64xi1>
    %214 = arith.select %213, %152, %86 : vector<8x64xi1>, vector<8x64xf32>
    %215 = vector.shape_cast %15 : vector<1x64xi1> to vector<1x64xi1>
    %216 = vector.broadcast %215 : vector<1x64xi1> to vector<8x64xi1>
    %217 = arith.select %216, %174, %64 : vector<8x64xi1>, vector<8x64xf32>
    %218 = vector.shape_cast %15 : vector<1x64xi1> to vector<1x64xi1>
    %219 = vector.broadcast %218 : vector<1x64xi1> to vector<8x64xi1>
    %220 = arith.select %219, %196, %42 : vector<8x64xi1>, vector<8x64xf32>
    %221 = tpu.concatenate %199, %202, %205, %208, %211, %214, %217, %220 in 0 : vector<8x64xf32>, vector<8x64xf32>, vector<8x64xf32>, vector<8x64xf32>, vector<8x64xf32>, vector<8x64xf32>, vector<8x64xf32>, vector<8x64xf32> -> vector<64x64xf32>
    %c0_30 = arith.constant 0 : index
    %c0_31 = arith.constant 0 : index
    %222 = vector.load %arg8[%c0_30, %c0_31] : memref<64x256xf32, #tpu.memory_space<vmem>>, vector<64x256xf32>
    %c0_32 = arith.constant 0 : index
    %c0_33 = arith.constant 0 : index
    %223 = vector.load %arg7[%c0_32, %c0_33] : memref<64x256xf32, #tpu.memory_space<vmem>>, vector<64x256xf32>
    %cst_34 = arith.constant dense<0.000000e+00> : vector<64x256xf32>
    %224 = tpu.matmul %221, %223, %cst_34 {dimension_numbers = #tpu.dot_dimension_numbers<[1], [0], [0], [1], [0, 0, 1, 1], [], []>} : vector<64x64xf32>, vector<64x256xf32>, vector<64x256xf32> -> vector<64x256xf32>
    %c0_35 = arith.constant 0 : index
    %c0_36 = arith.constant 0 : index
    %225 = vector.load %arg9[%c0_35, %c0_36] : memref<1x256xf32, #tpu.memory_space<vmem>>, vector<1x256xf32>
    %226 = vector.broadcast %225 : vector<1x256xf32> to vector<64x256xf32>
    %227 = arith.addf %224, %226 : vector<64x256xf32>
    %cst_37 = arith.constant 0.000000e+00 : f32
    %228 = vector.broadcast %cst_37 : f32 to vector<8x64xf32>
    %229 = vector.extract_strided_slice %227 {offsets = [0, 0], sizes = [8, 256], strides = [1, 1]} : vector<64x256xf32> to vector<8x256xf32>
    %230 = vector.extract_strided_slice %227 {offsets = [56, 0], sizes = [8, 256], strides = [1, 1]} : vector<64x256xf32> to vector<8x256xf32>
    %231 = vector.shape_cast %12 : vector<1x256xi1> to vector<1x256xi1>
    %232 = vector.broadcast %231 : vector<1x256xi1> to vector<8x256xi1>
    %233 = arith.select %232, %229, %230 : vector<8x256xi1>, vector<8x256xf32>
    %234 = arith.negf %233 : vector<8x256xf32>
    %235 = math.exp %234 : vector<8x256xf32>
    %cst_38 = arith.constant 1.000000e+00 : f32
    %236 = vector.broadcast %cst_38 : f32 to vector<8x256xf32>
    %237 = arith.addf %236, %235 : vector<8x256xf32>
    %238 = arith.divf %236, %237 : vector<8x256xf32>
    %239 = vector.extract_strided_slice %233 {offsets = [0, 128], sizes = [8, 64], strides = [1, 1]} : vector<8x256xf32> to vector<8x64xf32>
    %240 = math.tanh %239 : vector<8x64xf32>
    %241 = vector.extract_strided_slice %238 {offsets = [0, 64], sizes = [8, 64], strides = [1, 1]} : vector<8x256xf32> to vector<8x64xf32>
    %242 = arith.mulf %241, %228 : vector<8x64xf32>
    %243 = vector.extract_strided_slice %238 {offsets = [0, 0], sizes = [8, 64], strides = [1, 1]} : vector<8x256xf32> to vector<8x64xf32>
    %244 = arith.mulf %243, %240 : vector<8x64xf32>
    %245 = arith.addf %242, %244 : vector<8x64xf32>
    %246 = vector.extract_strided_slice %238 {offsets = [0, 192], sizes = [8, 64], strides = [1, 1]} : vector<8x256xf32> to vector<8x64xf32>
    %247 = math.tanh %245 : vector<8x64xf32>
    %248 = arith.mulf %246, %247 : vector<8x64xf32>
    %249 = vector.extract_strided_slice %227 {offsets = [8, 0], sizes = [8, 256], strides = [1, 1]} : vector<64x256xf32> to vector<8x256xf32>
    %250 = vector.extract_strided_slice %227 {offsets = [48, 0], sizes = [8, 256], strides = [1, 1]} : vector<64x256xf32> to vector<8x256xf32>
    %251 = vector.shape_cast %12 : vector<1x256xi1> to vector<1x256xi1>
    %252 = vector.broadcast %251 : vector<1x256xi1> to vector<8x256xi1>
    %253 = arith.select %252, %249, %250 : vector<8x256xi1>, vector<8x256xf32>
    %cst_39 = arith.constant dense<0.000000e+00> : vector<8x256xf32>
    %254 = tpu.matmul %248, %222, %cst_39 {dimension_numbers = #tpu.dot_dimension_numbers<[1], [0], [0], [1], [0, 0, 1, 1], [], []>} : vector<8x64xf32>, vector<64x256xf32>, vector<8x256xf32> -> vector<8x256xf32>
    %255 = arith.addf %253, %254 : vector<8x256xf32>
    %256 = arith.negf %255 : vector<8x256xf32>
    %257 = math.exp %256 : vector<8x256xf32>
    %cst_40 = arith.constant 1.000000e+00 : f32
    %258 = vector.broadcast %cst_40 : f32 to vector<8x256xf32>
    %259 = arith.addf %258, %257 : vector<8x256xf32>
    %260 = arith.divf %258, %259 : vector<8x256xf32>
    %261 = vector.extract_strided_slice %255 {offsets = [0, 128], sizes = [8, 64], strides = [1, 1]} : vector<8x256xf32> to vector<8x64xf32>
    %262 = math.tanh %261 : vector<8x64xf32>
    %263 = vector.extract_strided_slice %260 {offsets = [0, 64], sizes = [8, 64], strides = [1, 1]} : vector<8x256xf32> to vector<8x64xf32>
    %264 = arith.mulf %263, %245 : vector<8x64xf32>
    %265 = vector.extract_strided_slice %260 {offsets = [0, 0], sizes = [8, 64], strides = [1, 1]} : vector<8x256xf32> to vector<8x64xf32>
    %266 = arith.mulf %265, %262 : vector<8x64xf32>
    %267 = arith.addf %264, %266 : vector<8x64xf32>
    %268 = vector.extract_strided_slice %260 {offsets = [0, 192], sizes = [8, 64], strides = [1, 1]} : vector<8x256xf32> to vector<8x64xf32>
    %269 = math.tanh %267 : vector<8x64xf32>
    %270 = arith.mulf %268, %269 : vector<8x64xf32>
    %271 = vector.extract_strided_slice %227 {offsets = [16, 0], sizes = [8, 256], strides = [1, 1]} : vector<64x256xf32> to vector<8x256xf32>
    %272 = vector.extract_strided_slice %227 {offsets = [40, 0], sizes = [8, 256], strides = [1, 1]} : vector<64x256xf32> to vector<8x256xf32>
    %273 = vector.shape_cast %12 : vector<1x256xi1> to vector<1x256xi1>
    %274 = vector.broadcast %273 : vector<1x256xi1> to vector<8x256xi1>
    %275 = arith.select %274, %271, %272 : vector<8x256xi1>, vector<8x256xf32>
    %cst_41 = arith.constant dense<0.000000e+00> : vector<8x256xf32>
    %276 = tpu.matmul %270, %222, %cst_41 {dimension_numbers = #tpu.dot_dimension_numbers<[1], [0], [0], [1], [0, 0, 1, 1], [], []>} : vector<8x64xf32>, vector<64x256xf32>, vector<8x256xf32> -> vector<8x256xf32>
    %277 = arith.addf %275, %276 : vector<8x256xf32>
    %278 = arith.negf %277 : vector<8x256xf32>
    %279 = math.exp %278 : vector<8x256xf32>
    %cst_42 = arith.constant 1.000000e+00 : f32
    %280 = vector.broadcast %cst_42 : f32 to vector<8x256xf32>
    %281 = arith.addf %280, %279 : vector<8x256xf32>
    %282 = arith.divf %280, %281 : vector<8x256xf32>
    %283 = vector.extract_strided_slice %277 {offsets = [0, 128], sizes = [8, 64], strides = [1, 1]} : vector<8x256xf32> to vector<8x64xf32>
    %284 = math.tanh %283 : vector<8x64xf32>
    %285 = vector.extract_strided_slice %282 {offsets = [0, 64], sizes = [8, 64], strides = [1, 1]} : vector<8x256xf32> to vector<8x64xf32>
    %286 = arith.mulf %285, %267 : vector<8x64xf32>
    %287 = vector.extract_strided_slice %282 {offsets = [0, 0], sizes = [8, 64], strides = [1, 1]} : vector<8x256xf32> to vector<8x64xf32>
    %288 = arith.mulf %287, %284 : vector<8x64xf32>
    %289 = arith.addf %286, %288 : vector<8x64xf32>
    %290 = vector.extract_strided_slice %282 {offsets = [0, 192], sizes = [8, 64], strides = [1, 1]} : vector<8x256xf32> to vector<8x64xf32>
    %291 = math.tanh %289 : vector<8x64xf32>
    %292 = arith.mulf %290, %291 : vector<8x64xf32>
    %293 = vector.extract_strided_slice %227 {offsets = [24, 0], sizes = [8, 256], strides = [1, 1]} : vector<64x256xf32> to vector<8x256xf32>
    %294 = vector.extract_strided_slice %227 {offsets = [32, 0], sizes = [8, 256], strides = [1, 1]} : vector<64x256xf32> to vector<8x256xf32>
    %295 = vector.shape_cast %12 : vector<1x256xi1> to vector<1x256xi1>
    %296 = vector.broadcast %295 : vector<1x256xi1> to vector<8x256xi1>
    %297 = arith.select %296, %293, %294 : vector<8x256xi1>, vector<8x256xf32>
    %cst_43 = arith.constant dense<0.000000e+00> : vector<8x256xf32>
    %298 = tpu.matmul %292, %222, %cst_43 {dimension_numbers = #tpu.dot_dimension_numbers<[1], [0], [0], [1], [0, 0, 1, 1], [], []>} : vector<8x64xf32>, vector<64x256xf32>, vector<8x256xf32> -> vector<8x256xf32>
    %299 = arith.addf %297, %298 : vector<8x256xf32>
    %300 = arith.negf %299 : vector<8x256xf32>
    %301 = math.exp %300 : vector<8x256xf32>
    %cst_44 = arith.constant 1.000000e+00 : f32
    %302 = vector.broadcast %cst_44 : f32 to vector<8x256xf32>
    %303 = arith.addf %302, %301 : vector<8x256xf32>
    %304 = arith.divf %302, %303 : vector<8x256xf32>
    %305 = vector.extract_strided_slice %299 {offsets = [0, 128], sizes = [8, 64], strides = [1, 1]} : vector<8x256xf32> to vector<8x64xf32>
    %306 = math.tanh %305 : vector<8x64xf32>
    %307 = vector.extract_strided_slice %304 {offsets = [0, 64], sizes = [8, 64], strides = [1, 1]} : vector<8x256xf32> to vector<8x64xf32>
    %308 = arith.mulf %307, %289 : vector<8x64xf32>
    %309 = vector.extract_strided_slice %304 {offsets = [0, 0], sizes = [8, 64], strides = [1, 1]} : vector<8x256xf32> to vector<8x64xf32>
    %310 = arith.mulf %309, %306 : vector<8x64xf32>
    %311 = arith.addf %308, %310 : vector<8x64xf32>
    %312 = vector.extract_strided_slice %304 {offsets = [0, 192], sizes = [8, 64], strides = [1, 1]} : vector<8x256xf32> to vector<8x64xf32>
    %313 = math.tanh %311 : vector<8x64xf32>
    %314 = arith.mulf %312, %313 : vector<8x64xf32>
    %315 = vector.extract_strided_slice %227 {offsets = [32, 0], sizes = [8, 256], strides = [1, 1]} : vector<64x256xf32> to vector<8x256xf32>
    %316 = vector.extract_strided_slice %227 {offsets = [24, 0], sizes = [8, 256], strides = [1, 1]} : vector<64x256xf32> to vector<8x256xf32>
    %317 = vector.shape_cast %12 : vector<1x256xi1> to vector<1x256xi1>
    %318 = vector.broadcast %317 : vector<1x256xi1> to vector<8x256xi1>
    %319 = arith.select %318, %315, %316 : vector<8x256xi1>, vector<8x256xf32>
    %cst_45 = arith.constant dense<0.000000e+00> : vector<8x256xf32>
    %320 = tpu.matmul %314, %222, %cst_45 {dimension_numbers = #tpu.dot_dimension_numbers<[1], [0], [0], [1], [0, 0, 1, 1], [], []>} : vector<8x64xf32>, vector<64x256xf32>, vector<8x256xf32> -> vector<8x256xf32>
    %321 = arith.addf %319, %320 : vector<8x256xf32>
    %322 = arith.negf %321 : vector<8x256xf32>
    %323 = math.exp %322 : vector<8x256xf32>
    %cst_46 = arith.constant 1.000000e+00 : f32
    %324 = vector.broadcast %cst_46 : f32 to vector<8x256xf32>
    %325 = arith.addf %324, %323 : vector<8x256xf32>
    %326 = arith.divf %324, %325 : vector<8x256xf32>
    %327 = vector.extract_strided_slice %321 {offsets = [0, 128], sizes = [8, 64], strides = [1, 1]} : vector<8x256xf32> to vector<8x64xf32>
    %328 = math.tanh %327 : vector<8x64xf32>
    %329 = vector.extract_strided_slice %326 {offsets = [0, 64], sizes = [8, 64], strides = [1, 1]} : vector<8x256xf32> to vector<8x64xf32>
    %330 = arith.mulf %329, %311 : vector<8x64xf32>
    %331 = vector.extract_strided_slice %326 {offsets = [0, 0], sizes = [8, 64], strides = [1, 1]} : vector<8x256xf32> to vector<8x64xf32>
    %332 = arith.mulf %331, %328 : vector<8x64xf32>
    %333 = arith.addf %330, %332 : vector<8x64xf32>
    %334 = vector.extract_strided_slice %326 {offsets = [0, 192], sizes = [8, 64], strides = [1, 1]} : vector<8x256xf32> to vector<8x64xf32>
    %335 = math.tanh %333 : vector<8x64xf32>
    %336 = arith.mulf %334, %335 : vector<8x64xf32>
    %337 = vector.extract_strided_slice %227 {offsets = [40, 0], sizes = [8, 256], strides = [1, 1]} : vector<64x256xf32> to vector<8x256xf32>
    %338 = vector.extract_strided_slice %227 {offsets = [16, 0], sizes = [8, 256], strides = [1, 1]} : vector<64x256xf32> to vector<8x256xf32>
    %339 = vector.shape_cast %12 : vector<1x256xi1> to vector<1x256xi1>
    %340 = vector.broadcast %339 : vector<1x256xi1> to vector<8x256xi1>
    %341 = arith.select %340, %337, %338 : vector<8x256xi1>, vector<8x256xf32>
    %cst_47 = arith.constant dense<0.000000e+00> : vector<8x256xf32>
    %342 = tpu.matmul %336, %222, %cst_47 {dimension_numbers = #tpu.dot_dimension_numbers<[1], [0], [0], [1], [0, 0, 1, 1], [], []>} : vector<8x64xf32>, vector<64x256xf32>, vector<8x256xf32> -> vector<8x256xf32>
    %343 = arith.addf %341, %342 : vector<8x256xf32>
    %344 = arith.negf %343 : vector<8x256xf32>
    %345 = math.exp %344 : vector<8x256xf32>
    %cst_48 = arith.constant 1.000000e+00 : f32
    %346 = vector.broadcast %cst_48 : f32 to vector<8x256xf32>
    %347 = arith.addf %346, %345 : vector<8x256xf32>
    %348 = arith.divf %346, %347 : vector<8x256xf32>
    %349 = vector.extract_strided_slice %343 {offsets = [0, 128], sizes = [8, 64], strides = [1, 1]} : vector<8x256xf32> to vector<8x64xf32>
    %350 = math.tanh %349 : vector<8x64xf32>
    %351 = vector.extract_strided_slice %348 {offsets = [0, 64], sizes = [8, 64], strides = [1, 1]} : vector<8x256xf32> to vector<8x64xf32>
    %352 = arith.mulf %351, %333 : vector<8x64xf32>
    %353 = vector.extract_strided_slice %348 {offsets = [0, 0], sizes = [8, 64], strides = [1, 1]} : vector<8x256xf32> to vector<8x64xf32>
    %354 = arith.mulf %353, %350 : vector<8x64xf32>
    %355 = arith.addf %352, %354 : vector<8x64xf32>
    %356 = vector.extract_strided_slice %348 {offsets = [0, 192], sizes = [8, 64], strides = [1, 1]} : vector<8x256xf32> to vector<8x64xf32>
    %357 = math.tanh %355 : vector<8x64xf32>
    %358 = arith.mulf %356, %357 : vector<8x64xf32>
    %359 = vector.extract_strided_slice %227 {offsets = [48, 0], sizes = [8, 256], strides = [1, 1]} : vector<64x256xf32> to vector<8x256xf32>
    %360 = vector.extract_strided_slice %227 {offsets = [8, 0], sizes = [8, 256], strides = [1, 1]} : vector<64x256xf32> to vector<8x256xf32>
    %361 = vector.shape_cast %12 : vector<1x256xi1> to vector<1x256xi1>
    %362 = vector.broadcast %361 : vector<1x256xi1> to vector<8x256xi1>
    %363 = arith.select %362, %359, %360 : vector<8x256xi1>, vector<8x256xf32>
    %cst_49 = arith.constant dense<0.000000e+00> : vector<8x256xf32>
    %364 = tpu.matmul %358, %222, %cst_49 {dimension_numbers = #tpu.dot_dimension_numbers<[1], [0], [0], [1], [0, 0, 1, 1], [], []>} : vector<8x64xf32>, vector<64x256xf32>, vector<8x256xf32> -> vector<8x256xf32>
    %365 = arith.addf %363, %364 : vector<8x256xf32>
    %366 = arith.negf %365 : vector<8x256xf32>
    %367 = math.exp %366 : vector<8x256xf32>
    %cst_50 = arith.constant 1.000000e+00 : f32
    %368 = vector.broadcast %cst_50 : f32 to vector<8x256xf32>
    %369 = arith.addf %368, %367 : vector<8x256xf32>
    %370 = arith.divf %368, %369 : vector<8x256xf32>
    %371 = vector.extract_strided_slice %365 {offsets = [0, 128], sizes = [8, 64], strides = [1, 1]} : vector<8x256xf32> to vector<8x64xf32>
    %372 = math.tanh %371 : vector<8x64xf32>
    %373 = vector.extract_strided_slice %370 {offsets = [0, 64], sizes = [8, 64], strides = [1, 1]} : vector<8x256xf32> to vector<8x64xf32>
    %374 = arith.mulf %373, %355 : vector<8x64xf32>
    %375 = vector.extract_strided_slice %370 {offsets = [0, 0], sizes = [8, 64], strides = [1, 1]} : vector<8x256xf32> to vector<8x64xf32>
    %376 = arith.mulf %375, %372 : vector<8x64xf32>
    %377 = arith.addf %374, %376 : vector<8x64xf32>
    %378 = vector.extract_strided_slice %370 {offsets = [0, 192], sizes = [8, 64], strides = [1, 1]} : vector<8x256xf32> to vector<8x64xf32>
    %379 = math.tanh %377 : vector<8x64xf32>
    %380 = arith.mulf %378, %379 : vector<8x64xf32>
    %381 = vector.extract_strided_slice %227 {offsets = [56, 0], sizes = [8, 256], strides = [1, 1]} : vector<64x256xf32> to vector<8x256xf32>
    %382 = vector.extract_strided_slice %227 {offsets = [0, 0], sizes = [8, 256], strides = [1, 1]} : vector<64x256xf32> to vector<8x256xf32>
    %383 = vector.shape_cast %12 : vector<1x256xi1> to vector<1x256xi1>
    %384 = vector.broadcast %383 : vector<1x256xi1> to vector<8x256xi1>
    %385 = arith.select %384, %381, %382 : vector<8x256xi1>, vector<8x256xf32>
    %cst_51 = arith.constant dense<0.000000e+00> : vector<8x256xf32>
    %386 = tpu.matmul %380, %222, %cst_51 {dimension_numbers = #tpu.dot_dimension_numbers<[1], [0], [0], [1], [0, 0, 1, 1], [], []>} : vector<8x64xf32>, vector<64x256xf32>, vector<8x256xf32> -> vector<8x256xf32>
    %387 = arith.addf %385, %386 : vector<8x256xf32>
    %388 = arith.negf %387 : vector<8x256xf32>
    %389 = math.exp %388 : vector<8x256xf32>
    %cst_52 = arith.constant 1.000000e+00 : f32
    %390 = vector.broadcast %cst_52 : f32 to vector<8x256xf32>
    %391 = arith.addf %390, %389 : vector<8x256xf32>
    %392 = arith.divf %390, %391 : vector<8x256xf32>
    %393 = vector.extract_strided_slice %387 {offsets = [0, 128], sizes = [8, 64], strides = [1, 1]} : vector<8x256xf32> to vector<8x64xf32>
    %394 = math.tanh %393 : vector<8x64xf32>
    %395 = vector.extract_strided_slice %392 {offsets = [0, 64], sizes = [8, 64], strides = [1, 1]} : vector<8x256xf32> to vector<8x64xf32>
    %396 = arith.mulf %395, %377 : vector<8x64xf32>
    %397 = vector.extract_strided_slice %392 {offsets = [0, 0], sizes = [8, 64], strides = [1, 1]} : vector<8x256xf32> to vector<8x64xf32>
    %398 = arith.mulf %397, %394 : vector<8x64xf32>
    %399 = arith.addf %396, %398 : vector<8x64xf32>
    %400 = vector.extract_strided_slice %392 {offsets = [0, 192], sizes = [8, 64], strides = [1, 1]} : vector<8x256xf32> to vector<8x64xf32>
    %401 = math.tanh %399 : vector<8x64xf32>
    %402 = arith.mulf %400, %401 : vector<8x64xf32>
    %403 = vector.shape_cast %15 : vector<1x64xi1> to vector<1x64xi1>
    %404 = vector.broadcast %403 : vector<1x64xi1> to vector<8x64xi1>
    %405 = arith.select %404, %248, %402 : vector<8x64xi1>, vector<8x64xf32>
    %406 = vector.shape_cast %15 : vector<1x64xi1> to vector<1x64xi1>
    %407 = vector.broadcast %406 : vector<1x64xi1> to vector<8x64xi1>
    %408 = arith.select %407, %270, %380 : vector<8x64xi1>, vector<8x64xf32>
    %409 = vector.shape_cast %15 : vector<1x64xi1> to vector<1x64xi1>
    %410 = vector.broadcast %409 : vector<1x64xi1> to vector<8x64xi1>
    %411 = arith.select %410, %292, %358 : vector<8x64xi1>, vector<8x64xf32>
    %412 = vector.shape_cast %15 : vector<1x64xi1> to vector<1x64xi1>
    %413 = vector.broadcast %412 : vector<1x64xi1> to vector<8x64xi1>
    %414 = arith.select %413, %314, %336 : vector<8x64xi1>, vector<8x64xf32>
    %415 = vector.shape_cast %15 : vector<1x64xi1> to vector<1x64xi1>
    %416 = vector.broadcast %415 : vector<1x64xi1> to vector<8x64xi1>
    %417 = arith.select %416, %336, %314 : vector<8x64xi1>, vector<8x64xf32>
    %418 = vector.shape_cast %15 : vector<1x64xi1> to vector<1x64xi1>
    %419 = vector.broadcast %418 : vector<1x64xi1> to vector<8x64xi1>
    %420 = arith.select %419, %358, %292 : vector<8x64xi1>, vector<8x64xf32>
    %421 = vector.shape_cast %15 : vector<1x64xi1> to vector<1x64xi1>
    %422 = vector.broadcast %421 : vector<1x64xi1> to vector<8x64xi1>
    %423 = arith.select %422, %380, %270 : vector<8x64xi1>, vector<8x64xf32>
    %424 = vector.shape_cast %15 : vector<1x64xi1> to vector<1x64xi1>
    %425 = vector.broadcast %424 : vector<1x64xi1> to vector<8x64xi1>
    %426 = arith.select %425, %402, %248 : vector<8x64xi1>, vector<8x64xf32>
    %427 = tpu.concatenate %405, %408, %411, %414, %417, %420, %423, %426 in 0 : vector<8x64xf32>, vector<8x64xf32>, vector<8x64xf32>, vector<8x64xf32>, vector<8x64xf32>, vector<8x64xf32>, vector<8x64xf32>, vector<8x64xf32> -> vector<64x64xf32>
    %c0_53 = arith.constant 0 : index
    %c0_54 = arith.constant 0 : index
    %428 = vector.load %arg3[%c0_53, %c0_54] : memref<64x64xf32, #tpu.memory_space<vmem>>, vector<64x64xf32>
    %cst_55 = arith.constant dense<0.000000e+00> : vector<64x64xf32>
    %429 = tpu.matmul %428, %427, %cst_55 {dimension_numbers = #tpu.dot_dimension_numbers<[1], [0], [0], [1], [0, 0, 1, 1], [], []>} : vector<64x64xf32>, vector<64x64xf32>, vector<64x64xf32> -> vector<64x64xf32>
    %c0_56 = arith.constant 0 : index
    %c0_57 = arith.constant 0 : index
    %430 = vector.load %arg10[%c0_56, %c0_57] : memref<64x144xf32, #tpu.memory_space<vmem>>, vector<64x144xf32>
    %cst_58 = arith.constant dense<0.000000e+00> : vector<64x144xf32>
    %431 = tpu.matmul %429, %430, %cst_58 {dimension_numbers = #tpu.dot_dimension_numbers<[1], [0], [0], [1], [0, 0, 1, 1], [], []>} : vector<64x64xf32>, vector<64x144xf32>, vector<64x144xf32> -> vector<64x144xf32>
    %c0_59 = arith.constant 0 : index
    %c0_60 = arith.constant 0 : index
    %432 = vector.load %arg11[%c0_59, %c0_60] : memref<1x144xf32, #tpu.memory_space<vmem>>, vector<1x144xf32>
    %433 = vector.broadcast %432 : vector<1x144xf32> to vector<64x144xf32>
    %434 = arith.addf %431, %433 : vector<64x144xf32>
    %435 = vector.extract_strided_slice %434 {offsets = [0, 0], sizes = [64, 128], strides = [1, 1]} : vector<64x144xf32> to vector<64x128xf32>
    %cst_61 = arith.constant 0.000000e+00 : f32
    %436 = vector.broadcast %cst_61 : f32 to vector<64x128xf32>
    %437 = arith.maximumf %435, %436 : vector<64x128xf32>
    %438 = vector.extract_strided_slice %434 {offsets = [0, 128], sizes = [64, 16], strides = [1, 1]} : vector<64x144xf32> to vector<64x16xf32>
    %439 = vector.shape_cast %438 : vector<64x16xf32> to vector<8x8x16xf32>
    %c0_62 = arith.constant 0 : index
    %c0_63 = arith.constant 0 : index
    %c0_64 = arith.constant 0 : index
    %440 = vector.load %arg18[%c0_62, %c0_63, %c0_64] : memref<8x8x16xf32, #tpu.memory_space<vmem>>, vector<8x8x16xf32>
    tpu.vector_store %arg18[%c0_62, %c0_63, %c0_64], %439 {strides = array<i32>} : memref<8x8x16xf32, #tpu.memory_space<vmem>>, vector<8x8x16xf32>,
    %c0_65 = arith.constant 0 : index
    %c0_66 = arith.constant 0 : index
    %441 = vector.load %arg12[%c0_65, %c0_66] : memref<128x64xf32, #tpu.memory_space<vmem>>, vector<128x64xf32>
    %cst_67 = arith.constant dense<0.000000e+00> : vector<64x64xf32>
    %442 = tpu.matmul %437, %441, %cst_67 {dimension_numbers = #tpu.dot_dimension_numbers<[1], [0], [0], [1], [0, 0, 1, 1], [], []>} : vector<64x128xf32>, vector<128x64xf32>, vector<64x64xf32> -> vector<64x64xf32>
    %c0_68 = arith.constant 0 : index
    %c0_69 = arith.constant 0 : index
    %443 = vector.load %arg14[%c0_68, %c0_69] : memref<1x64xf32, #tpu.memory_space<vmem>>, vector<1x64xf32>
    %444 = vector.broadcast %443 : vector<1x64xf32> to vector<64x64xf32>
    %445 = arith.addf %442, %444 : vector<64x64xf32>
    %c0_70 = arith.constant 0 : index
    %c0_71 = arith.constant 0 : index
    %446 = vector.load %arg13[%c0_70, %c0_71] : memref<128x64xf32, #tpu.memory_space<vmem>>, vector<128x64xf32>
    %cst_72 = arith.constant dense<0.000000e+00> : vector<64x64xf32>
    %447 = tpu.matmul %437, %446, %cst_72 {dimension_numbers = #tpu.dot_dimension_numbers<[1], [0], [0], [1], [0, 0, 1, 1], [], []>} : vector<64x128xf32>, vector<128x64xf32>, vector<64x64xf32> -> vector<64x64xf32>
    %c0_73 = arith.constant 0 : index
    %c0_74 = arith.constant 0 : index
    %448 = vector.load %arg15[%c0_73, %c0_74] : memref<1x64xf32, #tpu.memory_space<vmem>>, vector<1x64xf32>
    %449 = vector.broadcast %448 : vector<1x64xf32> to vector<64x64xf32>
    %450 = arith.addf %447, %449 : vector<64x64xf32>
    %c0_75 = arith.constant 0 : index
    %c0_76 = arith.constant 0 : index
    %451 = vector.load %arg17[%c0_75, %c0_76] : memref<1x64xf32, #tpu.memory_space<vmem>>, vector<1x64xf32>
    %452 = vector.broadcast %451 : vector<1x64xf32> to vector<64x64xf32>
    %453 = arith.addf %445, %452 : vector<64x64xf32>
    %c0_77 = arith.constant 0 : index
    %c0_78 = arith.constant 0 : index
    %454 = vector.load %arg16[%c0_77, %c0_78] : memref<1x64xf32, #tpu.memory_space<vmem>>, vector<1x64xf32>
    %455 = vector.extract_strided_slice %453 {offsets = [0, 0], sizes = [8, 64], strides = [1, 1]} : vector<64x64xf32> to vector<8x64xf32>
    %456 = vector.extract_strided_slice %450 {offsets = [0, 0], sizes = [8, 64], strides = [1, 1]} : vector<64x64xf32> to vector<8x64xf32>
    %457 = tpu.concatenate %454, %456 in 0 : vector<1x64xf32>, vector<8x64xf32> -> vector<9x64xf32>
    %cst_79 = arith.constant dense<0.000000e+00> : vector<8x9xf32>
    %458 = tpu.matmul %455, %457, %cst_79 {dimension_numbers = #tpu.dot_dimension_numbers<[1], [1], [0], [0], [0, 0, 1, 0], [], []>} : vector<8x64xf32>, vector<9x64xf32>, vector<8x9xf32> -> vector<8x9xf32>
    %c0_80 = arith.constant 0 : index
    %c0_81 = arith.constant 0 : index
    %c0_82 = arith.constant 0 : index
    %459 = vector.load %arg19[%c0_80, %c0_81, %c0_82] : memref<8x8x9xf32, #tpu.memory_space<vmem>>, vector<1x8x9xf32>
    %460 = vector.shape_cast %459 : vector<1x8x9xf32> to vector<8x9xf32>
    %461 = vector.shape_cast %458 : vector<8x9xf32> to vector<1x8x9xf32>
    tpu.vector_store %arg19[%c0_80, %c0_81, %c0_82], %461 {strides = array<i32>} : memref<8x8x9xf32, #tpu.memory_space<vmem>>, vector<1x8x9xf32>,
    %462 = vector.extract_strided_slice %453 {offsets = [8, 0], sizes = [8, 64], strides = [1, 1]} : vector<64x64xf32> to vector<8x64xf32>
    %463 = vector.extract_strided_slice %450 {offsets = [8, 0], sizes = [8, 64], strides = [1, 1]} : vector<64x64xf32> to vector<8x64xf32>
    %464 = tpu.concatenate %454, %463 in 0 : vector<1x64xf32>, vector<8x64xf32> -> vector<9x64xf32>
    %cst_83 = arith.constant dense<0.000000e+00> : vector<8x9xf32>
    %465 = tpu.matmul %462, %464, %cst_83 {dimension_numbers = #tpu.dot_dimension_numbers<[1], [1], [0], [0], [0, 0, 1, 0], [], []>} : vector<8x64xf32>, vector<9x64xf32>, vector<8x9xf32> -> vector<8x9xf32>
    %c1 = arith.constant 1 : index
    %c0_84 = arith.constant 0 : index
    %c0_85 = arith.constant 0 : index
    %466 = vector.load %arg19[%c1, %c0_84, %c0_85] : memref<8x8x9xf32, #tpu.memory_space<vmem>>, vector<1x8x9xf32>
    %467 = vector.shape_cast %466 : vector<1x8x9xf32> to vector<8x9xf32>
    %468 = vector.shape_cast %465 : vector<8x9xf32> to vector<1x8x9xf32>
    tpu.vector_store %arg19[%c1, %c0_84, %c0_85], %468 {strides = array<i32>} : memref<8x8x9xf32, #tpu.memory_space<vmem>>, vector<1x8x9xf32>,
    %469 = vector.extract_strided_slice %453 {offsets = [16, 0], sizes = [8, 64], strides = [1, 1]} : vector<64x64xf32> to vector<8x64xf32>
    %470 = vector.extract_strided_slice %450 {offsets = [16, 0], sizes = [8, 64], strides = [1, 1]} : vector<64x64xf32> to vector<8x64xf32>
    %471 = tpu.concatenate %454, %470 in 0 : vector<1x64xf32>, vector<8x64xf32> -> vector<9x64xf32>
    %cst_86 = arith.constant dense<0.000000e+00> : vector<8x9xf32>
    %472 = tpu.matmul %469, %471, %cst_86 {dimension_numbers = #tpu.dot_dimension_numbers<[1], [1], [0], [0], [0, 0, 1, 0], [], []>} : vector<8x64xf32>, vector<9x64xf32>, vector<8x9xf32> -> vector<8x9xf32>
    %c2 = arith.constant 2 : index
    %c0_87 = arith.constant 0 : index
    %c0_88 = arith.constant 0 : index
    %473 = vector.load %arg19[%c2, %c0_87, %c0_88] : memref<8x8x9xf32, #tpu.memory_space<vmem>>, vector<1x8x9xf32>
    %474 = vector.shape_cast %473 : vector<1x8x9xf32> to vector<8x9xf32>
    %475 = vector.shape_cast %472 : vector<8x9xf32> to vector<1x8x9xf32>
    tpu.vector_store %arg19[%c2, %c0_87, %c0_88], %475 {strides = array<i32>} : memref<8x8x9xf32, #tpu.memory_space<vmem>>, vector<1x8x9xf32>,
    %476 = vector.extract_strided_slice %453 {offsets = [24, 0], sizes = [8, 64], strides = [1, 1]} : vector<64x64xf32> to vector<8x64xf32>
    %477 = vector.extract_strided_slice %450 {offsets = [24, 0], sizes = [8, 64], strides = [1, 1]} : vector<64x64xf32> to vector<8x64xf32>
    %478 = tpu.concatenate %454, %477 in 0 : vector<1x64xf32>, vector<8x64xf32> -> vector<9x64xf32>
    %cst_89 = arith.constant dense<0.000000e+00> : vector<8x9xf32>
    %479 = tpu.matmul %476, %478, %cst_89 {dimension_numbers = #tpu.dot_dimension_numbers<[1], [1], [0], [0], [0, 0, 1, 0], [], []>} : vector<8x64xf32>, vector<9x64xf32>, vector<8x9xf32> -> vector<8x9xf32>
    %c3 = arith.constant 3 : index
    %c0_90 = arith.constant 0 : index
    %c0_91 = arith.constant 0 : index
    %480 = vector.load %arg19[%c3, %c0_90, %c0_91] : memref<8x8x9xf32, #tpu.memory_space<vmem>>, vector<1x8x9xf32>
    %481 = vector.shape_cast %480 : vector<1x8x9xf32> to vector<8x9xf32>
    %482 = vector.shape_cast %479 : vector<8x9xf32> to vector<1x8x9xf32>
    tpu.vector_store %arg19[%c3, %c0_90, %c0_91], %482 {strides = array<i32>} : memref<8x8x9xf32, #tpu.memory_space<vmem>>, vector<1x8x9xf32>,
    %483 = vector.extract_strided_slice %453 {offsets = [32, 0], sizes = [8, 64], strides = [1, 1]} : vector<64x64xf32> to vector<8x64xf32>
    %484 = vector.extract_strided_slice %450 {offsets = [32, 0], sizes = [8, 64], strides = [1, 1]} : vector<64x64xf32> to vector<8x64xf32>
    %485 = tpu.concatenate %454, %484 in 0 : vector<1x64xf32>, vector<8x64xf32> -> vector<9x64xf32>
    %cst_92 = arith.constant dense<0.000000e+00> : vector<8x9xf32>
    %486 = tpu.matmul %483, %485, %cst_92 {dimension_numbers = #tpu.dot_dimension_numbers<[1], [1], [0], [0], [0, 0, 1, 0], [], []>} : vector<8x64xf32>, vector<9x64xf32>, vector<8x9xf32> -> vector<8x9xf32>
    %c4 = arith.constant 4 : index
    %c0_93 = arith.constant 0 : index
    %c0_94 = arith.constant 0 : index
    %487 = vector.load %arg19[%c4, %c0_93, %c0_94] : memref<8x8x9xf32, #tpu.memory_space<vmem>>, vector<1x8x9xf32>
    %488 = vector.shape_cast %487 : vector<1x8x9xf32> to vector<8x9xf32>
    %489 = vector.shape_cast %486 : vector<8x9xf32> to vector<1x8x9xf32>
    tpu.vector_store %arg19[%c4, %c0_93, %c0_94], %489 {strides = array<i32>} : memref<8x8x9xf32, #tpu.memory_space<vmem>>, vector<1x8x9xf32>,
    %490 = vector.extract_strided_slice %453 {offsets = [40, 0], sizes = [8, 64], strides = [1, 1]} : vector<64x64xf32> to vector<8x64xf32>
    %491 = vector.extract_strided_slice %450 {offsets = [40, 0], sizes = [8, 64], strides = [1, 1]} : vector<64x64xf32> to vector<8x64xf32>
    %492 = tpu.concatenate %454, %491 in 0 : vector<1x64xf32>, vector<8x64xf32> -> vector<9x64xf32>
    %cst_95 = arith.constant dense<0.000000e+00> : vector<8x9xf32>
    %493 = tpu.matmul %490, %492, %cst_95 {dimension_numbers = #tpu.dot_dimension_numbers<[1], [1], [0], [0], [0, 0, 1, 0], [], []>} : vector<8x64xf32>, vector<9x64xf32>, vector<8x9xf32> -> vector<8x9xf32>
    %c5 = arith.constant 5 : index
    %c0_96 = arith.constant 0 : index
    %c0_97 = arith.constant 0 : index
    %494 = vector.load %arg19[%c5, %c0_96, %c0_97] : memref<8x8x9xf32, #tpu.memory_space<vmem>>, vector<1x8x9xf32>
    %495 = vector.shape_cast %494 : vector<1x8x9xf32> to vector<8x9xf32>
    %496 = vector.shape_cast %493 : vector<8x9xf32> to vector<1x8x9xf32>
    tpu.vector_store %arg19[%c5, %c0_96, %c0_97], %496 {strides = array<i32>} : memref<8x8x9xf32, #tpu.memory_space<vmem>>, vector<1x8x9xf32>,
    %497 = vector.extract_strided_slice %453 {offsets = [48, 0], sizes = [8, 64], strides = [1, 1]} : vector<64x64xf32> to vector<8x64xf32>
    %498 = vector.extract_strided_slice %450 {offsets = [48, 0], sizes = [8, 64], strides = [1, 1]} : vector<64x64xf32> to vector<8x64xf32>
    %499 = tpu.concatenate %454, %498 in 0 : vector<1x64xf32>, vector<8x64xf32> -> vector<9x64xf32>
    %cst_98 = arith.constant dense<0.000000e+00> : vector<8x9xf32>
    %500 = tpu.matmul %497, %499, %cst_98 {dimension_numbers = #tpu.dot_dimension_numbers<[1], [1], [0], [0], [0, 0, 1, 0], [], []>} : vector<8x64xf32>, vector<9x64xf32>, vector<8x9xf32> -> vector<8x9xf32>
    %c6 = arith.constant 6 : index
    %c0_99 = arith.constant 0 : index
    %c0_100 = arith.constant 0 : index
    %501 = vector.load %arg19[%c6, %c0_99, %c0_100] : memref<8x8x9xf32, #tpu.memory_space<vmem>>, vector<1x8x9xf32>
    %502 = vector.shape_cast %501 : vector<1x8x9xf32> to vector<8x9xf32>
    %503 = vector.shape_cast %500 : vector<8x9xf32> to vector<1x8x9xf32>
    tpu.vector_store %arg19[%c6, %c0_99, %c0_100], %503 {strides = array<i32>} : memref<8x8x9xf32, #tpu.memory_space<vmem>>, vector<1x8x9xf32>,
    %504 = vector.extract_strided_slice %453 {offsets = [56, 0], sizes = [8, 64], strides = [1, 1]} : vector<64x64xf32> to vector<8x64xf32>
    %505 = vector.extract_strided_slice %450 {offsets = [56, 0], sizes = [8, 64], strides = [1, 1]} : vector<64x64xf32> to vector<8x64xf32>
    %506 = tpu.concatenate %454, %505 in 0 : vector<1x64xf32>, vector<8x64xf32> -> vector<9x64xf32>
    %cst_101 = arith.constant dense<0.000000e+00> : vector<8x9xf32>
    %507 = tpu.matmul %504, %506, %cst_101 {dimension_numbers = #tpu.dot_dimension_numbers<[1], [1], [0], [0], [0, 0, 1, 0], [], []>} : vector<8x64xf32>, vector<9x64xf32>, vector<8x9xf32> -> vector<8x9xf32>
    %c7 = arith.constant 7 : index
    %c0_102 = arith.constant 0 : index
    %c0_103 = arith.constant 0 : index
    %508 = vector.load %arg19[%c7, %c0_102, %c0_103] : memref<8x8x9xf32, #tpu.memory_space<vmem>>, vector<1x8x9xf32>
    %509 = vector.shape_cast %508 : vector<1x8x9xf32> to vector<8x9xf32>
    %510 = vector.shape_cast %507 : vector<8x9xf32> to vector<1x8x9xf32>
    tpu.vector_store %arg19[%c7, %c0_102, %c0_103], %510 {strides = array<i32>} : memref<8x8x9xf32, #tpu.memory_space<vmem>>, vector<1x8x9xf32>,
    return
  }
  func.func @transform_0(%arg0: i32) -> (i32, i32) {
    %c0_i32 = arith.constant 0 : i32
    %c0_i32_0 = arith.constant 0 : i32
    return %arg0, %c0_i32 : i32, i32
  }
  func.func @transform_1(%arg0: i32) -> (i32, i32) {
    %c0_i32 = arith.constant 0 : i32
    %c0_i32_0 = arith.constant 0 : i32
    %c0_i32_1 = arith.constant 0 : i32
    return %c0_i32, %c0_i32_0 : i32, i32
  }
  func.func @transform_2(%arg0: i32) -> (i32, i32) {
    %c0_i32 = arith.constant 0 : i32
    %c0_i32_0 = arith.constant 0 : i32
    %c0_i32_1 = arith.constant 0 : i32
    return %c0_i32, %c0_i32_0 : i32, i32
  }
  func.func @transform_3(%arg0: i32) -> (i32, i32) {
    %c0_i32 = arith.constant 0 : i32
    %c0_i32_0 = arith.constant 0 : i32
    %c0_i32_1 = arith.constant 0 : i32
    return %c0_i32, %c0_i32_0 : i32, i32
  }
  func.func @transform_4(%arg0: i32) -> (i32, i32) {
    %c0_i32 = arith.constant 0 : i32
    %c0_i32_0 = arith.constant 0 : i32
    %c0_i32_1 = arith.constant 0 : i32
    return %c0_i32, %c0_i32_0 : i32, i32
  }
  func.func @transform_5(%arg0: i32) -> (i32, i32) {
    %c0_i32 = arith.constant 0 : i32
    %c0_i32_0 = arith.constant 0 : i32
    %c0_i32_1 = arith.constant 0 : i32
    return %c0_i32, %c0_i32_0 : i32, i32
  }
  func.func @transform_6(%arg0: i32) -> (i32, i32) {
    %c0_i32 = arith.constant 0 : i32
    %c0_i32_0 = arith.constant 0 : i32
    %c0_i32_1 = arith.constant 0 : i32
    return %c0_i32, %c0_i32_0 : i32, i32
  }
  func.func @transform_7(%arg0: i32) -> (i32, i32) {
    %c0_i32 = arith.constant 0 : i32
    %c0_i32_0 = arith.constant 0 : i32
    %c0_i32_1 = arith.constant 0 : i32
    return %c0_i32, %c0_i32_0 : i32, i32
  }
  func.func @transform_8(%arg0: i32) -> (i32, i32) {
    %c0_i32 = arith.constant 0 : i32
    %c0_i32_0 = arith.constant 0 : i32
    %c0_i32_1 = arith.constant 0 : i32
    return %c0_i32, %c0_i32_0 : i32, i32
  }
  func.func @transform_9(%arg0: i32) -> (i32, i32) {
    %c0_i32 = arith.constant 0 : i32
    %c0_i32_0 = arith.constant 0 : i32
    %c0_i32_1 = arith.constant 0 : i32
    return %c0_i32, %c0_i32_0 : i32, i32
  }
  func.func @transform_10(%arg0: i32) -> (i32, i32) {
    %c0_i32 = arith.constant 0 : i32
    %c0_i32_0 = arith.constant 0 : i32
    %c0_i32_1 = arith.constant 0 : i32
    return %c0_i32, %c0_i32_0 : i32, i32
  }
  func.func @transform_11(%arg0: i32) -> (i32, i32) {
    %c0_i32 = arith.constant 0 : i32
    %c0_i32_0 = arith.constant 0 : i32
    %c0_i32_1 = arith.constant 0 : i32
    return %c0_i32, %c0_i32_0 : i32, i32
  }
  func.func @transform_12(%arg0: i32) -> (i32, i32) {
    %c0_i32 = arith.constant 0 : i32
    %c0_i32_0 = arith.constant 0 : i32
    %c0_i32_1 = arith.constant 0 : i32
    return %c0_i32, %c0_i32_0 : i32, i32
  }
  func.func @transform_13(%arg0: i32) -> (i32, i32) {
    %c0_i32 = arith.constant 0 : i32
    %c0_i32_0 = arith.constant 0 : i32
    %c0_i32_1 = arith.constant 0 : i32
    return %c0_i32, %c0_i32_0 : i32, i32
  }
  func.func @transform_14(%arg0: i32) -> (i32, i32) {
    %c0_i32 = arith.constant 0 : i32
    %c0_i32_0 = arith.constant 0 : i32
    %c0_i32_1 = arith.constant 0 : i32
    return %c0_i32, %c0_i32_0 : i32, i32
  }
  func.func @transform_15(%arg0: i32) -> (i32, i32) {
    %c0_i32 = arith.constant 0 : i32
    %c0_i32_0 = arith.constant 0 : i32
    %c0_i32_1 = arith.constant 0 : i32
    return %c0_i32, %c0_i32_0 : i32, i32
  }
  func.func @transform_16(%arg0: i32) -> (i32, i32) {
    %c0_i32 = arith.constant 0 : i32
    %c0_i32_0 = arith.constant 0 : i32
    %c0_i32_1 = arith.constant 0 : i32
    return %c0_i32, %c0_i32_0 : i32, i32
  }
  func.func @transform_17(%arg0: i32) -> (i32, i32, i32) {
    %c0_i32 = arith.constant 0 : i32
    %c0_i32_0 = arith.constant 0 : i32
    %c0_i32_1 = arith.constant 0 : i32
    return %arg0, %c0_i32, %c0_i32_0 : i32, i32, i32
  }
  func.func @transform_18(%arg0: i32) -> (i32, i32, i32) {
    %c0_i32 = arith.constant 0 : i32
    %c0_i32_0 = arith.constant 0 : i32
    %c0_i32_1 = arith.constant 0 : i32
    return %arg0, %c0_i32, %c0_i32_0 : i32, i32, i32
  }
}

</mosaic_0001>

<bundles_post_ra>
// kernel: tagger_forward.1
= control target key start
LH: loop header
LB: loop body
LE: loop exit
PB: predicated region body
PF: predicated region fallthrough
CT: control target
= control target key end

     0   :  { %s7207_s0 = inlined_call_operand.vmem [shape: s32[128,1], index: 0, kind: input, shape index: {}]   ;;  %s7208_s1 = inlined_call_operand.vmem [shape: f32[64,32], index: 1, kind: input, shape index: {}]   ;;  %s7209_s2 = inlined_call_operand.vmem [shape: f32[64,64], index: 2, kind: input, shape index: {}]   ;;  %s7210_s3 = inlined_call_operand.hbm [shape: f32[32,256], index: 3, kind: input, shape index: {}]   ;;  %s7211_s4 = inlined_call_operand.vmem [shape: f32[64,256], index: 4, kind: input, shape index: {}]   ;;  %s7212_s5 = inlined_call_operand.vmem [shape: f32[1,256], index: 5, kind: input, shape index: {}]   ;;  %s7213_s6 = inlined_call_operand.vmem [shape: f32[64,256], index: 6, kind: input, shape index: {}]   ;;  %s7214_s7 = inlined_call_operand.vmem [shape: f32[64,256], index: 7, kind: input, shape index: {}]   ;;  %s7215_s8 = inlined_call_operand.hbm [shape: f32[1,256], index: 8, kind: input, shape index: {}]   ;;  %s7216_s9 = inlined_call_operand.vmem [shape: f32[64,144], index: 9, kind: input, shape index: {}]   ;;  %s7217_s10 = inlined_call_operand.hbm [shape: f32[1,144], index: 10, kind: input, shape index: {}]   ;;  %s7218_s11 = inlined_call_operand.vmem [shape: f32[128,64], index: 11, kind: input, shape index: {}]   ;;  %s7219_s12 = inlined_call_operand.vmem [shape: f32[128,64], index: 12, kind: input, shape index: {}]   ;;  %s7220_s13 = inlined_call_operand.hbm [shape: f32[1,64], index: 13, kind: input, shape index: {}]   ;;  %s7221_s14 = inlined_call_operand.hbm [shape: f32[1,64], index: 14, kind: input, shape index: {}]   ;;  %s7222_s15 = inlined_call_operand.vmem [shape: f32[1,64], index: 15, kind: input, shape index: {}]   ;;  %s7223_s16 = inlined_call_operand.hbm [shape: f32[1,64], index: 16, kind: input, shape index: {}]   ;;  %s7224_s17 = inlined_call_operand.hbm [shape: f32[16,8,16], index: 17, kind: output, shape index: {0}]   ;;  %s7225_s18 = inlined_call_operand.vmem [shape: f32[16,8,9], index: 18, kind: output, shape index: {1}]  }
   0x1   :  { %7242 = sst [smem:[#allocation27_spill]] %s7207_s0 }
   0x2   :  { %7243 = sst [smem:[#allocation28_spill]] %s7208_s1 }
   0x3   :  { %7244 = sst [smem:[#allocation29_spill]] %s7209_s2 }
   0x4   :  { %7245 = sst [smem:[#allocation30_spill]] %s7215_s8 }
   0x5   :  { %7246 = sst [smem:[#allocation31_spill]] %s7220_s13 }
   0x6   :  { %7247 = sst [smem:[#allocation32_spill]] %s7222_s15 }
   0x7   :  { %7248 = sst [smem:[#allocation33_spill]] %s7224_s17 }
   0x8   :  { %7249 = sst [smem:[#allocation34_spill]] %s7225_s18 }
   0x9   :  { %24 = vsyncpa [#allocation3], 0 }
   0xa   :  { %25 = vsyncpa [#allocation6], 0 }
   0xb   :  { %26 = vsyncpa [#allocation9], 0 }
   0xc   :  { %27 = vsyncpa [#allocation12], 0 }
   0xd   :  { %28 = vsyncpa [#allocation4], 0 }
   0xe   :  { %30 = vsyncpa [#allocation4 + $0x1], 0  ;;  %s5699_s27 = smov 0   ;;  %s5701_s28 = smov 0  }
   0xf   :  { %s5703_s29 = smov 0   ;;  %s5705_s30 = smov 0  }
  0x10 LB: > { %7250 = sst [smem:[#allocation19_spill]] %s5574_s27  ;;  %s5720_s0 = sadd.s32 4294967295, %s5586_s30   ;;  %s5586_s30 = sphi %s5705_s30, %s7293_s30   ;;  %s5582_s29 = sphi %s5703_s29, %s7296_s29   ;;  %s5578_s28 = sphi %s5701_s28, %s7295_s28   ;;  %s5574_s27 = sphi %s5699_s27, %s7294_s27  }
  0x11   : > { %7251 = sst [smem:[#allocation20_spill]] %s5578_s28  ;;  %s4186_s19 = sadd.s32 4294967294, %s5586_s30  }
  0x12   : > { %7252 = sst [smem:[#allocation21_spill]] %s5582_s29  ;;  %s5724_s1 = sadd.s32 1, %s5586_s30  }
  0x13   : > { %7253 = sst [smem:[#allocation22_spill]] %s5586_s30  ;;  %s405_s20 = sadd.s32 1, %s5582_s29 }
  0x14   : > { %7254 = sst [smem:[#allocation23_spill]] %s5724_s1  ;;  %s402_s21 = ssub.s32 %s5586_s30, %s5724_s1 }
  0x15   : > { %p415_p0 = scmp.ne.s32.totalorder %s5582_s29, %s5578_s28  ;;  %p403_p1 = scmp.eq.s32.totalorder %s402_s21, 0 }
  0x16   : > { %p416_p2 = scmp.eq.s32.totalorder %s5720_s0, 1  ;;  %p421_p3 = scmp.ne.s32.totalorder %s5578_s28, %s5574_s27 }
  0x17   : > { %p422_p4 = scmp.eq.s32.totalorder %s4186_s19, 1  ;;  %p4187_p7 = scmp.ge.s32.totalorder %s5586_s30, 1 }
  0x18   : > { %s5735_s22 = scalar_select %p403_p1, %s5582_s29, %s405_s20  }
  0x19   : > { %p5737_p5 = por %p416_p2, %p415_p0  ;;  %p5741_p6 = por %p422_p4, %p421_p3 }
  0x1a   : > { %7255 = sst [smem:[#allocation24_spill]] %s5735_s22  ;;  %p455_p8 = scmp.lt.s32.totalorder %s5586_s30, 3 }
  0x1b   : > { %s7256_s2 = scalar_select %p5737_p5, 1, 0 }
  0x1c   : > { %s7258_s23 = scalar_select %p5741_p6, 1, 0 }
  0x1d   : > { %7257 = sst [smem:[#allocation25_spill]] %s7256_s2  ;;  %p7234_p9 = scmp.eq.s32.totalorder %s5720_s0, 0 }
  0x1e   : > { %7259 = sst [smem:[#allocation26_spill]] %s7258_s23  ;;  %p5748_p10 = pnand %p4187_p7, %p455_p8 }
  0x1f   : > { %s5588_s25 = smov [#allocation5]   ;;  %s5589_s19 = smov [#allocation8]  }
  0x20   : > { %s7260_s24 = scalar_select %p5748_p10, 1, 0 }
  0x21   : > { %s499_s26 = sshll.u32 %s5588_s25, 4  ;;  %p5063_p11 = pneg %p5748_p10  ;;  %s500_s26 = int_to_ptr.vmem [resolvable:$true] %s499_s26 }
  0x22   : > { %s530_s20 = sshll.u32 %s5589_s19, 4  ;;  %s5590_s22 = smov [#allocation2]   ;;  %s5760_s20 = int_to_ptr.vmem [resolvable:$true] %s530_s20 }
  0x23   : > { %p5756_p12 = pnand %p7234_p9, %p5063_p11  ;;  %s473_s29 = sshll.u32 %s5590_s22, 4  ;;  %s5762_s29 = int_to_ptr.vmem [resolvable:$true] %s473_s29 }
  0x24   : > { %s7262_s8 = sld [smem:[#allocation30_spill]] }
  0x25   : > { %p5772_p0 = pneg %p5756_p12 }
  0x2a   : > { %s5340_s25 = scalar_lea.hbm %s7262_s8, 32 }
  0x2b   : > { %p5341_p13 = scmp.ne.s32.totalorder %s7262_s8, %s5340_s25  ;;  %p5347_p3 = scmp.lt.u32.totalorder %s5340_s25, %s7262_s8 }
  0x2d   : > { %p5343_p1 = pnand %p5772_p0, %p5341_p13 }
  0x2f   : > { %p5344_p2 = pneg %p5343_p1 }
  0x31   : > { %p5349_p4 = pnand %p5347_p3, %p5344_p2 }
  0x33   : > { %5352 = shalt.err (!%p5349_p4)
}
  0x34   : > { %s5353_s1 = scalar_lea.vmem %s500_s26, 32  ;;  %p5361_p9 = scmp.lt.s32.totalorder %s500_s26, %s500_s26 }
  0x35   : > { %p5354_p7 = scmp.ne.s32.totalorder %s500_s26, %s5353_s1  ;;  %p5362_p6 = scmp.lt.s32.totalorder %s5353_s1, %s5353_s1 }
  0x37   : > { %p5356_p8 = pnand %p5354_p7, %p5772_p0  ;;  %p5363_p5 = por %p5362_p6, %p5361_p9 }
  0x39   : > { %p5357_p11 = pneg %p5356_p8 }
  0x3b   : > { %p5364_p10 = pnand %p5363_p5, %p5357_p11 }
  0x3d   : > { %5367 = shalt.err (!%p5364_p10)
}
  0x3e   : > { %5069 = dma.hbm_to_vmem [thread:$0]  (!%p5756_p12), %s7262_s8, 32, %s500_s26, [#allocation6]  }
  0x3f   : > { %s7264_s13 = sld [smem:[#allocation31_spill]] }
  0x45   : > { %s5368_s25 = scalar_lea.hbm %s7264_s13, 16 }
  0x46   : > { %p5369_p13 = scmp.ne.s32.totalorder %s7264_s13, %s5368_s25  ;;  %p5375_p5 = scmp.lt.u32.totalorder %s5368_s25, %s7264_s13 }
  0x48   : > { %p5371_p1 = pnand %p5369_p13, %p5772_p0 }
  0x4a   : > { %p5372_p6 = pneg %p5371_p1 }
  0x4c   : > { %p5377_p9 = pnand %p5375_p5, %p5372_p6 }
  0x4e   : > { %5380 = shalt.err (!%p5377_p9)
}
  0x4f   : > { %s5381_s26 = scalar_lea.vmem %s5760_s20, 16  ;;  %s5388_s17 = scalar_lea.vmem %s5760_s20, 32 }
  0x50   : > { %p5382_p10 = scmp.ne.s32.totalorder %s5760_s20, %s5381_s26  ;;  %p5389_p4 = scmp.lt.s32.totalorder %s5760_s20, %s5760_s20 }
  0x51   : > { %p5390_p7 = scmp.lt.s32.totalorder %s5388_s17, %s5381_s26 }
  0x52   : > { %p5384_p2 = pnand %p5382_p10, %p5772_p0 }
  0x53   : > { %p5391_p8 = por %p5390_p7, %p5389_p4 }
  0x54   : > { %p5385_p3 = pneg %p5384_p2 }
  0x56   : > { %p5392_p11 = pnand %p5391_p8, %p5385_p3 }
  0x58   : > { %5395 = shalt.err (!%p5392_p11)
}
  0x59   : > { %5075 = dma.hbm_to_vmem [thread:$0]  (!%p5756_p12), %s7264_s13, 16, %s5760_s20, [#allocation9]  }
  0x5a   : > { %s5396_s23 = scalar_lea.hbm %s7210_s3, 1024 }
  0x5b   : > { %p5397_p13 = scmp.ne.s32.totalorder %s7210_s3, %s5396_s23  ;;  %p5403_p5 = scmp.lt.u32.totalorder %s5396_s23, %s7210_s3 }
  0x5d   : > { %p5399_p1 = pnand %p5397_p13, %p5772_p0 }
  0x5f   : > { %p5400_p6 = pneg %p5399_p1 }
  0x61   : > { %p5405_p9 = pnand %p5403_p5, %p5400_p6 }
  0x63   : > { %5408 = shalt.err (!%p5405_p9)
}
  0x64   : > { %s5409_s20 = scalar_lea.vmem %s5762_s29, 1024  ;;  %p5417_p4 = scmp.lt.s32.totalorder %s5762_s29, %s5762_s29 }
  0x65   : > { %p5410_p10 = scmp.ne.s32.totalorder %s5762_s29, %s5409_s20  ;;  %p5418_p7 = scmp.lt.s32.totalorder %s5409_s20, %s5409_s20 }
  0x67   : > { %p5412_p2 = pnand %p5410_p10, %p5772_p0  ;;  %p5419_p8 = por %p5418_p7, %p5417_p4 }
  0x69   : > { %p5413_p3 = pneg %p5412_p2 }
  0x6b   : > { %p5420_p11 = pnand %p5419_p8, %p5413_p3 }
  0x6d   : > { %5423 = shalt.err (!%p5420_p11)
}
  0x6e   : > { %s5591_s17 = smov 256   ;;  %s5592_s2 = smov 16  }
  0x6f   : > { %5066 = dma.hbm_to_vmem [thread:$0]  (!%p5756_p12), %s7210_s3, 1024, %s5762_s29, [#allocation3], %s5591_s17, %s5591_s17, %s5592_s2  }
  0x70   : > { %s5593_s18 = smov [#allocation7]   ;;  %s5594_s25 = smov [#allocation10]  }
  0x71   : > { %s513_s23 = sshll.u32 %s5593_s18, 4  ;;  %s541_s22 = sshll.u32 %s5594_s25, 4  ;;  %s514_s23 = int_to_ptr.vmem [resolvable:$true] %s513_s23  ;;  %s542_s22 = int_to_ptr.vmem [resolvable:$true] %s541_s22 }
  0x72   : > { %s5424_s20 = scalar_lea.hbm %s7217_s10, 32 }
  0x73   : > { %p5425_p13 = scmp.ne.s32.totalorder %s7217_s10, %s5424_s20  ;;  %p5431_p5 = scmp.lt.u32.totalorder %s5424_s20, %s7217_s10 }
  0x75   : > { %p5427_p1 = pnand %p5425_p13, %p5772_p0 }
  0x77   : > { %p5428_p6 = pneg %p5427_p1 }
  0x79   : > { %p5433_p9 = pnand %p5431_p5, %p5428_p6 }
  0x7b   : > { %5436 = shalt.err (!%p5433_p9)
}
  0x7c   : > { %s5437_s29 = scalar_lea.vmem %s514_s23, 32  ;;  %p5445_p4 = scmp.lt.s32.totalorder %s514_s23, %s514_s23 }
  0x7d   : > { %p5438_p10 = scmp.ne.s32.totalorder %s514_s23, %s5437_s29  ;;  %p5446_p7 = scmp.lt.s32.totalorder %s5437_s29, %s5437_s29 }
  0x7f   : > { %p5440_p2 = pnand %p5438_p10, %p5772_p0  ;;  %p5447_p8 = por %p5446_p7, %p5445_p4 }
  0x81   : > { %p5441_p3 = pneg %p5440_p2 }
  0x83   : > { %p5448_p11 = pnand %p5447_p8, %p5441_p3 }
  0x85   : > { %5451 = shalt.err (!%p5448_p11)
}
  0x86   : > { %5072 = dma.hbm_to_vmem [thread:$0]  (!%p5756_p12), %s7217_s10, 32, %s514_s23, [#allocation6]  }
  0x87   : > { %s5452_s17 = scalar_lea.hbm %s7221_s14, 16 }
  0x88   : > { %p5453_p13 = scmp.ne.s32.totalorder %s7221_s14, %s5452_s17  ;;  %p5459_p5 = scmp.lt.u32.totalorder %s5452_s17, %s7221_s14 }
  0x8a   : > { %p5455_p1 = pnand %p5453_p13, %p5772_p0 }
  0x8c   : > { %p5456_p6 = pneg %p5455_p1 }
  0x8e   : > { %p5461_p9 = pnand %p5459_p5, %p5456_p6 }
  0x90   : > { %5464 = shalt.err (!%p5461_p9)
}
  0x91   : > { %s5465_s25 = scalar_lea.vmem %s542_s22, 16  ;;  %s5472_s23 = scalar_lea.vmem %s542_s22, 32 }
  0x92   : > { %p5466_p10 = scmp.ne.s32.totalorder %s542_s22, %s5465_s25  ;;  %p5473_p4 = scmp.lt.s32.totalorder %s542_s22, %s542_s22 }
  0x93   : > { %p5474_p7 = scmp.lt.s32.totalorder %s5472_s23, %s5465_s25 }
  0x94   : > { %p5468_p2 = pnand %p5466_p10, %p5772_p0 }
  0x95   : > { %p5475_p8 = por %p5474_p7, %p5473_p4 }
  0x96   : > { %p5469_p3 = pneg %p5468_p2 }
  0x98   : > { %p5476_p11 = pnand %p5475_p8, %p5469_p3 }
  0x9a   : > { %5479 = shalt.err (!%p5476_p11)
}
  0x9b   : > { %5078 = dma.hbm_to_vmem [thread:$0]  (!%p5756_p12), %s7221_s14, 16, %s542_s22, [#allocation9]  }
  0x9c   : > { %s5595_s20 = smov [#allocation11]   ;;  %s5480_s15 = scalar_lea.hbm %s7223_s16, 16 }
  0x9d   : > { %s555_s29 = sshll.u32 %s5595_s20, 4  ;;  %p5481_p13 = scmp.ne.s32.totalorder %s7223_s16, %s5480_s15  ;;  %s556_s29 = int_to_ptr.vmem [resolvable:$true] %s555_s29 }
  0x9e   : > { %p5487_p5 = scmp.lt.u32.totalorder %s5480_s15, %s7223_s16 }
  0x9f   : > { %p5483_p1 = pnand %p5481_p13, %p5772_p0 }
  0xa1   : > { %p5484_p6 = pneg %p5483_p1 }
  0xa3   : > { %p5489_p9 = pnand %p5487_p5, %p5484_p6 }
  0xa5   : > { %5492 = shalt.err (!%p5489_p9)
}
  0xa6   : > { %s5493_s22 = scalar_lea.vmem %s556_s29, 16  ;;  %s5500_s30 = scalar_lea.vmem %s556_s29, 32 }
  0xa7   : > { %p5494_p10 = scmp.ne.s32.totalorder %s556_s29, %s5493_s22  ;;  %p5501_p4 = scmp.lt.s32.totalorder %s556_s29, %s556_s29 }
  0xa8   : > { %p5502_p7 = scmp.lt.s32.totalorder %s5500_s30, %s5493_s22 }
  0xa9   : > { %p5496_p2 = pnand %p5494_p10, %p5772_p0 }
  0xaa   : > { %p5503_p8 = por %p5502_p7, %p5501_p4 }
  0xab   : > { %p5497_p3 = pneg %p5496_p2 }
  0xad   : > { %p5504_p11 = pnand %p5503_p8, %p5497_p3 }
  0xaf   : > { %5507 = shalt.err (!%p5504_p11)
}
  0xb0   : > { %5081 = dma.hbm_to_vmem [thread:$0]  (!%p5756_p12), %s7223_s16, 16, %s556_s29, [#allocation12]  }
  0xb1   : > { %p7265_p13 = scmp.ne.s32.totalorder %s7260_s24, 0 }
  0xb2   : > { %p7266_p1 = scmp.eq.s32.totalorder (!%p7265_p13), %s5720_s0, 0 }
  0xb3   : > { %577 = sbr.rel (%p7265_p13) target bundleno = 9328 (0x2470), region = 88 }
  0xba   : > { %5553 = dma.done.wait (%p7266_p1), [#allocation3], 1024   ;;  %p7267_p0 = pmov %p7266_p1 }
  0xbc   : > { %5555 = vsyncadd (%p7267_p0), [#allocation3], 4294966272  ;;  %p7268_p6 = pmov %p7267_p0 }
  0xbd   : > { %p7269_p5 = pmov %p7267_p0 }
  0xbe   : > { %5557 = dma.done.wait (%p7268_p6), [#allocation6], 64  }
  0xbf   : > { %5559 = vsyncadd (%p7269_p5), [#allocation6], 4294967232  ;;  %p7270_p9 = pmov %p7267_p0 }
  0xc0   : > { %p7271_p12 = pmov %p7267_p0 }
  0xc1   : > { %5561 = dma.done.wait (%p7270_p9), [#allocation9], 32  }
  0xc2   : > { %5563 = vsyncadd (%p7271_p12), [#allocation9], 4294967264  ;;  %p7272_p10 = pmov %p7267_p0 }
  0xc3   : > { %p7273_p2 = pmov %p7267_p0 }
  0xc4   : > { %5565 = dma.done.wait (%p7272_p10), [#allocation12], 16  }
  0xc5   : > { %5567 = vsyncadd (%p7273_p2), [#allocation12], 4294967280  ;;  %vm865_vm0 = vcmask 261120   ;;  %vm735_vm1 = vcmask 523264   ;;  %v5596_v0 = vmov 0.0   ;;  %vm868_vm2 = vcmask 785408  }
  0xc6   : > { %v866_v1 = vsel %vm865_vm0, 1.0, %v5596_v0  ;;  %v5597_v2 = vmov 0   ;;  %v677_v3 = vlaneseq  ;;  %s4203_s24 = sshll.u32 %s5720_s0, 3  ;;  %996 = vmatprep.mubr.f32.mxu1 %v5596_v0  ;;  %s7274_s1 = sld [smem:[#allocation27_spill]]  ;;  %v889_v32 = vld [vmem:[#allocation2 + $0x8] sm:$0xff]  ;;  %v891_v33 = vld [vmem:[#allocation2 + $0x18] sm:$0xff] }
  0xc7   : > { %5147 = vset.pattern.permute.xlu1 %v5597_v2  ;;  %5146 = vset.pattern.permute.xlu0 %v5597_v2  ;;  %v867_v4 = vsel %vm735_vm1, %v866_v1, 1.0  ;;  %vm871_vm3 = vcmp.gt.f32.partialorder %v866_v1, 0.5  ;;  %p657_p3 = scmp.lt.s32.totalorder %s4203_s24, 15  ;;  %s7275_s8 = sld [smem:[#allocation28_spill]]  ;;  %v888_v34 = vld [vmem:[#allocation2] sm:$0xff]  ;;  %v4661_v35 = vpack.c.bf16 %v891_v33, %v889_v32  ;;  %v890_v36 = vld [vmem:[#allocation2 + $0x10] sm:$0xff] }
  0xc8   : > { %v869_v5 = vsel %vm868_vm2, %v867_v4, 0.0  ;;  %v5913_v6 = vshrl.u32 %v677_v3, 7  ;;  %v5915_v7 = vsel %vm871_vm3, 1, %v5597_v2  ;;  %v893_v37 = vld [vmem:[#allocation2 + $0x28] sm:$0xff]  ;;  %v895_v38 = vld [vmem:[#allocation2 + $0x38] sm:$0xff]  ;;  %v4663_v39 = vpack.c.bf16 %v890_v36, %v888_v34  ;;  %v892_v41 = vld [vmem:[#allocation2 + $0x20] sm:$0xff] }
  0xc9   : > { %vm870_vm4 = vcmp.gt.f32.partialorder %v869_v5, 0.5  ;;  %s7298_s24 = smov (!%p657_p3, %s4203_s24), 15  ;;  %v4665_v40 = vpack.c.bf16 %v895_v38, %v893_v37  ;;  %v894_v42 = vld [vmem:[#allocation2 + $0x30] sm:$0xff]  ;;  %4662 = vmatprep.subr.bf16.mxu1 %v4661_v35  ;;  %v678_v44 = vand.u32 127, %v677_v3  ;;  %s5598_s13 = smov 64   ;;  %vm3062_vm15 = vcmask 130048   ;;  %vm7056_vm3 = vmpackc.low %vm735_vm1, %vm735_vm1 }
  0xca   : > { %v5920_v8 = vsub.s32 0, %v5913_v6  ;;  %v5922_v9 = vsel %vm870_vm4, 1, %v5597_v2  ;;  %s4204_s21 = sshll.u32 %s7298_s24, 3  ;;  %4664 = vmatpush1.bf16.msra.mxu1 %v4663_v39  ;;  %v4667_v43 = vpack.c.bf16 %v894_v42, %v892_v41  ;;  %s7280_s25 = sld [smem:[#allocation29_spill]]  ;;  %vm3346_vm2 = vcmask 1040384  }
  0xcb   : > { %4666 = vmatprep.subr.bf16.mxu1 %v4665_v40  ;;  %s7281_s22 = sld [smem:[#allocation20_spill]]  ;;  %s7282_s27 = sld [smem:[#allocation32_spill]] }
  0xcc   : > { %v1049_v10 = vrot.slane %v5922_v9, %v5920_v8  ;;  %v1793_v11 = vrot.slane %v5915_v7, %v5920_v8  ;;  %s660_s26 = scalar_lea.vmem %s7274_s1, %s4204_s21  ;;  %s7285_s30 = sld [smem:[#allocation25_spill]] }
  0xcd   : > { %v671_v12 = vld [vmem:[%s660_s26 + $0x10] sm:$0xff]  ;;  %v669_v13 = vld [vmem:[%s660_s26] sm:$0xff]  ;;  %v672_v14 = vld [vmem:[%s660_s26 + $0x18] sm:$0xff]  ;;  %s4340_s18 = sshll.u32 %s5720_s0, 10  ;;  %s7286_s20 = sld [smem:[#allocation33_spill]] }
  0xce   : > { %686 = vperm.xlu1 %5147, %v671_v12   ;;  %680 = vperm.xlu0 %5146, %v669_v13   ;;  %v670_v15 = vld [vmem:[%s660_s26 + $0x8] sm:$0xff]  ;;  %v727_v16 = vld [vmem:[%s7275_s8] sm:$0xff]  ;;  %v729_v18 = vld [vmem:[%s7275_s8 + $0x10] sm:$0xff]  ;;  %v5996_v13 = vsub.s32 1, %v5913_v6  ;;  %vm6019_vm13 = vcmp.eq.s32.totalorder %v1049_v10, 1  ;;  %vm6395_vm14 = vcmp.eq.s32.totalorder %v1793_v11, 1 }
  0xcf   : > { %v728_v17 = vld [vmem:[%s7275_s8 + $0x8] sm:$0xff]  ;;  %v730_v19 = vld [vmem:[%s7275_s8 + $0x18] sm:$0xff]  ;;  %v731_v22 = vld [vmem:[%s7275_s8 + $0x20] sm:$0xff]  ;;  %4668 = vmatpush1.bf16.msra.mxu1 %v4667_v43  ;;  %s5601_s0 = smov [#allocation13]  }
  0xd0   : > { %v4645_v20 = vpack.c.bf16 %v728_v17, %v727_v16  ;;  %v4649_v21 = vpack.c.bf16 %v730_v19, %v729_v18  ;;  %v732_v23 = vld [vmem:[%s7275_s8 + $0x28] sm:$0xff]  ;;  %v673_v25 = vld [vmem:[%s660_s26 + $0x20] sm:$0xff]  ;;  %v733_v27 = vld [vmem:[%s7275_s8 + $0x30] sm:$0xff] }
  0xd1   : > { %v674_v24 = vld [vmem:[%s660_s26 + $0x28] sm:$0xff]  ;;  %v4653_v26 = vpack.c.bf16 %v732_v23, %v731_v22  ;;  %v734_v28 = vld [vmem:[%s7275_s8 + $0x38] sm:$0xff]  ;;  %v675_v30 = vld [vmem:[%s660_s26 + $0x30] sm:$0xff] }
  0xd2   : > { %689 = vperm.xlu1 %5147, %v672_v14   ;;  %683 = vperm.xlu0 %5146, %v670_v15   ;;  %v676_v29 = vld [vmem:[%s660_s26 + $0x38] sm:$0xff]  ;;  %v4657_v31 = vpack.c.bf16 %v734_v28, %v733_v27  ;;  %v896_v12 = vld [vmem:[%s7212_s5] sm:$0x3]  ;;  %p7287_p7 = scmp.ne.s32.totalorder %s7285_s30, 0 }
  0xd3   : > { %4646 = vmatprep.subr.bf16.mxu0 %v4645_v20  ;;  %v901_v14 = vrot.slane %v896_v12, %v5920_v8  ;;  %v905_v15 = vrot.slane %v896_v12, %v5996_v13  ;;  %v875_v12 = vld [vmem:[%s7211_s4 + $0x18] sm:$0xff]  ;;  %s7147_s26 = scalar_lea.hbm %s7286_s20, %s4340_s18 }
  0xd4   : > { %4648 = vmatpush3.bf16.msra.mxu0 %v4645_v20 }
  0xd5   : > { %4650 = vmatprep.subr.bf16.mxu0 %v4649_v21 }
  0xd6   : > { %695 = vperm.xlu1 %5147, %v674_v24   ;;  %692 = vperm.xlu0 %5146, %v673_v25  }
  0xd8   : > { %4652 = vmatpush3.bf16.msra.mxu0 %v4649_v21 }
  0xd9   : > { %4654 = vmatprep.subr.bf16.mxu0 %v4653_v26 }
  0xda   : > { %701 = vperm.xlu1 %5147, %v676_v29   ;;  %698 = vperm.xlu0 %5146, %v675_v30  }
  0xdc   : > { %4656 = vmatpush3.bf16.msra.mxu0 %v4653_v26 }
  0xdd   : > { %4658 = vmatprep.subr.bf16.mxu0 %v4657_v31 }
  0xe0   : > { %4660 = vmatpush3.bf16.msra.mxu0 %v4657_v31 }
 0x14d   : > { %v687_v45 = vpop.permute.xlu1 %686  ;;  %v681_v46 = vpop.permute.xlu0 %680 }
 0x14e   : > { %vm703_vm5 = vcmp.eq.s32.totalorder %v678_v44, %v681_v46  ;;  %vm705_vm6 = vcmp.eq.s32.totalorder %v678_v44, %v687_v45 }
 0x14f   : > { %v4207_v47 = vsel %vm703_vm5, 1.0, %v5596_v0  ;;  %v4209_v50 = vsel %vm705_vm6, 1.0, %v5596_v0 }
 0x150   : > { %4461 = vmatprep.mubr.msk.f32.mxu0 %vm735_vm1, %v4207_v47 }
 0x151   : > { %v690_v48 = vpop.permute.xlu1 %689  ;;  %v684_v49 = vpop.permute.xlu0 %683 }
 0x152   : > { %vm706_vm7 = vcmp.eq.s32.totalorder %v678_v44, %v690_v48  ;;  %vm704_vm8 = vcmp.eq.s32.totalorder %v678_v44, %v684_v49 }
 0x153   : > { %v4208_v51 = vsel %vm704_vm8, 1.0, %v5596_v0  ;;  %v4210_v52 = vsel %vm706_vm7, 1.0, %v5596_v0 }
 0x154   : > { %4462 = vmatmul.mubr.msk.f32.vlgmr.msra.gmra.mrb[0].mxu0 %vm735_vm1, %v4208_v51 }
 0x155   : > { %v696_v53 = vpop.permute.xlu1 %695  ;;  %v693_v54 = vpop.permute.xlu0 %692  ;;  %4464 = vmatprep.mubr.msk.f32.mxu0 %vm735_vm1, %v4209_v50 }
 0x156   : > { %vm707_vm9 = vcmp.eq.s32.totalorder %v678_v44, %v693_v54  ;;  %vm708_vm10 = vcmp.eq.s32.totalorder %v678_v44, %v696_v53 }
 0x157   : > { %v4211_v55 = vsel %vm707_vm9, 1.0, %v5596_v0  ;;  %v4212_v58 = vsel %vm708_vm10, 1.0, %v5596_v0 }
 0x158   : > { %4465 = vmatmul.mubr.msk.f32.gmra.mrb[2].mxu0 %vm735_vm1, %v4210_v52 }
 0x159   : > { %v702_v56 = vpop.permute.xlu1 %701  ;;  %4467 = vmatprep.mubr.msk.f32.mxu0 %vm735_vm1, %v4211_v55  ;;  %v699_v57 = vpop.permute.xlu0 %698 }
 0x15a   : > { %vm709_vm11 = vcmp.eq.s32.totalorder %v678_v44, %v699_v57  ;;  %vm710_vm12 = vcmp.eq.s32.totalorder %v678_v44, %v702_v56 }
 0x15b   : > { %v4213_v59 = vsel %vm709_vm11, 1.0, %v5596_v0  ;;  %v4214_v60 = vsel %vm710_vm12, 1.0, %v5596_v0 }
 0x15c   : > { %4468 = vmatmul.mubr.msk.f32.gmra.mrb[4].mxu0 %vm735_vm1, %v4212_v58 }
 0x15d   : > { %4470 = vmatprep.mubr.msk.f32.mxu0 %vm735_vm1, %v4213_v59 }
 0x160   : > { %4471 = vmatmul.mubr.msk.f32.gmra.mrb[6].mxu0 %vm735_vm1, %v4214_v60 }
 0x161   : > { %1146 = vmatprep.mubr.f32.mxu0 %v5596_v0 }
 0x227   : > { %v4463_v61 = vpop.f32.mrb[0].mxu0 }
 0x228   : > { %v826_v62 = vpop.f32.mrb[1].mxu0 }
 0x229   : > { %4223 = vmatmul.mubr.msk.f32.vlgmr.msra.gmra.mrb[0].mxu1 %vm865_vm0, %v826_v62 }
 0x22a   : > { %1002 = vmatprep.mubr.f32.mxu1 %v5596_v0 }
 0x22b   : > { %v4466_v63 = vpop.f32.mrb[2].mxu0 }
 0x22c   : > { %v836_v1 = vpop.f32.mrb[3].mxu0 }
 0x22d   : > { %4224 = vmatmul.mubr.msk.f32.gmra.mrb[2].mxu1 %vm865_vm0, %v4463_v61 }
 0x22e   : > { %1008 = vmatprep.mubr.f32.mxu1 %v5596_v0 }
 0x22f   : > { %v4469_v2 = vpop.f32.mrb[4].mxu0 }
 0x230   : > { %v846_v3 = vpop.f32.mrb[5].mxu0 }
 0x231   : > { %4225 = vmatmul.mubr.msk.f32.gmra.mrb[4].mxu1 %vm865_vm0, %v836_v1 }
 0x232   : > { %1014 = vmatprep.mubr.f32.mxu1 %v5596_v0 }
 0x233   : > { %v4472_v4 = vpop.f32.mrb[6].mxu0 }
 0x234   : > { %v856_v5 = vpop.f32.mrb[7].mxu0 }
 0x235   : > { %4226 = vmatmul.mubr.msk.f32.gmra.mrb[6].mxu1 %vm865_vm0, %v4466_v63 }
 0x236   : > { %1020 = vmatprep.mubr.f32.mxu1 %v5596_v0 }
 0x239   : > { %4227 = vmatmul.mubr.msk.f32.gmra.mrb[8].mxu1 %vm865_vm0, %v846_v3 }
 0x23a   : > { %1026 = vmatprep.mubr.f32.mxu1 %v5596_v0 }
 0x23d   : > { %4228 = vmatmul.mubr.msk.f32.gmra.mrb[10].mxu1 %vm865_vm0, %v4469_v2 }
 0x23e   : > { %1032 = vmatprep.mubr.f32.mxu1 %v5596_v0 }
 0x241   : > { %4229 = vmatmul.mubr.msk.f32.gmra.mrb[12].mxu1 %vm865_vm0, %v856_v5  ;;  %v873_v5 = vld [vmem:[%s7211_s4 + $0x8] sm:$0xff] }
 0x242   : > { %1038 = vmatprep.mubr.f32.mxu1 %v5596_v0 }
 0x245   : > { %4230 = vmatmul.mubr.msk.f32.gmra.mrb[14].mxu1 %vm865_vm0, %v4472_v4  ;;  %vm5600_vm0 = vmmov 0  }
 0x246   : > { %1248 = vmatprep.mubr.f32.mxu1 %v5596_v0 }
 0x2fc   : > { %v998_v16 = vpop.f32.mrb[0].mxu1 }
 0x2fd   : > { %v6000_v17 = vadd.f32 %v998_v16, %v901_v14  ;;  %v1000_v18 = vpop.f32.mrb[1].mxu1  ;;  %v874_v16 = vld [vmem:[%s7211_s4 + $0x10] sm:$0xff] }
 0x2fe   : > { %v6002_v19 = vadd.f32 %v1000_v18, %v905_v15  ;;  %v877_v18 = vld [vmem:[%s7211_s4 + $0x28] sm:$0xff] }
 0x300   : > { %v1004_v20 = vpop.f32.mrb[2].mxu1 }
 0x301   : > { %v6004_v21 = vadd.f32 %v1004_v20, %v901_v14  ;;  %v1006_v22 = vpop.f32.mrb[3].mxu1  ;;  %v879_v20 = vld [vmem:[%s7211_s4 + $0x38] sm:$0xff] }
 0x302   : > { %v6006_v23 = vadd.f32 %v1006_v22, %v905_v15 }
 0x304   : > { %v1010_v24 = vpop.f32.mrb[4].mxu1 }
 0x305   : > { %v6008_v25 = vadd.f32 %v1010_v24, %v901_v14  ;;  %v1012_v6 = vpop.f32.mrb[5].mxu1  ;;  %v6126_v24 = vpack.c.bf16 %v879_v20, %v877_v18 }
 0x306   : > { %v6010_v26 = vadd.f32 %v1012_v6, %v905_v15  ;;  %v876_v6 = vld [vmem:[%s7211_s4 + $0x20] sm:$0xff] }
 0x308   : > { %v1016_v27 = vpop.f32.mrb[6].mxu1 }
 0x309   : > { %v6012_v28 = vadd.f32 %v1016_v27, %v901_v14  ;;  %v1018_v29 = vpop.f32.mrb[7].mxu1  ;;  %v878_v27 = vld [vmem:[%s7211_s4 + $0x30] sm:$0xff] }
 0x30a   : > { %v6014_v30 = vadd.f32 %v1018_v29, %v905_v15  ;;  %v881_v29 = vld [vmem:[%s7211_s4 + $0x48] sm:$0xff] }
 0x30c   : > { %v1022_v32 = vpop.f32.mrb[8].mxu1 }
 0x30d   : > { %v6023_v33 = vadd.f32 %v1022_v32, %v901_v14  ;;  %v1024_v34 = vpop.f32.mrb[9].mxu1  ;;  %v883_v32 = vld [vmem:[%s7211_s4 + $0x58] sm:$0xff] }
 0x30e   : > { %v6025_v35 = vadd.f32 %v1024_v34, %v905_v15  ;;  %v6143_v34 = vpack.c.bf16 %v878_v27, %v876_v6 }
 0x30f   : > { %v1279_v36 = vsel %vm6019_vm13, %v6012_v28, %v6023_v33  ;;  %v1381_v9 = vsel %vm6019_vm13, %v6023_v33, %v6012_v28 }
 0x310   : > { %v1028_v10 = vpop.f32.mrb[10].mxu1  ;;  %v1280_v37 = vsel %vm6019_vm13, %v6014_v30, %v6025_v35  ;;  %v1382_v38 = vsel %vm6019_vm13, %v6025_v35, %v6014_v30 }
 0x311   : > { %v6043_v39 = vadd.f32 %v1028_v10, %v901_v14  ;;  %v1030_v40 = vpop.f32.mrb[11].mxu1  ;;  %v6147_v10 = vpack.c.bf16 %v883_v32, %v881_v29 }
 0x312   : > { %v6045_v41 = vadd.f32 %v1030_v40, %v905_v15  ;;  %v880_v40 = vld [vmem:[%s7211_s4 + $0x40] sm:$0xff] }
 0x313   : > { %v1177_v42 = vsel %vm6019_vm13, %v6008_v25, %v6043_v39  ;;  %v1483_v43 = vsel %vm6019_vm13, %v6043_v39, %v6008_v25 }
 0x314   : > { %v1034_v44 = vpop.f32.mrb[12].mxu1  ;;  %v1178_v45 = vsel %vm6019_vm13, %v6010_v26, %v6045_v41  ;;  %v1484_v46 = vsel %vm6019_vm13, %v6045_v41, %v6010_v26 }
 0x315   : > { %v6063_v47 = vadd.f32 %v1034_v44, %v901_v14  ;;  %v1036_v48 = vpop.f32.mrb[13].mxu1  ;;  %v882_v44 = vld [vmem:[%s7211_s4 + $0x50] sm:$0xff] }
 0x316   : > { %v6065_v49 = vadd.f32 %v1036_v48, %v905_v15  ;;  %v885_v48 = vld [vmem:[%s7211_s4 + $0x68] sm:$0xff] }
 0x317   : > { %v1075_v50 = vsel %vm6019_vm13, %v6004_v21, %v6063_v47  ;;  %v1585_v51 = vsel %vm6019_vm13, %v6063_v47, %v6004_v21 }
 0x318   : > { %v1040_v52 = vpop.f32.mrb[14].mxu1  ;;  %v1076_v53 = vsel %vm6019_vm13, %v6006_v23, %v6065_v49  ;;  %v1586_v54 = vsel %vm6019_vm13, %v6065_v49, %v6006_v23 }
 0x319   : > { %v6083_v55 = vadd.f32 %v1040_v52, %v901_v14  ;;  %v1042_v56 = vpop.f32.mrb[15].mxu1  ;;  %v872_v14 = vld [vmem:[%s7211_s4] sm:$0xff]  ;;  %v887_v52 = vld [vmem:[%s7211_s4 + $0x78] sm:$0xff] }
 0x31a   : > { %v6085_v57 = vadd.f32 %v1042_v56, %v905_v15  ;;  %v6113_v15 = vpack.c.bf16 %v875_v12, %v873_v5  ;;  %v6124_v22 = vpack.c.bf16 %v874_v16, %v872_v14  ;;  %v6163_v56 = vpack.c.bf16 %v882_v44, %v880_v40 }
 0x31b   : > { %v1051_v58 = vsel %vm6019_vm13, %v6000_v17, %v6083_v55  ;;  %v1687_v59 = vsel %vm6019_vm13, %v6083_v55, %v6000_v17  ;;  %v1831_v17 = vld [vmem:[%s7213_s6 + $0x8] sm:$0xff]  ;;  %v1830_v55 = vld [vmem:[%s7213_s6] sm:$0xff] }
 0x31c   : > { %v4231_v60 = vmul.f32 -1.442695, %v1051_v58  ;;  %v1052_v61 = vsel %vm6019_vm13, %v6002_v19, %v6085_v57  ;;  %v1688_v62 = vsel %vm6019_vm13, %v6085_v57, %v6002_v19  ;;  %4670 = vmatprep.subr.bf16.mxu0 %v6113_v15  ;;  %4686 = vmatprep.subr.bf16.mxu1 %v6113_v15  ;;  %v6167_v58 = vpack.c.bf16 %v887_v52, %v885_v48  ;;  %v1833_v19 = vld [vmem:[%s7213_s6 + $0x18] sm:$0xff] }
 0x31d   : > { %4672 = vmatpush1.bf16.msra.mxu0 %v6124_v22  ;;  %4688 = vmatpush1.bf16.msra.mxu1 %v6124_v22  ;;  %v4781_v57 = vpack.c.bf16 %v1833_v19, %v1831_v17 }
 0x31e   : > { %5148 = vpow2.f32 %v4231_v60  ;;  %4674 = vmatprep.subr.bf16.mxu0 %v6126_v24  ;;  %4690 = vmatprep.subr.bf16.mxu1 %v6126_v24  ;;  %v884_v60 = vld [vmem:[%s7211_s4 + $0x60] sm:$0xff] }
 0x31f   : > { %5150 = vtanh.f32 %v1052_v61 }
 0x321   : > { %4676 = vmatpush1.bf16.msra.mxu0 %v6143_v34  ;;  %4692 = vmatpush1.bf16.msra.mxu1 %v6143_v34 }
 0x322   : > { %4678 = vmatprep.subr.bf16.mxu0 %v6147_v10  ;;  %4694 = vmatprep.subr.bf16.mxu1 %v6147_v10 }
 0x325   : > { %4680 = vmatpush1.bf16.msra.mxu0 %v6163_v56  ;;  %4696 = vmatpush1.bf16.msra.mxu1 %v6163_v56 }
 0x326   : > { %4682 = vmatprep.subr.bf16.mxu0 %v6167_v58  ;;  %4698 = vmatprep.subr.bf16.mxu1 %v6167_v58 }
 0x328   : > { %v5149_v63 = vpop.eup %5148 }
 0x329   : > { %v1059_v1 = vadd.f32 1.0, %v5149_v63  ;;  %v5151_v2 = vpop.eup %5150  ;;  %v886_v63 = vld [vmem:[%s7211_s4 + $0x70] sm:$0xff] }
 0x32b   : > { %5152 = vrcp.f32 %v1059_v1  ;;  %v6177_v1 = vpack.c.bf16 %v886_v63, %v884_v60 }
 0x32d   : > { %4684 = vmatpush1.bf16.msra.mxu0 %v6177_v1  ;;  %4700 = vmatpush1.bf16.msra.mxu1 %v6177_v1 }
 0x32e   : > { %4702 = vmatprep.subr.bf16.mxu0 %v6113_v15  ;;  %4718 = vmatprep.subr.bf16.mxu1 %v6113_v15 }
 0x335   : > { %v5153_v3 = vpop.eup %5152 }
 0x336   : > { %v1067_v4 = vmul.f32 %v5153_v3, %v5151_v2  ;;  %v4232_v2 = vmul.f32 -1.442695, %v1052_v61  ;;  %v1066_v12 = vmul.f32 0.0, %v5153_v3 }
 0x338   : > { %1069 = vrot.lane.b32.xlu0 %v1067_v4, %s5598_s13  ;;  %5154 = vpow2.f32 %v4232_v2 }
 0x342   : > { %v5155_v4 = vpop.eup %5154 }
 0x343   : > { %v1060_v5 = vadd.f32 1.0, %v5155_v4 }
 0x345   : > { %5156 = vrcp.f32 %v1060_v5 }
 0x34f   : > { %v5157_v18 = vpop.eup %5156 }
 0x3aa   : > { %v1070_v14 = vpop.permute.xlu0 %1069 }
 0x3ab   : > { %v1072_v16 = vadd.f32 %v1070_v14, %v1066_v12 }
 0x3ad   : > { %5158 = vtanh.f32 %v1072_v16 }
 0x3b7   : > { %v5159_v20 = vpop.eup %5158 }
 0x3b8   : > { %v1074_v6 = vmul.f32 %v5159_v20, %v5157_v18 }
 0x3ba   : > { %1078 = vrot.lane.b32.xlu1 %v1074_v6, %s5598_s13 }
 0x42c   : > { %v6187_v27 = vpop.permute.xlu1 %1078 }
 0x42d   : > { %4233 = vmatmul.mubr.msk.f32.vlgmr.msra.gmra.mrb[8].mxu0 %vm735_vm1, %v6187_v27 }
 0x42e   : > { %4704 = vmatpush1.bf16.msra.mxu0 %v6124_v22  ;;  %1350 = vmatprep.mubr.f32.mxu0 %v5596_v0 }
 0x42f   : > { %4706 = vmatprep.subr.bf16.mxu0 %v6126_v24 }
 0x432   : > { %4708 = vmatpush1.bf16.msra.mxu0 %v6143_v34 }
 0x433   : > { %4710 = vmatprep.subr.bf16.mxu0 %v6147_v10 }
 0x436   : > { %4712 = vmatpush1.bf16.msra.mxu0 %v6163_v56 }
 0x437   : > { %4714 = vmatprep.subr.bf16.mxu0 %v6167_v58 }
 0x43a   : > { %4716 = vmatpush1.bf16.msra.mxu0 %v6177_v1 }
 0x43b   : > { %4734 = vmatprep.subr.bf16.mxu0 %v6113_v15 }
 0x500   : > { %v1148_v61 = vpop.f32.mrb[8].mxu0 }
 0x501   : > { %v1153_v3 = vadd.f32 %v1148_v61, %v1075_v50  ;;  %v1150_v29 = vpop.f32.mrb[9].mxu0 }
 0x502   : > { %v1154_v32 = vadd.f32 %v1150_v29, %v1076_v53 }
 0x503   : > { %v4234_v40 = vmul.f32 -1.442695, %v1153_v3 }
 0x504   : > { %v4235_v2 = vmul.f32 -1.442695, %v1154_v32 }
 0x505   : > { %5160 = vpow2.f32 %v4234_v40 }
 0x506   : > { %5162 = vtanh.f32 %v1154_v32 }
 0x50f   : > { %v5161_v44 = vpop.eup %5160 }
 0x510   : > { %v1161_v48 = vadd.f32 1.0, %v5161_v44  ;;  %v5163_v52 = vpop.eup %5162 }
 0x512   : > { %5164 = vrcp.f32 %v1161_v48 }
 0x513   : > { %5166 = vpow2.f32 %v4235_v2 }
 0x51c   : > { %v5165_v60 = vpop.eup %5164 }
 0x51d   : > { %v1169_v63 = vmul.f32 %v5165_v60, %v5163_v52  ;;  %v5167_v50 = vpop.eup %5166  ;;  %v1168_v5 = vmul.f32 %v5165_v60, %v1072_v16 }
 0x51e   : > { %v1162_v4 = vadd.f32 1.0, %v5167_v50 }
 0x51f   : > { %1171 = vrot.lane.b32.xlu0 %v1169_v63, %s5598_s13 }
 0x520   : > { %5168 = vrcp.f32 %v1162_v4 }
 0x52a   : > { %v5169_v53 = vpop.eup %5168 }
 0x591   : > { %v1172_v12 = vpop.permute.xlu0 %1171 }
 0x592   : > { %v1174_v14 = vadd.f32 %v1172_v12, %v1168_v5 }
 0x594   : > { %5170 = vtanh.f32 %v1174_v14 }
 0x59e   : > { %v5171_v18 = vpop.eup %5170 }
 0x59f   : > { %v1176_v20 = vmul.f32 %v5171_v18, %v5169_v53 }
 0x5a1   : > { %1180 = vrot.lane.b32.xlu1 %v1176_v20, %s5598_s13 }
 0x613   : > { %v6212_v6 = vpop.permute.xlu1 %1180 }
 0x614   : > { %4236 = vmatmul.mubr.msk.f32.vlgmr.msra.gmra.mrb[16].mxu1 %vm735_vm1, %v6212_v6 }
 0x615   : > { %4720 = vmatpush1.bf16.msra.mxu1 %v6124_v22  ;;  %1452 = vmatprep.mubr.f32.mxu1 %v5596_v0 }
 0x616   : > { %4722 = vmatprep.subr.bf16.mxu1 %v6126_v24 }
 0x619   : > { %4724 = vmatpush1.bf16.msra.mxu1 %v6143_v34 }
 0x61a   : > { %4726 = vmatprep.subr.bf16.mxu1 %v6147_v10 }
 0x61d   : > { %4728 = vmatpush1.bf16.msra.mxu1 %v6163_v56 }
 0x61e   : > { %4730 = vmatprep.subr.bf16.mxu1 %v6167_v58 }
 0x621   : > { %4732 = vmatpush1.bf16.msra.mxu1 %v6177_v1 }
 0x622   : > { %4750 = vmatprep.subr.bf16.mxu1 %v6113_v15 }
 0x6e7   : > { %v1250_v16 = vpop.f32.mrb[16].mxu1 }
 0x6e8   : > { %v1255_v61 = vadd.f32 %v1250_v16, %v1177_v42  ;;  %v1252_v3 = vpop.f32.mrb[17].mxu1 }
 0x6e9   : > { %v1256_v29 = vadd.f32 %v1252_v3, %v1178_v45 }
 0x6ea   : > { %v4237_v32 = vmul.f32 -1.442695, %v1255_v61 }
 0x6eb   : > { %v4238_v63 = vmul.f32 -1.442695, %v1256_v29 }
 0x6ec   : > { %5172 = vpow2.f32 %v4237_v32 }
 0x6ed   : > { %5174 = vtanh.f32 %v1256_v29 }
 0x6f6   : > { %v5173_v40 = vpop.eup %5172 }
 0x6f7   : > { %v1263_v44 = vadd.f32 1.0, %v5173_v40  ;;  %v5175_v48 = vpop.eup %5174 }
 0x6f9   : > { %5176 = vrcp.f32 %v1263_v44 }
 0x6fa   : > { %5178 = vpow2.f32 %v4238_v63 }
 0x703   : > { %v5177_v52 = vpop.eup %5176 }
 0x704   : > { %v1271_v60 = vmul.f32 %v5177_v52, %v5175_v48  ;;  %v5179_v42 = vpop.eup %5178  ;;  %v1270_v50 = vmul.f32 %v5177_v52, %v1174_v14 }
 0x705   : > { %v1264_v2 = vadd.f32 1.0, %v5179_v42 }
 0x706   : > { %1273 = vrot.lane.b32.xlu0 %v1271_v60, %s5598_s13 }
 0x707   : > { %5180 = vrcp.f32 %v1264_v2 }
 0x711   : > { %v5181_v45 = vpop.eup %5180 }
 0x778   : > { %v1274_v4 = vpop.permute.xlu0 %1273 }
 0x779   : > { %v1276_v5 = vadd.f32 %v1274_v4, %v1270_v50 }
 0x77b   : > { %5182 = vtanh.f32 %v1276_v5 }
 0x785   : > { %v5183_v12 = vpop.eup %5182 }
 0x786   : > { %v1278_v53 = vmul.f32 %v5183_v12, %v5181_v45 }
 0x788   : > { %1282 = vrot.lane.b32.xlu1 %v1278_v53, %s5598_s13 }
 0x7fa   : > { %v6237_v18 = vpop.permute.xlu1 %1282 }
 0x7fb   : > { %4239 = vmatmul.mubr.msk.f32.vlgmr.msra.gmra.mrb[10].mxu0 %vm735_vm1, %v6237_v18 }
 0x7fc   : > { %4736 = vmatpush1.bf16.msra.mxu0 %v6124_v22  ;;  %1554 = vmatprep.mubr.f32.mxu0 %v5596_v0 }
 0x7fd   : > { %4738 = vmatprep.subr.bf16.mxu0 %v6126_v24 }
 0x800   : > { %4740 = vmatpush1.bf16.msra.mxu0 %v6143_v34 }
 0x801   : > { %4742 = vmatprep.subr.bf16.mxu0 %v6147_v10 }
 0x804   : > { %4744 = vmatpush1.bf16.msra.mxu0 %v6163_v56 }
 0x805   : > { %4746 = vmatprep.subr.bf16.mxu0 %v6167_v58 }
 0x808   : > { %4748 = vmatpush1.bf16.msra.mxu0 %v6177_v1 }
 0x809   : > { %4766 = vmatprep.subr.bf16.mxu0 %v6113_v15 }
 0x8ce   : > { %v1352_v14 = vpop.f32.mrb[10].mxu0 }
 0x8cf   : > { %v1357_v20 = vadd.f32 %v1352_v14, %v1279_v36  ;;  %v1354_v16 = vpop.f32.mrb[11].mxu0 }
 0x8d0   : > { %v1358_v61 = vadd.f32 %v1354_v16, %v1280_v37 }
 0x8d1   : > { %v4240_v3 = vmul.f32 -1.442695, %v1357_v20 }
 0x8d2   : > { %v4241_v48 = vmul.f32 -1.442695, %v1358_v61 }
 0x8d3   : > { %5184 = vpow2.f32 %v4240_v3 }
 0x8d4   : > { %5186 = vtanh.f32 %v1358_v61 }
 0x8dd   : > { %v5185_v29 = vpop.eup %5184 }
 0x8de   : > { %v1365_v32 = vadd.f32 1.0, %v5185_v29  ;;  %v5187_v15 = vpop.eup %5186 }
 0x8e0   : > { %5188 = vrcp.f32 %v1365_v32 }
 0x8e1   : > { %5190 = vpow2.f32 %v4241_v48 }
 0x8ea   : > { %v5189_v40 = vpop.eup %5188 }
 0x8eb   : > { %v1373_v44 = vmul.f32 %v5189_v40, %v5187_v15  ;;  %v5191_v36 = vpop.eup %5190  ;;  %v1372_v60 = vmul.f32 %v5189_v40, %v1276_v5 }
 0x8ec   : > { %v1366_v52 = vadd.f32 1.0, %v5191_v36 }
 0x8ed   : > { %1375 = vrot.lane.b32.xlu0 %v1373_v44, %s5598_s13 }
 0x8ee   : > { %5192 = vrcp.f32 %v1366_v52 }
 0x8f8   : > { %v5193_v37 = vpop.eup %5192 }
 0x95f   : > { %v1376_v63 = vpop.permute.xlu0 %1375 }
 0x960   : > { %v1378_v42 = vadd.f32 %v1376_v63, %v1372_v60 }
 0x962   : > { %5194 = vtanh.f32 %v1378_v42 }
 0x96c   : > { %v5195_v2 = vpop.eup %5194 }
 0x96d   : > { %v1380_v50 = vmul.f32 %v5195_v2, %v5193_v37 }
 0x96f   : > { %1384 = vrot.lane.b32.xlu1 %v1380_v50, %s5598_s13 }
 0x9e1   : > { %v6262_v4 = vpop.permute.xlu1 %1384 }
 0x9e2   : > { %4242 = vmatmul.mubr.msk.f32.vlgmr.msra.gmra.mrb[18].mxu1 %vm735_vm1, %v6262_v4 }
 0x9e3   : > { %4752 = vmatpush1.bf16.msra.mxu1 %v6124_v22  ;;  %1656 = vmatprep.mubr.f32.mxu1 %v5596_v0 }
 0x9e4   : > { %4754 = vmatprep.subr.bf16.mxu1 %v6126_v24 }
 0x9e7   : > { %4756 = vmatpush1.bf16.msra.mxu1 %v6143_v34 }
 0x9e8   : > { %4758 = vmatprep.subr.bf16.mxu1 %v6147_v10 }
 0x9eb   : > { %4760 = vmatpush1.bf16.msra.mxu1 %v6163_v56 }
 0x9ec   : > { %4762 = vmatprep.subr.bf16.mxu1 %v6167_v58 }
 0x9ef   : > { %4764 = vmatpush1.bf16.msra.mxu1 %v6177_v1 }
 0x9f0   : > { %4782 = vmatprep.subr.bf16.mxu1 %v4781_v57 }
 0xab5   : > { %v1454_v5 = vpop.f32.mrb[18].mxu1 }
 0xab6   : > { %v1459_v45 = vadd.f32 %v1454_v5, %v1381_v9  ;;  %v1456_v12 = vpop.f32.mrb[19].mxu1 }
 0xab7   : > { %v1460_v53 = vadd.f32 %v1456_v12, %v1382_v38 }
 0xab8   : > { %v4243_v14 = vmul.f32 -1.442695, %v1459_v45 }
 0xab9   : > { %v4244_v28 = vmul.f32 -1.442695, %v1460_v53 }
 0xaba   : > { %5196 = vpow2.f32 %v4243_v14 }
 0xabb   : > { %5198 = vtanh.f32 %v1460_v53 }
 0xac4   : > { %v5197_v20 = vpop.eup %5196 }
 0xac5   : > { %v1467_v16 = vadd.f32 1.0, %v5197_v20  ;;  %v5199_v61 = vpop.eup %5198 }
 0xac7   : > { %5200 = vrcp.f32 %v1467_v16 }
 0xac8   : > { %5202 = vpow2.f32 %v4244_v28 }
 0xad1   : > { %v5201_v3 = vpop.eup %5200 }
 0xad2   : > { %v1475_v29 = vmul.f32 %v5201_v3, %v5199_v61  ;;  %v5203_v33 = vpop.eup %5202  ;;  %v1474_v32 = vmul.f32 %v5201_v3, %v1378_v42 }
 0xad3   : > { %v1468_v9 = vadd.f32 1.0, %v5203_v33 }
 0xad4   : > { %1477 = vrot.lane.b32.xlu0 %v1475_v29, %s5598_s13 }
 0xad5   : > { %5204 = vrcp.f32 %v1468_v9 }
 0xadf   : > { %v5205_v30 = vpop.eup %5204 }
 0xb46   : > { %v1478_v15 = vpop.permute.xlu0 %1477 }
 0xb47   : > { %v1480_v40 = vadd.f32 %v1478_v15, %v1474_v32 }
 0xb49   : > { %5206 = vtanh.f32 %v1480_v40 }
 0xb53   : > { %v5207_v35 = vpop.eup %5206 }
 0xb54   : > { %v1482_v38 = vmul.f32 %v5207_v35, %v5205_v30 }
 0xb56   : > { %1486 = vrot.lane.b32.xlu1 %v1482_v38, %s5598_s13 }
 0xbc8   : > { %v6286_v44 = vpop.permute.xlu1 %1486 }
 0xbc9   : > { %4245 = vmatmul.mubr.msk.f32.vlgmr.msra.gmra.mrb[12].mxu0 %vm735_vm1, %v6286_v44  ;;  %v1809_v11 = vsel %vm6395_vm14, %v6262_v4, %v6286_v44 }
 0xbca   : > { %4768 = vmatpush1.bf16.msra.mxu0 %v6124_v22  ;;  %1758 = vmatprep.mubr.f32.mxu0 %v5596_v0 }
 0xbcb   : > { %4770 = vmatprep.subr.bf16.mxu0 %v6126_v24 }
 0xbce   : > { %4772 = vmatpush1.bf16.msra.mxu0 %v6143_v34 }
 0xbcf   : > { %4774 = vmatprep.subr.bf16.mxu0 %v6147_v10 }
 0xbd2   : > { %4776 = vmatpush1.bf16.msra.mxu0 %v6163_v56 }
 0xbd3   : > { %4778 = vmatprep.subr.bf16.mxu0 %v6167_v58 }
 0xbd6   : > { %4780 = vmatpush1.bf16.msra.mxu0 %v6177_v1 }
 0xc9c   : > { %v1556_v48 = vpop.f32.mrb[12].mxu0 }
 0xc9d   : > { %v1561_v22 = vadd.f32 %v1556_v48, %v1483_v43  ;;  %v1558_v36 = vpop.f32.mrb[13].mxu0 }
 0xc9e   : > { %v1562_v24 = vadd.f32 %v1558_v36, %v1484_v46 }
 0xc9f   : > { %v4246_v34 = vmul.f32 -1.442695, %v1561_v22 }
 0xca0   : > { %v4247_v25 = vmul.f32 -1.442695, %v1562_v24 }
 0xca1   : > { %5208 = vpow2.f32 %v4246_v34 }
 0xca2   : > { %5210 = vtanh.f32 %v1562_v24  ;;  %v1837_v24 = vld [vmem:[%s7213_s6 + $0x38] sm:$0xff] }
 0xcab   : > { %v5209_v10 = vpop.eup %5208 }
 0xcac   : > { %v1569_v56 = vadd.f32 1.0, %v5209_v10  ;;  %v5211_v58 = vpop.eup %5210 }
 0xcae   : > { %5212 = vrcp.f32 %v1569_v56  ;;  %v1834_v56 = vld [vmem:[%s7213_s6 + $0x20] sm:$0xff] }
 0xcaf   : > { %5214 = vpow2.f32 %v4247_v25 }
 0xcb8   : > { %v5213_v1 = vpop.eup %5212 }
 0xcb9   : > { %v1577_v52 = vmul.f32 %v5213_v1, %v5211_v58  ;;  %v5215_v39 = vpop.eup %5214  ;;  %v1576_v60 = vmul.f32 %v5213_v1, %v1480_v40  ;;  %v1836_v58 = vld [vmem:[%s7213_s6 + $0x30] sm:$0xff]  ;;  %v1839_v1 = vld [vmem:[%s7213_s6 + $0x48] sm:$0xff] }
 0xcba   : > { %v1570_v43 = vadd.f32 1.0, %v5215_v39  ;;  %v4787_v25 = vpack.c.bf16 %v1836_v58, %v1834_v56 }
 0xcbb   : > { %1579 = vrot.lane.b32.xlu0 %v1577_v52, %s5598_s13  ;;  %v1841_v52 = vld [vmem:[%s7213_s6 + $0x58] sm:$0xff] }
 0xcbc   : > { %5216 = vrcp.f32 %v1570_v43  ;;  %v4789_v39 = vpack.c.bf16 %v1841_v52, %v1839_v1  ;;  %v1838_v43 = vld [vmem:[%s7213_s6 + $0x40] sm:$0xff] }
 0xcc6   : > { %v5217_v26 = vpop.eup %5216 }
 0xd2d   : > { %v1580_v63 = vpop.permute.xlu0 %1579 }
 0xd2e   : > { %v1582_v42 = vadd.f32 %v1580_v63, %v1576_v60  ;;  %v1840_v60 = vld [vmem:[%s7213_s6 + $0x50] sm:$0xff]  ;;  %v1843_v63 = vld [vmem:[%s7213_s6 + $0x68] sm:$0xff] }
 0xd30   : > { %5218 = vtanh.f32 %v1582_v42 }
 0xd3a   : > { %v5219_v41 = vpop.eup %5218 }
 0xd3b   : > { %v1584_v46 = vmul.f32 %v5219_v41, %v5217_v26  ;;  %v4791_v26 = vpack.c.bf16 %v1840_v60, %v1838_v43 }
 0xd3d   : > { %1588 = vrot.lane.b32.xlu1 %v1584_v46, %s5598_s13  ;;  %v1842_v46 = vld [vmem:[%s7213_s6 + $0x60] sm:$0xff] }
 0xdaf   : > { %v6310_v37 = vpop.permute.xlu1 %1588 }
 0xdb0   : > { %4248 = vmatmul.mubr.msk.f32.vlgmr.msra.gmra.mrb[20].mxu1 %vm735_vm1, %v6310_v37  ;;  %v1806_v7 = vsel %vm6395_vm14, %v6237_v18, %v6310_v37 }
 0xdb1   : > { %1946 = vmatprep.mubr.f32.mxu1 %v5596_v0 }
 0xe83   : > { %v1658_v2 = vpop.f32.mrb[20].mxu1 }
 0xe84   : > { %v1663_v50 = vadd.f32 %v1658_v2, %v1585_v51  ;;  %v1660_v5 = vpop.f32.mrb[21].mxu1  ;;  %v1844_v2 = vld [vmem:[%s7213_s6 + $0x70] sm:$0xff] }
 0xe85   : > { %v1664_v45 = vadd.f32 %v1660_v5, %v1586_v54 }
 0xe86   : > { %v4249_v12 = vmul.f32 -1.442695, %v1663_v50  ;;  %v4795_v50 = vpack.c.bf16 %v1844_v2, %v1842_v46 }
 0xe87   : > { %v4250_v21 = vmul.f32 -1.442695, %v1664_v45 }
 0xe88   : > { %5220 = vpow2.f32 %v4249_v12 }
 0xe89   : > { %5222 = vtanh.f32 %v1664_v45 }
 0xe92   : > { %v5221_v53 = vpop.eup %5220 }
 0xe93   : > { %v1671_v14 = vadd.f32 1.0, %v5221_v53  ;;  %v5223_v20 = vpop.eup %5222 }
 0xe95   : > { %5224 = vrcp.f32 %v1671_v14 }
 0xe96   : > { %5226 = vpow2.f32 %v4250_v21 }
 0xe9f   : > { %v5225_v16 = vpop.eup %5224 }
 0xea0   : > { %v1679_v61 = vmul.f32 %v5225_v16, %v5223_v20  ;;  %v5227_v47 = vpop.eup %5226  ;;  %v1678_v3 = vmul.f32 %v5225_v16, %v1582_v42  ;;  %v1845_v42 = vld [vmem:[%s7213_s6 + $0x78] sm:$0xff] }
 0xea1   : > { %v1672_v51 = vadd.f32 1.0, %v5227_v47  ;;  %v4793_v41 = vpack.c.bf16 %v1845_v42, %v1843_v63  ;;  %v2755_v47 = vld [vmem:[%s7280_s25 + $0x18] sm:$0xff] }
 0xea2   : > { %1681 = vrot.lane.b32.xlu0 %v1679_v61, %s5598_s13 }
 0xea3   : > { %5228 = vrcp.f32 %v1672_v51 }
 0xead   : > { %v5229_v23 = vpop.eup %5228 }
 0xf14   : > { %v1682_v29 = vpop.permute.xlu0 %1681 }
 0xf15   : > { %v1684_v28 = vadd.f32 %v1682_v29, %v1678_v3 }
 0xf17   : > { %5230 = vtanh.f32 %v1684_v28 }
 0xf21   : > { %v5231_v49 = vpop.eup %5230 }
 0xf22   : > { %v1686_v54 = vmul.f32 %v5231_v49, %v5229_v23  ;;  %v1811_v23 = vsel %vm6395_vm14, %v6310_v37, %v6237_v18  ;;  %v1846_v18 = vld [vmem:[#allocation5] sm:$0x3] }
 0xf23   : > { %v1855_v37 = vrot.slane %v1846_v18, %v5996_v13 }
 0xf24   : > { %1690 = vrot.lane.b32.xlu1 %v1686_v54, %s5598_s13 }
 0xf96   : > { %v6327_v33 = vpop.permute.xlu1 %1690 }
 0xf97   : > { %4251 = vmatmul.mubr.msk.f32.vlgmr.msra.gmra.mrb[14].mxu0 %vm735_vm1, %v6327_v33  ;;  %v1803_v29 = vsel %vm6395_vm14, %v6212_v6, %v6327_v33  ;;  %v1812_v49 = vsel %vm6395_vm14, %v6327_v33, %v6212_v6 }
 0xf98   : > { %2090 = vmatprep.mubr.f32.mxu0 %v5596_v0 }
0x106a   : > { %v1760_v9 = vpop.f32.mrb[14].mxu0 }
0x106b   : > { %v1765_v32 = vadd.f32 %v1760_v9, %v1687_v59  ;;  %v1762_v15 = vpop.f32.mrb[15].mxu0  ;;  %v1832_v59 = vld [vmem:[%s7213_s6 + $0x10] sm:$0xff] }
0x106c   : > { %v1766_v40 = vadd.f32 %v1762_v15, %v1688_v62  ;;  %v1835_v62 = vld [vmem:[%s7213_s6 + $0x28] sm:$0xff]  ;;  %v4783_v34 = vpack.c.bf16 %v1832_v59, %v1830_v55 }
0x106d   : > { %v4252_v30 = vmul.f32 -1.442695, %v1765_v32  ;;  %v4785_v10 = vpack.c.bf16 %v1837_v24, %v1835_v62 }
0x106e   : > { %4784 = vmatpush1.bf16.msra.mxu1 %v4783_v34  ;;  %v4253_v5 = vmul.f32 -1.442695, %v1766_v40 }
0x106f   : > { %5232 = vpow2.f32 %v4252_v30  ;;  %4786 = vmatprep.subr.bf16.mxu1 %v4785_v10 }
0x1070   : > { %5234 = vtanh.f32 %v1766_v40 }
0x1072   : > { %4788 = vmatpush1.bf16.msra.mxu1 %v4787_v25 }
0x1073   : > { %4790 = vmatprep.subr.bf16.mxu1 %v4789_v39 }
0x1076   : > { %4792 = vmatpush1.bf16.msra.mxu1 %v4791_v26 }
0x1077   : > { %4794 = vmatprep.subr.bf16.mxu1 %v4793_v41 }
0x1079   : > { %v5233_v35 = vpop.eup %5232 }
0x107a   : > { %v1773_v38 = vadd.f32 1.0, %v5233_v35  ;;  %v5235_v48 = vpop.eup %5234  ;;  %4796 = vmatpush1.bf16.msra.mxu1 %v4795_v50 }
0x107c   : > { %5236 = vrcp.f32 %v1773_v38 }
0x107d   : > { %5238 = vpow2.f32 %v4253_v5 }
0x1086   : > { %v5237_v22 = vpop.eup %5236 }
0x1087   : > { %v1781_v36 = vmul.f32 %v5237_v22, %v5235_v48  ;;  %v5239_v45 = vpop.eup %5238  ;;  %v1780_v53 = vmul.f32 %v5237_v22, %v1684_v28  ;;  %v1810_v28 = vsel %vm6395_vm14, %v6286_v44, %v6262_v4  ;;  %v1851_v44 = vrot.slane %v1846_v18, %v5920_v8  ;;  %v1814_v18 = vld [vmem:[%s7214_s7] sm:$0xff] }
0x1088   : > { %v1774_v12 = vadd.f32 1.0, %v5239_v45 }
0x1089   : > { %1783 = vrot.lane.b32.xlu0 %v1781_v36, %s5598_s13 }
0x108a   : > { %5240 = vrcp.f32 %v1774_v12 }
0x1094   : > { %v5241_v16 = vpop.eup %5240 }
0x10fb   : > { %v1784_v14 = vpop.permute.xlu0 %1783 }
0x10fc   : > { %v1786_v20 = vadd.f32 %v1784_v14, %v1780_v53 }
0x10fe   : > { %5242 = vtanh.f32 %v1786_v20 }
0x1108   : > { %v5243_v61 = vpop.eup %5242 }
0x1109   : > { %v1788_v21 = vmul.f32 %v5243_v61, %v5241_v16 }
0x110b   : > { %1797 = vrot.lane.b32.xlu1 %v1788_v21, %s5598_s13 }
0x117d   : > { %v1798_v51 = vpop.permute.xlu1 %1797 }
0x117e   : > { %v1800_v3 = vsel %vm6395_vm14, %v6187_v27, %v1798_v51  ;;  %v1813_v4 = vsel %vm6395_vm14, %v1798_v51, %v6187_v27 }
0x117f   : > { %4254 = vmatmul.mubr.msk.f32.vlgmr.msra.gmra.mrb[22].mxu1 %vm735_vm1, %v1800_v3 }
0x1180   : > { %1952 = vmatprep.mubr.f32.mxu1 %v5596_v0 }
0x1183   : > { %4255 = vmatmul.mubr.msk.f32.gmra.mrb[24].mxu1 %vm735_vm1, %v1803_v29 }
0x1184   : > { %1958 = vmatprep.mubr.f32.mxu1 %v5596_v0 }
0x1187   : > { %4256 = vmatmul.mubr.msk.f32.gmra.mrb[26].mxu1 %vm735_vm1, %v1806_v7 }
0x1188   : > { %1964 = vmatprep.mubr.f32.mxu1 %v5596_v0 }
0x118b   : > { %4257 = vmatmul.mubr.msk.f32.gmra.mrb[28].mxu1 %vm735_vm1, %v1809_v11 }
0x118c   : > { %1970 = vmatprep.mubr.f32.mxu1 %v5596_v0 }
0x118f   : > { %4258 = vmatmul.mubr.msk.f32.gmra.mrb[30].mxu1 %vm735_vm1, %v1810_v28 }
0x1190   : > { %1976 = vmatprep.mubr.f32.mxu1 %v5596_v0 }
0x1193   : > { %4259 = vmatmul.mubr.msk.f32.gmra.mrb[32].mxu1 %vm735_vm1, %v1811_v23 }
0x1194   : > { %1982 = vmatprep.mubr.f32.mxu1 %v5596_v0 }
0x1197   : > { %4260 = vmatmul.mubr.msk.f32.gmra.mrb[34].mxu1 %vm735_vm1, %v1812_v49  ;;  %v1815_v49 = vld [vmem:[%s7214_s7 + $0x8] sm:$0xff] }
0x1198   : > { %1988 = vmatprep.mubr.f32.mxu1 %v5596_v0 }
0x119b   : > { %4261 = vmatmul.mubr.msk.f32.gmra.mrb[36].mxu1 %vm735_vm1, %v1813_v4  ;;  %v1817_v4 = vld [vmem:[%s7214_s7 + $0x18] sm:$0xff] }
0x119c   : > { %2294 = vmatprep.mubr.f32.mxu1 %v5596_v0 }
0x1252   : > { %v1948_v54 = vpop.f32.mrb[22].mxu1 }
0x1253   : > { %v6447_v9 = vadd.f32 %v1948_v54, %v1851_v44  ;;  %v1950_v6 = vpop.f32.mrb[23].mxu1  ;;  %v1819_v54 = vld [vmem:[%s7214_s7 + $0x28] sm:$0xff] }
0x1254   : > { %v6449_v33 = vadd.f32 %v1950_v6, %v1855_v37  ;;  %v1821_v6 = vld [vmem:[%s7214_s7 + $0x38] sm:$0xff] }
0x1256   : > { %v1954_v32 = vpop.f32.mrb[24].mxu1 }
0x1257   : > { %v6451_v15 = vadd.f32 %v1954_v32, %v1851_v44  ;;  %v1956_v40 = vpop.f32.mrb[25].mxu1 }
0x1258   : > { %v6453_v27 = vadd.f32 %v1956_v40, %v1855_v37  ;;  %v6566_v40 = vpack.c.bf16 %v1821_v6, %v1819_v54 }
0x125a   : > { %v1960_v30 = vpop.f32.mrb[26].mxu1 }
0x125b   : > { %v6455_v35 = vadd.f32 %v1960_v30, %v1851_v44  ;;  %v1962_v38 = vpop.f32.mrb[27].mxu1  ;;  %v1818_v30 = vld [vmem:[%s7214_s7 + $0x20] sm:$0xff] }
0x125c   : > { %v6457_v48 = vadd.f32 %v1962_v38, %v1855_v37  ;;  %v1820_v38 = vld [vmem:[%s7214_s7 + $0x30] sm:$0xff] }
0x125e   : > { %v1966_v22 = vpop.f32.mrb[28].mxu1 }
0x125f   : > { %v6459_v36 = vadd.f32 %v1966_v22, %v1851_v44  ;;  %v1968_v17 = vpop.f32.mrb[29].mxu1  ;;  %v1823_v22 = vld [vmem:[%s7214_s7 + $0x48] sm:$0xff] }
0x1260   : > { %v6461_v19 = vadd.f32 %v1968_v17, %v1855_v37  ;;  %v1825_v17 = vld [vmem:[%s7214_s7 + $0x58] sm:$0xff] }
0x1262   : > { %v1972_v55 = vpop.f32.mrb[30].mxu1 }
0x1263   : > { %v6463_v57 = vadd.f32 %v1972_v55, %v1851_v44  ;;  %v1974_v59 = vpop.f32.mrb[31].mxu1  ;;  %v6583_v55 = vpack.c.bf16 %v1820_v38, %v1818_v30 }
0x1264   : > { %v6465_v62 = vadd.f32 %v1974_v59, %v1855_v37  ;;  %v6587_v59 = vpack.c.bf16 %v1825_v17, %v1823_v22 }
0x1265   : > { %v2223_v24 = vsel %vm6019_vm13, %v6459_v36, %v6463_v57  ;;  %v2325_v34 = vsel %vm6019_vm13, %v6463_v57, %v6459_v36 }
0x1266   : > { %v1978_v10 = vpop.f32.mrb[32].mxu1  ;;  %v2224_v56 = vsel %vm6019_vm13, %v6461_v19, %v6465_v62  ;;  %v2326_v58 = vsel %vm6019_vm13, %v6465_v62, %v6461_v19 }
0x1267   : > { %v6483_v1 = vadd.f32 %v1978_v10, %v1851_v44  ;;  %v1980_v52 = vpop.f32.mrb[33].mxu1  ;;  %v1822_v10 = vld [vmem:[%s7214_s7 + $0x40] sm:$0xff] }
0x1268   : > { %v6485_v25 = vadd.f32 %v1980_v52, %v1855_v37  ;;  %v1824_v52 = vld [vmem:[%s7214_s7 + $0x50] sm:$0xff] }
0x1269   : > { %v2121_v39 = vsel %vm6019_vm13, %v6455_v35, %v6483_v1  ;;  %v2427_v43 = vsel %vm6019_vm13, %v6483_v1, %v6455_v35 }
0x126a   : > { %v1984_v60 = vpop.f32.mrb[34].mxu1  ;;  %v2122_v63 = vsel %vm6019_vm13, %v6457_v48, %v6485_v25  ;;  %v2428_v42 = vsel %vm6019_vm13, %v6485_v25, %v6457_v48 }
0x126b   : > { %v6503_v26 = vadd.f32 %v1984_v60, %v1851_v44  ;;  %v1986_v41 = vpop.f32.mrb[35].mxu1  ;;  %v1827_v60 = vld [vmem:[%s7214_s7 + $0x68] sm:$0xff] }
0x126c   : > { %v6505_v46 = vadd.f32 %v1986_v41, %v1855_v37  ;;  %v1829_v41 = vld [vmem:[%s7214_s7 + $0x78] sm:$0xff] }
0x126d   : > { %v2019_v2 = vsel %vm6019_vm13, %v6451_v15, %v6503_v26  ;;  %v2529_v50 = vsel %vm6019_vm13, %v6503_v26, %v6451_v15 }
0x126e   : > { %v1990_v5 = vpop.f32.mrb[36].mxu1  ;;  %v2020_v45 = vsel %vm6019_vm13, %v6453_v27, %v6505_v46  ;;  %v2530_v12 = vsel %vm6019_vm13, %v6505_v46, %v6453_v27 }
0x126f   : > { %v6523_v53 = vadd.f32 %v1990_v5, %v1851_v44  ;;  %v1992_v14 = vpop.f32.mrb[37].mxu1  ;;  %v6553_v44 = vpack.c.bf16 %v1817_v4, %v1815_v49  ;;  %v6603_v5 = vpack.c.bf16 %v1824_v52, %v1822_v10 }
0x1270   : > { %v6525_v20 = vadd.f32 %v1992_v14, %v1855_v37  ;;  %v1816_v37 = vld [vmem:[%s7214_s7 + $0x10] sm:$0xff]  ;;  %v6607_v14 = vpack.c.bf16 %v1829_v41, %v1827_v60 }
0x1271   : > { %v1995_v16 = vsel %vm6019_vm13, %v6447_v9, %v6523_v53  ;;  %v2631_v61 = vsel %vm6019_vm13, %v6523_v53, %v6447_v9  ;;  %v6564_v32 = vpack.c.bf16 %v1816_v37, %v1814_v18  ;;  %4798 = vmatprep.subr.bf16.mxu0 %v6553_v44  ;;  %4830 = vmatprep.subr.bf16.mxu1 %v6553_v44 }
0x1272   : > { %v4262_v21 = vmul.f32 -1.442695, %v1995_v16  ;;  %v1996_v51 = vsel %vm6019_vm13, %v6449_v33, %v6525_v20  ;;  %v2632_v3 = vsel %vm6019_vm13, %v6525_v20, %v6449_v33  ;;  %v1826_v16 = vld [vmem:[%s7214_s7 + $0x60] sm:$0xff] }
0x1273   : > { %4800 = vmatpush1.bf16.msra.mxu0 %v6564_v32  ;;  %4832 = vmatpush1.bf16.msra.mxu1 %v6564_v32 }
0x1274   : > { %5244 = vpow2.f32 %v4262_v21  ;;  %4802 = vmatprep.subr.bf16.mxu0 %v6566_v40  ;;  %4834 = vmatprep.subr.bf16.mxu1 %v6566_v40  ;;  %v1828_v21 = vld [vmem:[%s7214_s7 + $0x70] sm:$0xff] }
0x1275   : > { %5246 = vtanh.f32 %v1996_v51 }
0x1277   : > { %4804 = vmatpush1.bf16.msra.mxu0 %v6583_v55  ;;  %4836 = vmatpush1.bf16.msra.mxu1 %v6583_v55 }
0x1278   : > { %4806 = vmatprep.subr.bf16.mxu0 %v6587_v59  ;;  %4838 = vmatprep.subr.bf16.mxu1 %v6587_v59 }
0x127b   : > { %4808 = vmatpush1.bf16.msra.mxu0 %v6603_v5  ;;  %4840 = vmatpush1.bf16.msra.mxu1 %v6603_v5 }
0x127c   : > { %4810 = vmatprep.subr.bf16.mxu0 %v6607_v14  ;;  %4842 = vmatprep.subr.bf16.mxu1 %v6607_v14 }
0x127e   : > { %v5245_v29 = vpop.eup %5244 }
0x127f   : > { %v2003_v7 = vadd.f32 1.0, %v5245_v29  ;;  %v5247_v11 = vpop.eup %5246  ;;  %v6617_v29 = vpack.c.bf16 %v1828_v21, %v1826_v16 }
0x1281   : > { %5248 = vrcp.f32 %v2003_v7  ;;  %4812 = vmatpush1.bf16.msra.mxu0 %v6617_v29  ;;  %4844 = vmatpush1.bf16.msra.mxu1 %v6617_v29  ;;  %v4263_v7 = vmul.f32 -1.442695, %v1996_v51 }
0x1282   : > { %4814 = vmatprep.subr.bf16.mxu0 %v6553_v44  ;;  %4862 = vmatprep.subr.bf16.mxu1 %v6553_v44 }
0x1283   : > { %5250 = vpow2.f32 %v4263_v7 }
0x128b   : > { %v5249_v28 = vpop.eup %5248 }
0x128c   : > { %v2011_v23 = vmul.f32 %v5249_v28, %v5247_v11  ;;  %v2010_v49 = vmul.f32 0.0, %v5249_v28 }
0x128d   : > { %v5251_v11 = vpop.eup %5250 }
0x128e   : > { %2013 = vrot.lane.b32.xlu0 %v2011_v23, %s5598_s13  ;;  %v2004_v23 = vadd.f32 1.0, %v5251_v11 }
0x1290   : > { %5252 = vrcp.f32 %v2004_v23 }
0x129a   : > { %v5253_v37 = vpop.eup %5252 }
0x1300   : > { %v2014_v4 = vpop.permute.xlu0 %2013 }
0x1301   : > { %v2016_v18 = vadd.f32 %v2014_v4, %v2010_v49 }
0x1303   : > { %5254 = vtanh.f32 %v2016_v18 }
0x130d   : > { %v5255_v54 = vpop.eup %5254 }
0x130e   : > { %v2018_v6 = vmul.f32 %v5255_v54, %v5253_v37 }
0x1310   : > { %2022 = vrot.lane.b32.xlu1 %v2018_v6, %s5598_s13 }
0x1382   : > { %v6627_v30 = vpop.permute.xlu1 %2022 }
0x1383   : > { %4264 = vmatmul.mubr.msk.f32.vlgmr.msra.gmra.mrb[16].mxu0 %vm735_vm1, %v6627_v30 }
0x1384   : > { %4816 = vmatpush1.bf16.msra.mxu0 %v6564_v32  ;;  %2192 = vmatprep.mubr.f32.mxu0 %v5596_v0 }
0x1385   : > { %4818 = vmatprep.subr.bf16.mxu0 %v6566_v40 }
0x1388   : > { %4820 = vmatpush1.bf16.msra.mxu0 %v6583_v55 }
0x1389   : > { %4822 = vmatprep.subr.bf16.mxu0 %v6587_v59 }
0x138c   : > { %4824 = vmatpush1.bf16.msra.mxu0 %v6603_v5 }
0x138d   : > { %4826 = vmatprep.subr.bf16.mxu0 %v6607_v14 }
0x1390   : > { %4828 = vmatpush1.bf16.msra.mxu0 %v6617_v29 }
0x1391   : > { %4846 = vmatprep.subr.bf16.mxu0 %v6553_v44 }
0x1456   : > { %v2092_v51 = vpop.f32.mrb[16].mxu0 }
0x1457   : > { %v2097_v28 = vadd.f32 %v2092_v51, %v2019_v2  ;;  %v2094_v38 = vpop.f32.mrb[17].mxu0 }
0x1458   : > { %v2098_v22 = vadd.f32 %v2094_v38, %v2020_v45 }
0x1459   : > { %v4265_v17 = vmul.f32 -1.442695, %v2097_v28 }
0x145a   : > { %v4266_v21 = vmul.f32 -1.442695, %v2098_v22 }
0x145b   : > { %5256 = vpow2.f32 %v4265_v17 }
0x145c   : > { %5258 = vtanh.f32 %v2098_v22 }
0x1465   : > { %v5257_v10 = vpop.eup %5256 }
0x1466   : > { %v2105_v52 = vadd.f32 1.0, %v5257_v10  ;;  %v5259_v60 = vpop.eup %5258 }
0x1468   : > { %5260 = vrcp.f32 %v2105_v52 }
0x1469   : > { %5262 = vpow2.f32 %v4266_v21 }
0x1472   : > { %v5261_v41 = vpop.eup %5260 }
0x1473   : > { %v2113_v16 = vmul.f32 %v5261_v41, %v5259_v60  ;;  %v5263_v2 = vpop.eup %5262  ;;  %v2112_v11 = vmul.f32 %v5261_v41, %v2016_v18 }
0x1474   : > { %v2106_v7 = vadd.f32 1.0, %v5263_v2 }
0x1475   : > { %2115 = vrot.lane.b32.xlu0 %v2113_v16, %s5598_s13 }
0x1476   : > { %5264 = vrcp.f32 %v2106_v7 }
0x1480   : > { %v5265_v45 = vpop.eup %5264 }
0x14e7   : > { %v2116_v23 = vpop.permute.xlu0 %2115 }
0x14e8   : > { %v2118_v49 = vadd.f32 %v2116_v23, %v2112_v11 }
0x14ea   : > { %5266 = vtanh.f32 %v2118_v49 }
0x14f4   : > { %v5267_v4 = vpop.eup %5266 }
0x14f5   : > { %v2120_v37 = vmul.f32 %v5267_v4, %v5265_v45 }
0x14f7   : > { %2124 = vrot.lane.b32.xlu1 %v2120_v37, %s5598_s13 }
0x1569   : > { %v6652_v54 = vpop.permute.xlu1 %2124 }
0x156a   : > { %4267 = vmatmul.mubr.msk.f32.vlgmr.msra.gmra.mrb[18].mxu0 %vm735_vm1, %v6652_v54 }
0x156b   : > { %4848 = vmatpush1.bf16.msra.mxu0 %v6564_v32  ;;  %2396 = vmatprep.mubr.f32.mxu0 %v5596_v0 }
0x156c   : > { %4850 = vmatprep.subr.bf16.mxu0 %v6566_v40 }
0x156f   : > { %4852 = vmatpush1.bf16.msra.mxu0 %v6583_v55 }
0x1570   : > { %4854 = vmatprep.subr.bf16.mxu0 %v6587_v59 }
0x1573   : > { %4856 = vmatpush1.bf16.msra.mxu0 %v6603_v5 }
0x1574   : > { %4858 = vmatprep.subr.bf16.mxu0 %v6607_v14 }
0x1577   : > { %4860 = vmatpush1.bf16.msra.mxu0 %v6617_v29 }
0x1578   : > { %4878 = vmatprep.subr.bf16.mxu0 %v6553_v44 }
0x163d   : > { %v2194_v18 = vpop.f32.mrb[18].mxu0 }
0x163e   : > { %v2199_v6 = vadd.f32 %v2194_v18, %v2121_v39  ;;  %v2196_v51 = vpop.f32.mrb[19].mxu0 }
0x163f   : > { %v2200_v28 = vadd.f32 %v2196_v51, %v2122_v63 }
0x1640   : > { %v4268_v38 = vmul.f32 -1.442695, %v2199_v6 }
0x1641   : > { %v4269_v41 = vmul.f32 -1.442695, %v2200_v28 }
0x1642   : > { %5268 = vpow2.f32 %v4268_v38 }
0x1643   : > { %5270 = vtanh.f32 %v2200_v28 }
0x164c   : > { %v5269_v22 = vpop.eup %5268 }
0x164d   : > { %v2207_v17 = vadd.f32 1.0, %v5269_v22  ;;  %v5271_v10 = vpop.eup %5270 }
0x164f   : > { %5272 = vrcp.f32 %v2207_v17 }
0x1650   : > { %5274 = vpow2.f32 %v4269_v41 }
0x1659   : > { %v5273_v52 = vpop.eup %5272 }
0x165a   : > { %v2215_v60 = vmul.f32 %v5273_v52, %v5271_v10  ;;  %v5275_v39 = vpop.eup %5274  ;;  %v2214_v21 = vmul.f32 %v5273_v52, %v2118_v49 }
0x165b   : > { %v2208_v16 = vadd.f32 1.0, %v5275_v39 }
0x165c   : > { %2217 = vrot.lane.b32.xlu0 %v2215_v60, %s5598_s13 }
0x165d   : > { %5276 = vrcp.f32 %v2208_v16 }
0x1667   : > { %v5277_v63 = vpop.eup %5276 }
0x16ce   : > { %v2218_v2 = vpop.permute.xlu0 %2217 }
0x16cf   : > { %v2220_v7 = vadd.f32 %v2218_v2, %v2214_v21 }
0x16d1   : > { %5278 = vtanh.f32 %v2220_v7 }
0x16db   : > { %v5279_v11 = vpop.eup %5278 }
0x16dc   : > { %v2222_v23 = vmul.f32 %v5279_v11, %v5277_v63 }
0x16de   : > { %2226 = vrot.lane.b32.xlu1 %v2222_v23, %s5598_s13 }
0x1750   : > { %v6677_v45 = vpop.permute.xlu1 %2226 }
0x1751   : > { %4270 = vmatmul.mubr.msk.f32.vlgmr.msra.gmra.mrb[38].mxu1 %vm735_vm1, %v6677_v45 }
0x1752   : > { %4864 = vmatpush1.bf16.msra.mxu1 %v6564_v32  ;;  %2498 = vmatprep.mubr.f32.mxu1 %v5596_v0 }
0x1753   : > { %4866 = vmatprep.subr.bf16.mxu1 %v6566_v40 }
0x1756   : > { %4868 = vmatpush1.bf16.msra.mxu1 %v6583_v55 }
0x1757   : > { %4870 = vmatprep.subr.bf16.mxu1 %v6587_v59 }
0x175a   : > { %4872 = vmatpush1.bf16.msra.mxu1 %v6603_v5 }
0x175b   : > { %4874 = vmatprep.subr.bf16.mxu1 %v6607_v14 }
0x175e   : > { %4876 = vmatpush1.bf16.msra.mxu1 %v6617_v29 }
0x175f   : > { %4894 = vmatprep.subr.bf16.mxu1 %v6553_v44 }
0x1824   : > { %v2296_v49 = vpop.f32.mrb[38].mxu1 }
0x1825   : > { %v2301_v4 = vadd.f32 %v2296_v49, %v2223_v24  ;;  %v2298_v37 = vpop.f32.mrb[39].mxu1 }
0x1826   : > { %v2302_v18 = vadd.f32 %v2298_v37, %v2224_v56 }
0x1827   : > { %v4271_v6 = vmul.f32 -1.442695, %v2301_v4 }
0x1828   : > { %v4272_v17 = vmul.f32 -1.442695, %v2302_v18 }
0x1829   : > { %5280 = vpow2.f32 %v4271_v6 }
0x182a   : > { %5282 = vtanh.f32 %v2302_v18 }
0x1833   : > { %v5281_v51 = vpop.eup %5280 }
0x1834   : > { %v2309_v28 = vadd.f32 1.0, %v5281_v51  ;;  %v5283_v44 = vpop.eup %5282 }
0x1836   : > { %5284 = vrcp.f32 %v2309_v28 }
0x1837   : > { %5286 = vpow2.f32 %v4272_v17 }
0x1840   : > { %v5285_v38 = vpop.eup %5284 }
0x1841   : > { %v2317_v22 = vmul.f32 %v5285_v38, %v5283_v44  ;;  %v5287_v24 = vpop.eup %5286  ;;  %v2316_v52 = vmul.f32 %v5285_v38, %v2220_v7 }
0x1842   : > { %v2310_v10 = vadd.f32 1.0, %v5287_v24 }
0x1843   : > { %2319 = vrot.lane.b32.xlu0 %v2317_v22, %s5598_s13 }
0x1844   : > { %5288 = vrcp.f32 %v2310_v10 }
0x184e   : > { %v5289_v56 = vpop.eup %5288 }
0x18b5   : > { %v2320_v60 = vpop.permute.xlu0 %2319 }
0x18b6   : > { %v2322_v41 = vadd.f32 %v2320_v60, %v2316_v52 }
0x18b8   : > { %5290 = vtanh.f32 %v2322_v41 }
0x18c2   : > { %v5291_v39 = vpop.eup %5290 }
0x18c3   : > { %v2324_v16 = vmul.f32 %v5291_v39, %v5289_v56 }
0x18c5   : > { %2328 = vrot.lane.b32.xlu1 %v2324_v16, %s5598_s13 }
0x1937   : > { %v6702_v21 = vpop.permute.xlu1 %2328 }
0x1938   : > { %4273 = vmatmul.mubr.msk.f32.vlgmr.msra.gmra.mrb[20].mxu0 %vm735_vm1, %v6702_v21 }
0x1939   : > { %4880 = vmatpush1.bf16.msra.mxu0 %v6564_v32  ;;  %2600 = vmatprep.mubr.f32.mxu0 %v5596_v0 }
0x193a   : > { %4882 = vmatprep.subr.bf16.mxu0 %v6566_v40 }
0x193d   : > { %4884 = vmatpush1.bf16.msra.mxu0 %v6583_v55 }
0x193e   : > { %4886 = vmatprep.subr.bf16.mxu0 %v6587_v59 }
0x1941   : > { %4888 = vmatpush1.bf16.msra.mxu0 %v6603_v5 }
0x1942   : > { %4890 = vmatprep.subr.bf16.mxu0 %v6607_v14 }
0x1945   : > { %4892 = vmatpush1.bf16.msra.mxu0 %v6617_v29 }
0x1a0b   : > { %v2398_v2 = vpop.f32.mrb[20].mxu0 }
0x1a0c   : > { %v2403_v7 = vadd.f32 %v2398_v2, %v2325_v34  ;;  %v2400_v63 = vpop.f32.mrb[21].mxu0 }
0x1a0d   : > { %v2404_v11 = vadd.f32 %v2400_v63, %v2326_v58 }
0x1a0e   : > { %v4274_v23 = vmul.f32 -1.442695, %v2403_v7 }
0x1a0f   : > { %v4275_v36 = vmul.f32 -1.442695, %v2404_v11 }
0x1a10   : > { %5292 = vpow2.f32 %v4274_v23 }
0x1a11   : > { %5294 = vtanh.f32 %v2404_v11 }
0x1a1a   : > { %v5293_v49 = vpop.eup %5292 }
0x1a1b   : > { %v2411_v4 = vadd.f32 1.0, %v5293_v49  ;;  %v5295_v37 = vpop.eup %5294 }
0x1a1d   : > { %5296 = vrcp.f32 %v2411_v4 }
0x1a1e   : > { %5298 = vpow2.f32 %v4275_v36 }
0x1a27   : > { %v5297_v18 = vpop.eup %5296 }
0x1a28   : > { %v2419_v6 = vmul.f32 %v5297_v18, %v5295_v37  ;;  %v5299_v57 = vpop.eup %5298  ;;  %v2418_v51 = vmul.f32 %v5297_v18, %v2322_v41 }
0x1a29   : > { %v2412_v34 = vadd.f32 1.0, %v5299_v57 }
0x1a2a   : > { %2421 = vrot.lane.b32.xlu0 %v2419_v6, %s5598_s13 }
0x1a2b   : > { %5300 = vrcp.f32 %v2412_v34 }
0x1a35   : > { %v5301_v19 = vpop.eup %5300 }
0x1a9c   : > { %v2422_v28 = vpop.permute.xlu0 %2421 }
0x1a9d   : > { %v2424_v44 = vadd.f32 %v2422_v28, %v2418_v51 }
0x1a9f   : > { %5302 = vtanh.f32 %v2424_v44 }
0x1aa9   : > { %v5303_v62 = vpop.eup %5302 }
0x1aaa   : > { %v2426_v58 = vmul.f32 %v5303_v62, %v5301_v19 }
0x1aac   : > { %2430 = vrot.lane.b32.xlu1 %v2426_v58, %s5598_s13 }
0x1b1e   : > { %v6726_v38 = vpop.permute.xlu1 %2430 }
0x1b1f   : > { %4276 = vmatmul.mubr.msk.f32.vlgmr.msra.gmra.mrb[40].mxu1 %vm735_vm1, %v6726_v38 }
0x1b20   : > { %4896 = vmatpush1.bf16.msra.mxu1 %v6564_v32  ;;  %2702 = vmatprep.mubr.f32.mxu1 %v5596_v0 }
0x1b21   : > { %4898 = vmatprep.subr.bf16.mxu1 %v6566_v40 }
0x1b24   : > { %4900 = vmatpush1.bf16.msra.mxu1 %v6583_v55 }
0x1b25   : > { %4902 = vmatprep.subr.bf16.mxu1 %v6587_v59 }
0x1b28   : > { %4904 = vmatpush1.bf16.msra.mxu1 %v6603_v5 }
0x1b29   : > { %4906 = vmatprep.subr.bf16.mxu1 %v6607_v14 }
0x1b2c   : > { %4908 = vmatpush1.bf16.msra.mxu1 %v6617_v29 }
0x1bf2   : > { %v2500_v22 = vpop.f32.mrb[40].mxu1 }
0x1bf3   : > { %v2505_v32 = vadd.f32 %v2500_v22, %v2427_v43  ;;  %v2502_v17 = vpop.f32.mrb[41].mxu1 }
0x1bf4   : > { %v2506_v40 = vadd.f32 %v2502_v17, %v2428_v42 }
0x1bf5   : > { %v4277_v55 = vmul.f32 -1.442695, %v2505_v32 }
0x1bf6   : > { %v4278_v35 = vmul.f32 -1.442695, %v2506_v40 }
0x1bf7   : > { %5304 = vpow2.f32 %v4277_v55  ;;  %v2752_v55 = vld [vmem:[%s7280_s25] sm:$0xff] }
0x1bf8   : > { %5306 = vtanh.f32 %v2506_v40 }
0x1c01   : > { %v5305_v59 = vpop.eup %5304 }
0x1c02   : > { %v2513_v5 = vadd.f32 1.0, %v5305_v59  ;;  %v5307_v14 = vpop.eup %5306  ;;  %v2890_v59 = vld [vmem:[%s7216_s9 + $0x8] sm:$0xff] }
0x1c04   : > { %5308 = vrcp.f32 %v2513_v5  ;;  %v2892_v5 = vld [vmem:[%s7216_s9 + $0x18] sm:$0xff] }
0x1c05   : > { %5310 = vpow2.f32 %v4278_v35  ;;  %v2894_v35 = vld [vmem:[%s7216_s9 + $0x28] sm:$0xff] }
0x1c0e   : > { %v5309_v29 = vpop.eup %5308 }
0x1c0f   : > { %v2521_v24 = vmul.f32 %v5309_v29, %v5307_v14  ;;  %v5311_v1 = vpop.eup %5310  ;;  %v2520_v10 = vmul.f32 %v5309_v29, %v2424_v44  ;;  %v2889_v14 = vld [vmem:[%s7216_s9] sm:$0xff]  ;;  %v4925_v29 = vpack.c.bf16 %v2892_v5, %v2890_v59  ;;  %v3081_v5 = vld [vmem:[%s7218_s11 + $0x50] sm:$0xff] }
0x1c10   : > { %v2514_v43 = vadd.f32 1.0, %v5311_v1  ;;  %v2896_v1 = vld [vmem:[%s7216_s9 + $0x38] sm:$0xff] }
0x1c11   : > { %2523 = vrot.lane.b32.xlu0 %v2521_v24, %s5598_s13  ;;  %v2891_v24 = vld [vmem:[%s7216_s9 + $0x10] sm:$0xff]  ;;  %4926 = vmatprep.subr.bf16.mxu1 %v4925_v29 }
0x1c12   : > { %5312 = vrcp.f32 %v2514_v43  ;;  %v4927_v43 = vpack.c.bf16 %v2891_v24, %v2889_v14  ;;  %v3082_v14 = vld [vmem:[%s7218_s11 + $0x58] sm:$0xff]  ;;  %v3201_v24 = vld [vmem:[%s7219_s12 + $0x10] sm:$0xff] }
0x1c13   : > { %v4961_v29 = vpack.c.bf16 %v3082_v14, %v3081_v5 }
0x1c1c   : > { %v5313_v48 = vpop.eup %5312 }
0x1c83   : > { %v2524_v52 = vpop.permute.xlu0 %2523 }
0x1c84   : > { %v2526_v60 = vadd.f32 %v2524_v52, %v2520_v10  ;;  %v4929_v10 = vpack.c.bf16 %v2896_v1, %v2894_v35  ;;  %v2893_v52 = vld [vmem:[%s7216_s9 + $0x20] sm:$0xff]  ;;  %v3202_v35 = vld [vmem:[%s7219_s12 + $0x18] sm:$0xff] }
0x1c86   : > { %5314 = vtanh.f32 %v2526_v60 }
0x1c90   : > { %v5315_v25 = vpop.eup %5314 }
0x1c91   : > { %v2528_v42 = vmul.f32 %v5315_v25, %v5313_v48  ;;  %v2898_v48 = vld [vmem:[%s7216_s9 + $0x48] sm:$0xff]  ;;  %v2900_v25 = vld [vmem:[%s7216_s9 + $0x58] sm:$0xff] }
0x1c93   : > { %2532 = vrot.lane.b32.xlu1 %v2528_v42, %s5598_s13 }
0x1d05   : > { %v6750_v41 = vpop.permute.xlu1 %2532 }
0x1d06   : > { %4279 = vmatmul.mubr.msk.f32.vlgmr.msra.gmra.mrb[22].mxu0 %vm735_vm1, %v6750_v41 }
0x1d07   : > { %4489 = vmatprep.mubr.msk.f32.mxu0 %vm735_vm1, %v2752_v55  ;;  %v3080_v55 = vld [vmem:[%s7218_s11 + $0x48] sm:$0xff] }
0x1dd9   : > { %v2602_v56 = vpop.f32.mrb[22].mxu0 }
0x1dda   : > { %v2607_v39 = vadd.f32 %v2602_v56, %v2529_v50  ;;  %v2604_v16 = vpop.f32.mrb[23].mxu0  ;;  %v4933_v56 = vpack.c.bf16 %v2900_v25, %v2898_v48 }
0x1ddb   : > { %v2608_v2 = vadd.f32 %v2604_v16, %v2530_v12  ;;  %v2899_v16 = vld [vmem:[%s7216_s9 + $0x50] sm:$0xff] }
0x1ddc   : > { %v4280_v7 = vmul.f32 -1.442695, %v2607_v39  ;;  %v2897_v39 = vld [vmem:[%s7216_s9 + $0x40] sm:$0xff] }
0x1ddd   : > { %v4281_v15 = vmul.f32 -1.442695, %v2608_v2 }
0x1dde   : > { %5316 = vpow2.f32 %v4280_v7  ;;  %v2904_v7 = vld [vmem:[%s7216_s9 + $0x78] sm:$0xff] }
0x1ddf   : > { %5318 = vtanh.f32 %v2608_v2  ;;  %v2902_v2 = vld [vmem:[%s7216_s9 + $0x68] sm:$0xff] }
0x1de8   : > { %v5317_v63 = vpop.eup %5316 }
0x1de9   : > { %v2615_v11 = vadd.f32 1.0, %v5317_v63  ;;  %v5319_v23 = vpop.eup %5318  ;;  %v4935_v63 = vpack.c.bf16 %v2899_v16, %v2897_v39  ;;  %v3206_v39 = vld [vmem:[%s7219_s12 + $0x38] sm:$0xff] }
0x1deb   : > { %5320 = vrcp.f32 %v2615_v11  ;;  %v4937_v11 = vpack.c.bf16 %v2904_v7, %v2902_v2 }
0x1dec   : > { %5322 = vpow2.f32 %v4281_v15 }
0x1df5   : > { %v5321_v49 = vpop.eup %5320 }
0x1df6   : > { %v2623_v4 = vmul.f32 %v5321_v49, %v5319_v23  ;;  %v5323_v26 = vpop.eup %5322  ;;  %v2622_v37 = vmul.f32 %v5321_v49, %v2526_v60  ;;  %v2895_v60 = vld [vmem:[%s7216_s9 + $0x30] sm:$0xff]  ;;  %v2901_v23 = vld [vmem:[%s7216_s9 + $0x60] sm:$0xff] }
0x1df7   : > { %v2616_v50 = vadd.f32 1.0, %v5323_v26  ;;  %v4931_v42 = vpack.c.bf16 %v2895_v60, %v2893_v52  ;;  %v2903_v49 = vld [vmem:[%s7216_s9 + $0x70] sm:$0xff]  ;;  %v2744_v26 = vsel %vm6395_vm14, %v6677_v45, %v6750_v41  ;;  %v3203_v52 = vld [vmem:[%s7219_s12 + $0x20] sm:$0xff]  ;;  %v3204_v60 = vld [vmem:[%s7219_s12 + $0x28] sm:$0xff] }
0x1df8   : > { %2625 = vrot.lane.b32.xlu0 %v2623_v4, %s5598_s13  ;;  %v4939_v4 = vpack.c.bf16 %v2903_v49, %v2901_v23  ;;  %v4981_v25 = vpack.c.bf16 %v3204_v60, %v3203_v52 }
0x1df9   : > { %5324 = vrcp.f32 %v2616_v50 }
0x1e03   : > { %v5325_v27 = vpop.eup %5324 }
0x1e6a   : > { %v2626_v18 = vpop.permute.xlu0 %2625 }
0x1e6b   : > { %v2628_v6 = vadd.f32 %v2626_v18, %v2622_v37 }
0x1e6d   : > { %5326 = vtanh.f32 %v2628_v6 }
0x1e77   : > { %v5327_v46 = vpop.eup %5326 }
0x1e78   : > { %v2630_v12 = vmul.f32 %v5327_v46, %v5325_v27  ;;  %v2749_v46 = vsel %vm6395_vm14, %v6750_v41, %v6677_v45  ;;  %v2758_v41 = vld [vmem:[%s7280_s25 + $0x30] sm:$0xff] }
0x1e7a   : > { %2634 = vrot.lane.b32.xlu1 %v2630_v12, %s5598_s13  ;;  %v2748_v12 = vsel %vm6395_vm14, %v6726_v38, %v6702_v21 }
0x1eec   : > { %v6766_v36 = vpop.permute.xlu1 %2634 }
0x1eed   : > { %4282 = vmatmul.mubr.msk.f32.vlgmr.msra.gmra.mrb[42].mxu1 %vm735_vm1, %v6766_v36  ;;  %v2741_v50 = vsel %vm6395_vm14, %v6652_v54, %v6766_v36 }
0x1eee   : > { %3005 = vmatprep.mubr.f32.mxu1 %v5596_v0  ;;  %4928 = vmatpush1.bf16.msra.mxu1 %v4927_v43  ;;  %v4977_v43 = vpack.c.bf16 %v3202_v35, %v3201_v24 }
0x1eef   : > { %4930 = vmatprep.subr.bf16.mxu1 %v4929_v10 }
0x1ef2   : > { %4932 = vmatpush1.bf16.msra.mxu1 %v4931_v42 }
0x1ef3   : > { %4934 = vmatprep.subr.bf16.mxu1 %v4933_v56  ;;  %v3205_v56 = vld [vmem:[%s7219_s12 + $0x30] sm:$0xff] }
0x1ef4   : > { %v4985_v2 = vpack.c.bf16 %v3206_v39, %v3205_v56 }
0x1ef6   : > { %4936 = vmatpush1.bf16.msra.mxu1 %v4935_v63  ;;  %v3207_v63 = vld [vmem:[%s7219_s12 + $0x40] sm:$0xff] }
0x1ef7   : > { %4938 = vmatprep.subr.bf16.mxu1 %v4937_v11  ;;  %v3208_v11 = vld [vmem:[%s7219_s12 + $0x48] sm:$0xff] }
0x1ef8   : > { %v4989_v49 = vpack.c.bf16 %v3208_v11, %v3207_v63  ;;  %v5599_v63 = vmov 0.0|0.0   ;;  %v7043_v11 = vld [vmem:[#allocation10] ss:$0 sm:$0xff] }
0x1efa   : > { %4940 = vmatpush1.bf16.msra.mxu1 %v4939_v4 }
0x1fc0   : > { %v2704_v57 = vpop.f32.mrb[42].mxu1 }
0x1fc1   : > { %v2709_v34 = vadd.f32 %v2704_v57, %v2631_v61  ;;  %v2706_v51 = vpop.f32.mrb[43].mxu1  ;;  %v4917_v57 = vpack.c.bf16 %v2749_v46, %v2748_v12  ;;  %v3212_v46 = vld [vmem:[%s7219_s12 + $0x68] sm:$0xff] }
0x1fc2   : > { %v2710_v28 = vadd.f32 %v2706_v51, %v2632_v3  ;;  %v2750_v51 = vsel %vm6395_vm14, %v6766_v36, %v6652_v54  ;;  %v2757_v54 = vld [vmem:[%s7280_s25 + $0x28] sm:$0xff]  ;;  %v2759_v36 = vld [vmem:[%s7280_s25 + $0x38] sm:$0xff] }
0x1fc3   : > { %v4283_v44 = vmul.f32 -1.442695, %v2709_v34 }
0x1fc4   : > { %v4284_v9 = vmul.f32 -1.442695, %v2710_v28 }
0x1fc5   : > { %5328 = vpow2.f32 %v4283_v44  ;;  %v3072_v44 = vld [vmem:[%s7218_s11 + $0x8] sm:$0xff] }
0x1fc6   : > { %5330 = vtanh.f32 %v2710_v28  ;;  %v3071_v28 = vld [vmem:[%s7218_s11] sm:$0xff] }
0x1fcf   : > { %v5329_v19 = vpop.eup %5328 }
0x1fd0   : > { %v2717_v62 = vadd.f32 1.0, %v5329_v19  ;;  %v5331_v58 = vpop.eup %5330  ;;  %v3199_v19 = vld [vmem:[%s7219_s12] sm:$0xff] }
0x1fd2   : > { %5332 = vrcp.f32 %v2717_v62  ;;  %v4941_v62 = vpack.c.bf16 %v3072_v44, %v3071_v28 }
0x1fd3   : > { %5334 = vpow2.f32 %v4284_v9 }
0x1fdc   : > { %v5333_v22 = vpop.eup %5332 }
0x1fdd   : > { %v2725_v32 = vmul.f32 %v5333_v22, %v5331_v58  ;;  %v5335_v53 = vpop.eup %5334  ;;  %v2724_v31 = vmul.f32 %v5333_v22, %v2628_v6  ;;  %v2747_v6 = vsel %vm6395_vm14, %v6702_v21, %v6726_v38  ;;  %v2753_v21 = vld [vmem:[%s7280_s25 + $0x8] sm:$0xff]  ;;  %v2754_v38 = vld [vmem:[%s7280_s25 + $0x10] sm:$0xff] }
0x1fde   : > { %v2718_v61 = vadd.f32 1.0, %v5335_v53  ;;  %v4913_v27 = vpack.c.bf16 %v2747_v6, %v2744_v26  ;;  %v3200_v58 = vld [vmem:[%s7219_s12 + $0x8] sm:$0xff]  ;;  %v3073_v22 = vld [vmem:[%s7218_s11 + $0x10] sm:$0xff]  ;;  %v3210_v26 = vld [vmem:[%s7219_s12 + $0x58] sm:$0xff] }
0x1fdf   : > { %2727 = vrot.lane.b32.xlu0 %v2725_v32, %s5598_s13  ;;  %v3074_v32 = vld [vmem:[%s7218_s11 + $0x18] sm:$0xff]  ;;  %v4973_v9 = vpack.c.bf16 %v3200_v58, %v3199_v19  ;;  %v3211_v6 = vld [vmem:[%s7219_s12 + $0x60] sm:$0xff] }
0x1fe0   : > { %5336 = vrcp.f32 %v2718_v61  ;;  %v4945_v53 = vpack.c.bf16 %v3074_v32, %v3073_v22  ;;  %v3075_v61 = vld [vmem:[%s7218_s11 + $0x20] sm:$0xff]  ;;  %v4997_v12 = vpack.c.bf16 %v3212_v46, %v3211_v6 }
0x1fe1   : > { %4974 = vmatprep.subr.bf16.mxu1 %v4973_v9  ;;  %v7060_v46 = vld [vmem:[#allocation8] ss:$0 sm:$0xff] }
0x1fea   : > { %v5337_v33 = vpop.eup %5336 }
0x2051   : > { %v2728_v17 = vpop.permute.xlu0 %2727 }
0x2052   : > { %v2730_v40 = vadd.f32 %v2728_v17, %v2724_v31  ;;  %v3076_v31 = vld [vmem:[%s7218_s11 + $0x28] sm:$0xff] }
0x2053   : > { %v4949_v17 = vpack.c.bf16 %v3076_v31, %v3075_v61 }
0x2054   : > { %5338 = vtanh.f32 %v2730_v40  ;;  %v3077_v40 = vld [vmem:[%s7218_s11 + $0x30] sm:$0xff] }
0x205e   : > { %v5339_v20 = vpop.eup %5338 }
0x205f   : > { %v2732_v3 = vmul.f32 %v5339_v20, %v5337_v33  ;;  %v3078_v33 = vld [vmem:[%s7218_s11 + $0x38] sm:$0xff] }
0x2060   : > { %v4953_v20 = vpack.c.bf16 %v3078_v33, %v3077_v40 }
0x2061   : > { %2735 = vrot.lane.b32.xlu1 %v2732_v3, %s5598_s13  ;;  %v3079_v3 = vld [vmem:[%s7218_s11 + $0x40] sm:$0xff]  ;;  %s646_s13 = sand.u32 1, %s7281_s22  }
0x2062   : > { %v4957_v59 = vpack.c.bf16 %v3080_v55, %v3079_v3  ;;  %s4202_s15 = sshll.u32 %s646_s13, 6  ;;  %s7153_s29 = scalar_lea.sflag [#allocation4], %s646_s13 }
0x2063   : > { %s7012_s28 = scalar_lea.vmem [#allocation13], %s4202_s15 }
0x2064   : > { %s4035_s19 = sshll.u32 %s7012_s28, 4  ;;  %s7149_s19 = int_to_ptr.vmem [resolvable:$true] %s4035_s19 }
0x2065   : > { %s5508_s15 = scalar_lea.vmem %s7149_s19, 1024 }
0x2066   : > { %p5509_p4 = scmp.ne.s32.totalorder %s7149_s19, %s5508_s15 }
0x2068   : > { %p5510_p8 = pnand %p5509_p4, %p7287_p7 }
0x206a   : > { %p5511_p11 = pneg %p5510_p8 }
0x20d3   : > { %v2736_v15 = vpop.permute.xlu1 %2735 }
0x20d4   : > { %v2738_v37 = vsel %vm6395_vm14, %v6627_v30, %v2736_v15  ;;  %v2751_v34 = vsel %vm6395_vm14, %v2736_v15, %v6627_v30  ;;  %v2756_v30 = vld [vmem:[%s7280_s25 + $0x20] sm:$0xff]  ;;  %v3209_v15 = vld [vmem:[%s7219_s12 + $0x50] sm:$0xff] }
0x20d5   : > { %v4909_v18 = vpack.c.bf16 %v2741_v50, %v2738_v37  ;;  %v4921_v45 = vpack.c.bf16 %v2751_v34, %v2750_v51  ;;  %v4993_v50 = vpack.c.bf16 %v3210_v26, %v3209_v15  ;;  %v3083_v37 = vld [vmem:[%s7218_s11 + $0x60] sm:$0xff]  ;;  %v3086_v34 = vld [vmem:[%s7218_s11 + $0x78] sm:$0xff]  ;;  %v3213_v51 = vld [vmem:[%s7219_s12 + $0x70] sm:$0xff] }
0x20d7   : > { %4910 = vmatprep.subr.bf16.mxu0 %v4909_v18 }
0x20d8   : > { %4912 = vmatpush3.bf16.msra.mxu0 %v4909_v18  ;;  %v3084_v18 = vld [vmem:[%s7218_s11 + $0x68] sm:$0xff] }
0x20d9   : > { %4914 = vmatprep.subr.bf16.mxu0 %v4913_v27 }
0x20dc   : > { %4916 = vmatpush3.bf16.msra.mxu0 %v4913_v27  ;;  %v4965_v27 = vpack.c.bf16 %v3084_v18, %v3083_v37 }
0x20dd   : > { %4918 = vmatprep.subr.bf16.mxu0 %v4917_v57 }
0x20e0   : > { %4920 = vmatpush3.bf16.msra.mxu0 %v4917_v57  ;;  %v3085_v57 = vld [vmem:[%s7218_s11 + $0x70] sm:$0xff] }
0x20e1   : > { %4922 = vmatprep.subr.bf16.mxu0 %v4921_v45 }
0x20e4   : > { %4924 = vmatpush3.bf16.msra.mxu0 %v4921_v45  ;;  %v4969_v45 = vpack.c.bf16 %v3086_v34, %v3085_v57 }
0x20e5   : > { %4942 = vmatprep.subr.bf16.mxu0 %v4941_v62 }
0x20e7   : > { %4490 = vmatmul.mubr.msk.f32.vlgmr.msra.gmra.mrb[24].mxu0 %vm735_vm1, %v2753_v21  ;;  %v3214_v21 = vld [vmem:[%s7219_s12 + $0x78] sm:$0xff] }
0x20e8   : > { %4492 = vmatprep.mubr.msk.f32.mxu0 %vm735_vm1, %v2754_v38  ;;  %4944 = vmatpush3.bf16.msra.mxu0 %v4941_v62  ;;  %v5001_v38 = vpack.c.bf16 %v3214_v21, %v3213_v51 }
0x20e9   : > { %4946 = vmatprep.subr.bf16.mxu0 %v4945_v53 }
0x20eb   : > { %4493 = vmatmul.mubr.msk.f32.gmra.mrb[26].mxu0 %vm735_vm1, %v2755_v47  ;;  %v2905_v47 = vld [vmem:[#allocation7] sm:$0x3] }
0x20ec   : > { %4495 = vmatprep.mubr.msk.f32.mxu0 %vm735_vm1, %v2756_v30  ;;  %4948 = vmatpush3.bf16.msra.mxu0 %v4945_v53  ;;  %v2910_v30 = vrot.slane %v2905_v47, %v5920_v8 }
0x20ed   : > { %4950 = vmatprep.subr.bf16.mxu0 %v4949_v17 }
0x20ef   : > { %4496 = vmatmul.mubr.msk.f32.gmra.mrb[28].mxu0 %vm735_vm1, %v2757_v54  ;;  %v7007_v54 = vrot.slane %v2905_v47, %v5996_v13 }
0x20f0   : > { %4498 = vmatprep.mubr.msk.f32.mxu0 %vm735_vm1, %v2758_v41  ;;  %4952 = vmatpush3.bf16.msra.mxu0 %v4949_v17 }
0x20f1   : > { %4954 = vmatprep.subr.bf16.mxu0 %v4953_v20 }
0x20f3   : > { %4499 = vmatmul.mubr.msk.f32.gmra.mrb[30].mxu0 %vm735_vm1, %v2759_v36 }
0x20f4   : > { %4956 = vmatpush3.bf16.msra.mxu0 %v4953_v20 }
0x20f5   : > { %4958 = vmatprep.subr.bf16.mxu0 %v4957_v59 }
0x20f8   : > { %4960 = vmatpush3.bf16.msra.mxu0 %v4957_v59 }
0x20f9   : > { %4962 = vmatprep.subr.bf16.mxu0 %v4961_v29 }
0x20fc   : > { %4964 = vmatpush3.bf16.msra.mxu0 %v4961_v29 }
0x20fd   : > { %4966 = vmatprep.subr.bf16.mxu0 %v4965_v27 }
0x2100   : > { %4968 = vmatpush3.bf16.msra.mxu0 %v4965_v27 }
0x2101   : > { %4970 = vmatprep.subr.bf16.mxu0 %v4969_v45 }
0x2104   : > { %4972 = vmatpush3.bf16.msra.mxu0 %v4969_v45 }
0x2105   : > { %5005 = vmatprep.subr.bf16.mxu0 %v5599_v63 }
0x21ba   : > { %v4491_v1 = vpop.f32.mrb[24].mxu0 }
0x21bb   : > { %v2850_v10 = vpop.f32.mrb[25].mxu0 }
0x21bc   : > { %4293 = vmatmul.mubr.msk.f32.vlgmr.msra.gmra.mrb[44].mxu1 %vm735_vm1, %v2850_v10 }
0x21bd   : > { %3011 = vmatprep.mubr.f32.mxu1 %v5596_v0  ;;  %4976 = vmatpush3.bf16.msra.mxu1 %v4973_v9 }
0x21be   : > { %v4494_v48 = vpop.f32.mrb[26].mxu0  ;;  %4978 = vmatprep.subr.bf16.mxu1 %v4977_v43 }
0x21bf   : > { %v2860_v42 = vpop.f32.mrb[27].mxu0 }
0x21c0   : > { %4294 = vmatmul.mubr.msk.f32.gmra.mrb[46].mxu1 %vm735_vm1, %v4491_v1 }
0x21c1   : > { %3017 = vmatprep.mubr.f32.mxu1 %v5596_v0  ;;  %4980 = vmatpush3.bf16.msra.mxu1 %v4977_v43 }
0x21c2   : > { %v4497_v16 = vpop.f32.mrb[28].mxu0  ;;  %4982 = vmatprep.subr.bf16.mxu1 %v4981_v25 }
0x21c3   : > { %v2870_v7 = vpop.f32.mrb[29].mxu0 }
0x21c4   : > { %4295 = vmatmul.mubr.msk.f32.gmra.mrb[48].mxu1 %vm735_vm1, %v2860_v42 }
0x21c5   : > { %3023 = vmatprep.mubr.f32.mxu1 %v5596_v0  ;;  %4984 = vmatpush3.bf16.msra.mxu1 %v4981_v25 }
0x21c6   : > { %v4500_v23 = vpop.f32.mrb[30].mxu0  ;;  %4986 = vmatprep.subr.bf16.mxu1 %v4985_v2 }
0x21c7   : > { %v2880_v4 = vpop.f32.mrb[31].mxu0 }
0x21c8   : > { %4296 = vmatmul.mubr.msk.f32.gmra.mrb[50].mxu1 %vm735_vm1, %v4494_v48 }
0x21c9   : > { %3029 = vmatprep.mubr.f32.mxu1 %v5596_v0  ;;  %4988 = vmatpush3.bf16.msra.mxu1 %v4985_v2 }
0x21ca   : > { %4990 = vmatprep.subr.bf16.mxu1 %v4989_v49 }
0x21cc   : > { %4297 = vmatmul.mubr.msk.f32.gmra.mrb[52].mxu1 %vm735_vm1, %v2870_v7 }
0x21cd   : > { %3035 = vmatprep.mubr.f32.mxu1 %v5596_v0  ;;  %4992 = vmatpush3.bf16.msra.mxu1 %v4989_v49 }
0x21ce   : > { %4994 = vmatprep.subr.bf16.mxu1 %v4993_v50 }
0x21d0   : > { %4298 = vmatmul.mubr.msk.f32.gmra.mrb[54].mxu1 %vm735_vm1, %v4497_v16 }
0x21d1   : > { %3041 = vmatprep.mubr.f32.mxu1 %v5596_v0  ;;  %4996 = vmatpush3.bf16.msra.mxu1 %v4993_v50  ;;  %v7049_v50 = vld [vmem:[%s7282_s27] sm:$0x1] }
0x21d2   : > { %4998 = vmatprep.subr.bf16.mxu1 %v4997_v12 }
0x21d4   : > { %4299 = vmatmul.mubr.msk.f32.gmra.mrb[56].mxu1 %vm735_vm1, %v2880_v4 }
0x21d5   : > { %3047 = vmatprep.mubr.f32.mxu1 %v5596_v0  ;;  %5000 = vmatpush3.bf16.msra.mxu1 %v4997_v12 }
0x21d6   : > { %5002 = vmatprep.subr.bf16.mxu1 %v5001_v38 }
0x21d8   : > { %4300 = vmatmul.mubr.msk.f32.gmra.mrb[58].mxu1 %vm735_vm1, %v4500_v23 }
0x21d9   : > { %5004 = vmatpush3.bf16.msra.mxu1 %v5001_v38 }
0x21da   : > { %5013 = vmatprep.subr.bf16.mxu1 %v5599_v63 }
0x228f   : > { %v3007_v41 = vpop.f32.mrb[44].mxu1 }
0x2290   : > { %v3008_v36 = vadd.f32 %v3007_v41, %v2910_v30  ;;  %v3009_v28 = vpop.f32.mrb[45].mxu1 }
0x2291   : > { %v3010_v44 = vadd.f32 %v3009_v28, %v7007_v54 }
0x2292   : > { %v3054_v19 = vmax.f32 %v3008_v36, 0.0 }
0x2293   : > { %3063 = vst.msk [vmem:[%s7012_s28] sm:$0xff] %vm3062_vm15, %v3010_v44  ;;  %v3013_v8 = vpop.f32.mrb[46].mxu1 }
0x2294   : > { %v3014_v62 = vadd.f32 %v3013_v8, %v2910_v30  ;;  %v3015_v13 = vpop.f32.mrb[47].mxu1  ;;  %4533 = vmatprep.mubr.f32.mxu0 %v3054_v19  ;;  %4577 = vmatprep.mubr.f32.mxu1 %v3054_v19 }
0x2295   : > { %v3016_v58 = vadd.f32 %v3015_v13, %v7007_v54 }
0x2296   : > { %v3055_v22 = vmax.f32 %v3014_v62, 0.0 }
0x2297   : > { %3064 = vst.msk [vmem:[%s7012_s28 + $0x8] sm:$0xff] %vm3062_vm15, %v3016_v58  ;;  %v3019_v32 = vpop.f32.mrb[48].mxu1 }
0x2298   : > { %4534 = vmatmul.mubr.f32.vlgmr.msra.gmra.mrb[32].mxu0 %v3055_v22  ;;  %4578 = vmatmul.mubr.f32.vlgmr.msra.gmra.mrb[60].mxu1 %v3055_v22  ;;  %v3020_v9 = vadd.f32 %v3019_v32, %v2910_v30  ;;  %v3021_v53 = vpop.f32.mrb[49].mxu1 }
0x2299   : > { %v3022_v61 = vadd.f32 %v3021_v53, %v7007_v54 }
0x229a   : > { %v3056_v31 = vmax.f32 %v3020_v9, 0.0 }
0x229b   : > { %3065 = vst.msk [vmem:[%s7012_s28 + $0x10] sm:$0xff] %vm3062_vm15, %v3022_v61  ;;  %v3025_v17 = vpop.f32.mrb[50].mxu1 }
0x229c   : > { %v3026_v40 = vadd.f32 %v3025_v17, %v2910_v30  ;;  %v3027_v33 = vpop.f32.mrb[51].mxu1  ;;  %4580 = vmatprep.mubr.f32.mxu1 %v3056_v31  ;;  %4536 = vmatprep.mubr.f32.mxu0 %v3056_v31 }
0x229d   : > { %v3028_v20 = vadd.f32 %v3027_v33, %v7007_v54 }
0x229e   : > { %v3057_v3 = vmax.f32 %v3026_v40, 0.0 }
0x229f   : > { %3066 = vst.msk [vmem:[%s7012_s28 + $0x18] sm:$0xff] %vm3062_vm15, %v3028_v20  ;;  %v3031_v55 = vpop.f32.mrb[52].mxu1 }
0x22a0   : > { %4581 = vmatmul.mubr.f32.gmra.mrb[62].mxu1 %v3057_v3  ;;  %v3032_v59 = vadd.f32 %v3031_v55, %v2910_v30  ;;  %v3033_v5 = vpop.f32.mrb[53].mxu1  ;;  %4537 = vmatmul.mubr.f32.gmra.mrb[34].mxu0 %v3057_v3 }
0x22a1   : > { %v3034_v14 = vadd.f32 %v3033_v5, %v7007_v54 }
0x22a2   : > { %v3058_v29 = vmax.f32 %v3032_v59, 0.0 }
0x22a3   : > { %3067 = vst.msk [vmem:[%s7012_s28 + $0x20] sm:$0xff] %vm3062_vm15, %v3034_v14  ;;  %v3037_v24 = vpop.f32.mrb[54].mxu1 }
0x22a4   : > { %v3038_v35 = vadd.f32 %v3037_v24, %v2910_v30  ;;  %4583 = vmatprep.mubr.f32.mxu1 %v3058_v29  ;;  %v3039_v1 = vpop.f32.mrb[55].mxu1  ;;  %4539 = vmatprep.mubr.f32.mxu0 %v3058_v29 }
0x22a5   : > { %v3040_v43 = vadd.f32 %v3039_v1, %v7007_v54 }
0x22a6   : > { %v3059_v10 = vmax.f32 %v3038_v35, 0.0 }
0x22a7   : > { %3068 = vst.msk [vmem:[%s7012_s28 + $0x28] sm:$0xff] %vm3062_vm15, %v3040_v43  ;;  %v3043_v52 = vpop.f32.mrb[56].mxu1 }
0x22a8   : > { %4584 = vmatmul.mubr.f32.gmra.mrb[64].mxu1 %v3059_v10  ;;  %v3044_v60 = vadd.f32 %v3043_v52, %v2910_v30  ;;  %v3045_v48 = vpop.f32.mrb[57].mxu1  ;;  %4540 = vmatmul.mubr.f32.gmra.mrb[36].mxu0 %v3059_v10 }
0x22a9   : > { %v3046_v25 = vadd.f32 %v3045_v48, %v7007_v54 }
0x22aa   : > { %v3060_v42 = vmax.f32 %v3044_v60, 0.0 }
0x22ab   : > { %3069 = vst.msk [vmem:[%s7012_s28 + $0x30] sm:$0xff] %vm3062_vm15, %v3046_v25  ;;  %v3049_v56 = vpop.f32.mrb[58].mxu1 }
0x22ac   : > { %v3050_v39 = vadd.f32 %v3049_v56, %v2910_v30  ;;  %4586 = vmatprep.mubr.f32.mxu1 %v3060_v42  ;;  %v3051_v16 = vpop.f32.mrb[59].mxu1  ;;  %4542 = vmatprep.mubr.f32.mxu0 %v3060_v42  ;;  %v7067_v30 = vld [vmem:[#allocation11] ss:$0 sm:$0xff] }
0x22ad   : > { %v3052_v2 = vadd.f32 %v3051_v16, %v7007_v54 }
0x22ae   : > { %v3061_v7 = vmax.f32 %v3050_v39, 0.0 }
0x22af   : > { %3070 = vst.msk [vmem:[%s7012_s28 + $0x38] sm:$0xff] %vm3062_vm15, %v3052_v2  ;;  %s5512_s28 = sshll.u32 %s5601_s0, 4  ;;  %s5513_s28 = int_to_ptr.vmem [resolvable:$false] %s5512_s28 }
0x22b0   : > { %4587 = vmatmul.mubr.f32.gmra.mrb[66].mxu1 %v3061_v7  ;;  %4543 = vmatmul.mubr.f32.gmra.mrb[38].mxu0 %v3061_v7  ;;  %s5514_s17 = scalar_lea.vmem %s5513_s28, 2048  ;;  %p5515_p13 = scmp.lt.s32.totalorder %s7149_s19, %s5513_s28 }
0x22b1   : > { %4593 = vmatprep.mubr.msk.f32.mxu0 %vm5600_vm0, %v5596_v0  ;;  %4607 = vmatprep.mubr.msk.f32.mxu1 %vm5600_vm0, %v5596_v0  ;;  %p5516_p1 = scmp.lt.s32.totalorder %s5514_s17, %s5508_s15 }
0x22b3   : > { %p5517_p0 = por %p5516_p1, %p5515_p13 }
0x22b5   : > { %p5518_p6 = pnand %p5517_p0, %p5511_p11 }
0x236b   : > { %v4535_v23 = vpop.f32.mrb[32].mxu0  ;;  %v4579_v49 = vpop.f32.mrb[60].mxu1 }
0x236c   : > { %v3160_v4 = vpop.f32.mrb[33].mxu0  ;;  %v3288_v15 = vpop.f32.mrb[61].mxu1  ;;  %v3294_v37 = vadd.f32 %v4579_v49, %v7043_v11  ;;  %v3166_v9 = vadd.f32 %v4535_v23, %v7060_v46 }
0x236d   : > { %v3289_v26 = vadd.f32 %v7043_v11, %v3288_v15  ;;  %v3161_v38 = vadd.f32 %v7060_v46, %v3160_v4 }
0x236e   : > { %v3429_v57 = vrot.slane %v3294_v37, 7  ;;  %v3335_v33 = vadd.f32 %v7067_v30, %v3166_v9 }
0x236f   : > { %v3344_v18 = vrot.slane %v3289_v26, 7  ;;  %v3334_v28 = vadd.f32 %v7067_v30, %v3161_v38 }
0x2370   : > { %v3431_v54 = vsel %vm3346_vm2, %v7049_v50, %v3429_v57 }
0x2371   : > { %v3347_v6 = vsel %vm3346_vm2, %v7049_v50, %v3344_v18  ;;  %v5010_v19 = vpack.c.bf16 %v3429_v57, %v3431_v54 }
0x2372   : > { %v5006_v12 = vpack.c.bf16 %v3344_v18, %v3347_v6 }
0x2373   : > { %v4582_v34 = vpop.f32.mrb[62].mxu1  ;;  %v4538_v51 = vpop.f32.mrb[34].mxu0 }
0x2374   : > { %v3298_v45 = vpop.f32.mrb[63].mxu1  ;;  %5008 = vmatpush3.bf16.xpose.msk.msra.mxu0 %vm7056_vm3, %v5006_v12  ;;  %v3170_v21 = vpop.f32.mrb[35].mxu0  ;;  %v3304_v41 = vadd.f32 %v4582_v34, %v7043_v11  ;;  %v3176_v1 = vadd.f32 %v4538_v51, %v7060_v46 }
0x2375   : > { %v3299_v47 = vadd.f32 %v7043_v11, %v3298_v45  ;;  %5009 = vmatprep.subr.bf16.mxu0 %v5599_v63  ;;  %v3171_v53 = vadd.f32 %v7060_v46, %v3170_v21 }
0x2376   : > { %v3597_v62 = vrot.slane %v3304_v41, 7  ;;  %v3337_v25 = vadd.f32 %v7067_v30, %v3176_v1 }
0x2377   : > { %v3513_v36 = vrot.slane %v3299_v47, 7  ;;  %v3336_v20 = vadd.f32 %v7067_v30, %v3171_v53 }
0x2378   : > { %v3599_v31 = vsel %vm3346_vm2, %v7049_v50, %v3597_v62 }
0x2379   : > { %v3515_v44 = vsel %vm3346_vm2, %v7049_v50, %v3513_v36  ;;  %v5018_v55 = vpack.c.bf16 %v3597_v62, %v3599_v31 }
0x237a   : > { %v5014_v8 = vpack.c.bf16 %v3513_v36, %v3515_v44 }
0x237b   : > { %v4585_v13 = vpop.f32.mrb[64].mxu1  ;;  %4594 = vmatmul.mubr.msk.f32.vlgmr.msra.gmra.mrb[40].mxu0 %vm735_vm1, %v3334_v28  ;;  %v4541_v58 = vpop.f32.mrb[36].mxu0 }
0x237c   : > { %v3308_v22 = vpop.f32.mrb[65].mxu1  ;;  %5012 = vmatpush3.bf16.xpose.msk.msra.mxu0 %vm7056_vm3, %v5010_v19  ;;  %5016 = vmatpush3.bf16.xpose.msk.msra.mxu1 %vm7056_vm3, %v5014_v8  ;;  %v3180_v32 = vpop.f32.mrb[37].mxu0  ;;  %v3314_v17 = vadd.f32 %v4585_v13, %v7043_v11  ;;  %v3186_v7 = vadd.f32 %v4541_v58, %v7060_v46 }
0x237d   : > { %v3309_v61 = vadd.f32 %v7043_v11, %v3308_v22  ;;  %4600 = vmatprep.mubr.msk.f32.mxu0 %vm5600_vm0, %v5596_v0  ;;  %5017 = vmatprep.subr.bf16.mxu0 %v5599_v63  ;;  %v3181_v10 = vadd.f32 %v7060_v46, %v3180_v32 }
0x237e   : > { %5021 = vmatprep.subr.bf16.mxu1 %v5599_v63  ;;  %v3765_v5 = vrot.slane %v3314_v17, 7  ;;  %v3339_v49 = vadd.f32 %v7067_v30, %v3186_v7 }
0x237f   : > { %v3681_v40 = vrot.slane %v3309_v61, 7  ;;  %v3338_v56 = vadd.f32 %v7067_v30, %v3181_v10 }
0x2380   : > { %v3767_v52 = vsel %vm3346_vm2, %v7049_v50, %v3765_v5 }
0x2381   : > { %v3683_v3 = vsel %vm3346_vm2, %v7049_v50, %v3681_v40  ;;  %v5026_v39 = vpack.c.bf16 %v3765_v5, %v3767_v52 }
0x2382   : > { %v5022_v59 = vpack.c.bf16 %v3681_v40, %v3683_v3 }
0x2383   : > { %v4588_v14 = vpop.f32.mrb[66].mxu1  ;;  %4601 = vmatmul.mubr.msk.f32.vlgmr.msra.gmra.mrb[42].mxu0 %vm735_vm1, %v3335_v33  ;;  %4608 = vmatmul.mubr.msk.f32.vlgmr.msra.gmra.mrb[68].mxu1 %vm735_vm1, %v3336_v20  ;;  %v4544_v29 = vpop.f32.mrb[38].mxu0 }
0x2384   : > { %v3318_v24 = vpop.f32.mrb[67].mxu1  ;;  %5020 = vmatpush3.bf16.xpose.msk.msra.mxu0 %vm7056_vm3, %v5018_v55  ;;  %5024 = vmatpush3.bf16.xpose.msk.msra.mxu1 %vm7056_vm3, %v5022_v59  ;;  %v3190_v35 = vpop.f32.mrb[39].mxu0  ;;  %v3324_v60 = vadd.f32 %v4588_v14, %v7043_v11 }
0x2385   : > { %v3319_v43 = vadd.f32 %v7043_v11, %v3318_v24  ;;  %4614 = vmatprep.mubr.msk.f32.mxu0 %vm5600_vm0, %v5596_v0  ;;  %4621 = vmatprep.mubr.msk.f32.mxu1 %vm5600_vm0, %v5596_v0  ;;  %v3191_v11 = vadd.f32 %v7060_v46, %v3190_v35 }
0x2386   : > { %5025 = vmatprep.subr.bf16.mxu0 %v5599_v63  ;;  %5029 = vmatprep.subr.bf16.mxu1 %v5599_v63  ;;  %v3933_v2 = vrot.slane %v3324_v60, 7 }
0x2387   : > { %v3849_v48 = vrot.slane %v3319_v43, 7  ;;  %v3340_v4 = vadd.f32 %v7067_v30, %v3191_v11 }
0x2388   : > { %v3935_v23 = vsel %vm3346_vm2, %v7049_v50, %v3933_v2 }
0x2389   : > { %v3851_v42 = vsel %vm3346_vm2, %v7049_v50, %v3849_v48  ;;  %v5034_v15 = vpack.c.bf16 %v3933_v2, %v3935_v23 }
0x238a   : > { %v5030_v16 = vpack.c.bf16 %v3849_v48, %v3851_v42 }
0x238b   : > { %4615 = vmatmul.mubr.msk.f32.vlgmr.msra.gmra.mrb[44].mxu0 %vm735_vm1, %v3337_v25  ;;  %4622 = vmatmul.mubr.msk.f32.vlgmr.msra.gmra.mrb[70].mxu1 %vm735_vm1, %v3338_v56 }
0x238c   : > { %5028 = vmatpush3.bf16.xpose.msk.msra.mxu0 %vm7056_vm3, %v5026_v39  ;;  %5032 = vmatpush3.bf16.xpose.msk.msra.mxu1 %vm7056_vm3, %v5030_v16 }
0x238d   : > { %4628 = vmatprep.mubr.msk.f32.mxu0 %vm5600_vm0, %v5596_v0  ;;  %4635 = vmatprep.mubr.msk.f32.mxu1 %vm5600_vm0, %v5596_v0 }
0x238e   : > { %5033 = vmatprep.subr.bf16.mxu0 %v5599_v63  ;;  %v3196_v63 = vadd.f32 %v4544_v29, %v7060_v46 }
0x2390   : > { %v3341_v26 = vadd.f32 %v7067_v30, %v3196_v63 }
0x2393   : > { %4629 = vmatmul.mubr.msk.f32.vlgmr.msra.gmra.mrb[46].mxu0 %vm735_vm1, %v3339_v49  ;;  %4636 = vmatmul.mubr.msk.f32.vlgmr.msra.gmra.mrb[72].mxu1 %vm735_vm1, %v3340_v4 }
0x2394   : > { %5036 = vmatpush3.bf16.xpose.msk.msra.mxu0 %vm7056_vm3, %v5034_v15  ;;  %4642 = vmatprep.mubr.msk.f32.mxu0 %vm5600_vm0, %v5596_v0 }
0x239b   : > { %4643 = vmatmul.mubr.msk.f32.vlgmr.msra.gmra.mrb[48].mxu0 %vm735_vm1, %v3341_v26 }
0x239c   : > { %5521 = shalt.err (!%p5518_p6)
}
0x239d   : > { %s5522_s22 = scalar_lea.hbm %s7147_s26, 1024  ;;  %s5526_s27 = scalar_lea.hbm %s7286_s20, 2048 }
0x239e   : > { %p5523_p5 = scmp.ne.s32.totalorder %s7147_s26, %s5522_s22  ;;  %p5527_p10 = scmp.lt.u32.totalorder %s7147_s26, %s7286_s20 }
0x239f   : > { %p5528_p2 = scmp.lt.u32.totalorder %s5526_s27, %s5522_s22  ;;  %p5530_p4 = scmp.lt.u32.totalorder %s5522_s22, %s7147_s26 }
0x23a0   : > { %p5524_p9 = pnand %p5523_p5, %p7287_p7 }
0x23a1   : > { %p5529_p3 = por %p5528_p2, %p5527_p10 }
0x23a2   : > { %p5525_p12 = pneg %p5524_p9 }
0x23a3   : > { %p5531_p8 = por %p5530_p4, %p5529_p3 }
0x23a5   : > { %p5532_p11 = pnand %p5531_p8, %p5525_p12 }
0x23a7   : > { %5535 = shalt.err (!%p5532_p11)
}
0x23a8   : > { %s5602_s1 = smov 128   ;;  %s5603_s15 = smov 8   ;;  %vm3426_vm1 = vcmask 72704  }
0x23a9   : > { %5061 = dma.vmem_to_hbm [thread:$0]  (%p7287_p7), %s7149_s19, 1024, %s7147_s26, %s7153_s29, %s5602_s1, %s5602_s1, %s5603_s15  }
0x23aa   : > { %s7288_s17 = sld [smem:[#allocation34_spill]] }
0x23b0   : > { %s667_s13 = scalar_lea.vmem %s7288_s17, %s4204_s21 }
0x244e   : > { %v3422_v0 = vpop.f32.mrb[40].mxu0 }
0x244f   : > { %3427 = vst.msk [vmem:[%s667_s13] sm:$0xff] %vm3426_vm1, %v3422_v0  ;;  %v4595_v50 = vpop.f32.mrb[41].mxu0 }
0x2456   : > { %v3506_v37 = vpop.f32.mrb[42].mxu0  ;;  %v3590_v18 = vpop.f32.mrb[68].mxu1 }
0x2457   : > { %4310 = vst.msk [vmem:[%s667_s13 + $0x8] sm:$0xff] %vm3426_vm1, %v3506_v37  ;;  %4314 = vst.msk [vmem:[%s667_s13 + $0x10] sm:$0xff] %vm3426_vm1, %v3590_v18  ;;  %v4602_v6 = vpop.f32.mrb[43].mxu0  ;;  %v4609_v27 = vpop.f32.mrb[69].mxu1 }
0x245e   : > { %v3674_v46 = vpop.f32.mrb[44].mxu0  ;;  %v3758_v12 = vpop.f32.mrb[70].mxu1 }
0x245f   : > { %4318 = vst.msk [vmem:[%s667_s13 + $0x18] sm:$0xff] %vm3426_vm1, %v3674_v46  ;;  %4322 = vst.msk [vmem:[%s667_s13 + $0x20] sm:$0xff] %vm3426_vm1, %v3758_v12  ;;  %v4616_v57 = vpop.f32.mrb[45].mxu0  ;;  %v4623_v34 = vpop.f32.mrb[71].mxu1 }
0x2466   : > { %v3842_v51 = vpop.f32.mrb[46].mxu0  ;;  %v3926_v45 = vpop.f32.mrb[72].mxu1 }
0x2467   : > { %4326 = vst.msk [vmem:[%s667_s13 + $0x28] sm:$0xff] %vm3426_vm1, %v3842_v51  ;;  %4330 = vst.msk [vmem:[%s667_s13 + $0x30] sm:$0xff] %vm3426_vm1, %v3926_v45  ;;  %v4630_v21 = vpop.f32.mrb[47].mxu0  ;;  %v4637_v38 = vpop.f32.mrb[73].mxu1 }
0x246e   : > { %v4010_v47 = vpop.f32.mrb[48].mxu0 }
0x246f   : > { %4334 = vst.msk [vmem:[%s667_s13 + $0x38] sm:$0xff] %vm3426_vm1, %v4010_v47  ;;  %v4644_v30 = vpop.f32.mrb[49].mxu0 }
0x2470 PF: > { %s7289_s24 = sld [smem:[#allocation22_spill]]  ;;  %s7290_s21 = sld [smem:[#allocation19_spill]] }
0x2471   : > { %s7291_s30 = sld [smem:[#allocation26_spill]] }
0x2476   : > { %p5098_p7 = scmp.ge.s32.totalorder %s7289_s24, 2  ;;  %s4054_s19 = sand.u32 1, %s7290_s21  }
0x2477   : > { %p7292_p13 = scmp.ne.s32.totalorder %s7291_s30, 0  ;;  %s4055_s26 = scalar_lea.sflag [#allocation4], %s4054_s19 }
0x2479   : > { %p5083_p1 = pnand %p5098_p7, %p7292_p13 }
0x247b   : > { %5569 = dma.done.wait (!%p5083_p1), %s4055_s26, 1024  }
0x247c   : > { %5571 = vsyncadd (!%p5083_p1), %s4055_s26, 4294966272  ;;  %s7293_s30 = sld [smem:[#allocation23_spill]]  ;;  %s7294_s27 = sld [smem:[#allocation20_spill]] }
0x247d   : > { %s7295_s28 = sld [smem:[#allocation21_spill]]  ;;  %s7296_s29 = sld [smem:[#allocation24_spill]] }
0x2482   : > { %p33_p0 = scmp.ge.s32.totalorder %s7293_s30, 4  }
0x2484   :  { %35 = sbr.rel (!%p33_p0) target bundleno = 16 (0x10), region = 167 }
0x248b   :  { %4068 = vsyncpa [#allocation3], 1 }
0x248c   :  { %4070 = vsyncpa [#allocation3 + $0x1], 1 }
0x248d   :  { %4071 = vsyncpa [#allocation6], 1 }
0x248e   :  { %4072 = vsyncpa [#allocation9], 1 }
0x248f   :  { %4073 = vsyncpa [#allocation12], 1 }
0x2490   :  { %4074 = vsyncpa [#allocation4], 1 }
0x2491   :  { %4076 = vsyncpa [#allocation4 + $0x1], 1 }

</bundles_post_ra>
